<compile_context>
chip_gen: v7x
topology: tpu7x:2x2x1
jax: 0.10.0
libtpu: 0.0.40
codegen_flags: <defaults>
</compile_context>

<pallas_src>
import functools

import jax
import jax.numpy as jnp
from jax.experimental import pallas as pl
from jax.experimental.pallas import tpu as pltpu


def _char_lstm_kernel(num_layers, T, H,
                      x_emb_ref, h0_ref, c0_ref,
                      w_ih0_ref, w_ih_rest_ref, w_hh_ref, b_ref,
                      w_fc_ref, b_fc_ref,
                      logits_ref, h_out_ref, c_out_ref,
                      seq_buf, xg_buf):
    """Whole CharLSTM forward for one batch block (everything VMEM-resident).

    seq_buf: (T, Bt, H) f32 scratch with the current layer's output sequence
             (time-major).  Written by layer l, consumed by layer l+1.
    xg_buf:  (T, Bt, 4H) f32 scratch holding the hoisted input projection
             X @ W_ih + bias for the current layer (gate order [i, f, o, g]).
    """
    Bt = x_emb_ref.shape[1]
    h_last = None
    for l in range(num_layers):                       # static unroll over layers
        # ---- hoisted input projection for the whole sequence (one big matmul) ----
        if l == 0:
            x_flat = x_emb_ref[...].reshape(T * Bt, -1).astype(jnp.bfloat16)
            w_ih = w_ih0_ref[...]                      # (E, 4H) bf16
        else:
            x_flat = seq_buf[...].reshape(T * Bt, H).astype(jnp.bfloat16)
            w_ih = w_ih_rest_ref[l - 1]                # (H, 4H) bf16
        xg = jnp.dot(x_flat, w_ih, preferred_element_type=jnp.float32)
        xg = xg + b_ref[l]                             # bias folded in once per layer
        xg_buf[...] = xg.reshape(T, Bt, 4 * H)

        h = h0_ref[l]                                  # (Bt, H) f32 state
        c = c0_ref[l]                                  # (Bt, H) f32 state
        w_hh = w_hh_ref[l]                             # (H, 4H) bf16
        for t in range(T):                             # static unroll over timesteps
            gates = xg_buf[t] + jnp.dot(h.astype(jnp.bfloat16), w_hh,
                                        preferred_element_type=jnp.float32)
            # gate order [i, f, o, g]: one wide sigmoid over 3H, one tanh over H
            sig = jax.nn.sigmoid(gates[:, :3 * H])
            i_g = sig[:, 0 * H:1 * H]
            f_g = sig[:, 1 * H:2 * H]
            o_g = sig[:, 2 * H:3 * H]
            g_g = jnp.tanh(gates[:, 3 * H:])
            c = f_g * c + i_g * g_g
            h = o_g * jnp.tanh(c)
            if l < num_layers - 1:                     # last layer's sequence unused
                seq_buf[t] = h
        h_out_ref[l] = h
        c_out_ref[l] = c
        h_last = h                                     # == lstm_out[:, -1, :] of last layer
    logits_ref[...] = (jnp.dot(h_last.astype(jnp.bfloat16), w_fc_ref[...],
                               preferred_element_type=jnp.float32)
                       + b_fc_ref[...])


def _reorder_gates_ifgo_to_ifog(w):
    """Permute the last (4H) axis from torch gate order [i,f,g,o] to [i,f,o,g]."""
    i, f, g, o = jnp.split(w, 4, axis=-1)
    return jnp.concatenate([i, f, o, g], axis=-1)


def char_lstm_forward(params, x_tokens, hidden, *, block_b=8):
    """Matches PyTorch CharLSTM.forward(x, hidden) -> (logits, (h_n, c_n))."""
    h0, c0 = hidden
    # Glue: embedding gather stays in plain JAX (tiny table lookup, not the hot path).
    x_emb = params["embedding"][x_tokens].astype(jnp.float32)   # (B, T, E)
    B, T, E = x_emb.shape
    L, _, H = h0.shape
    fc_out = params["b_fc"].shape[-1]

    # Time-major layout so the kernel's per-step slice is lane/sublane dense.
    x_emb_tm = jnp.transpose(x_emb, (1, 0, 2))                  # (T, B, E)

    # Gate permutation [i,f,g,o] -> [i,f,o,g] + bf16 weights (MXU-native).
    w_ih0 = _reorder_gates_ifgo_to_ifog(params["w_ih0"]).astype(jnp.bfloat16)
    w_ih_rest = _reorder_gates_ifgo_to_ifog(params["w_ih_rest"]).astype(jnp.bfloat16)
    w_hh = _reorder_gates_ifgo_to_ifog(params["w_hh"]).astype(jnp.bfloat16)
    b = _reorder_gates_ifgo_to_ifog(params["b"])                # keep f32
    w_fc = params["w_fc"].astype(jnp.bfloat16)
    b_fc = params["b_fc"]
    n_rest = w_ih_rest.shape[0]

    BT = min(block_b, B)
    assert B % BT == 0, "batch must be a multiple of the batch block"
    nb = B // BT

    kernel = functools.partial(_char_lstm_kernel, L, T, H)

    grid_spec = pltpu.PrefetchScalarGridSpec(
        num_scalar_prefetch=0,
        grid=(nb,),
        in_specs=[
            pl.BlockSpec((T, BT, E), lambda b_: (0, b_, 0)),        # x_emb (time-major)
            pl.BlockSpec((L, BT, H), lambda b_: (0, b_, 0)),        # h0
            pl.BlockSpec((L, BT, H), lambda b_: (0, b_, 0)),        # c0
            pl.BlockSpec((E, 4 * H), lambda b_: (0, 0)),            # w_ih0
            pl.BlockSpec((n_rest, H, 4 * H), lambda b_: (0, 0, 0)),  # w_ih_rest
            pl.BlockSpec((L, H, 4 * H), lambda b_: (0, 0, 0)),      # w_hh
            pl.BlockSpec((L, 1, 4 * H), lambda b_: (0, 0, 0)),      # b
            pl.BlockSpec((H, fc_out), lambda b_: (0, 0)),           # w_fc
            pl.BlockSpec((1, fc_out), lambda b_: (0, 0)),           # b_fc
        ],
        out_specs=(
            pl.BlockSpec((BT, fc_out), lambda b_: (b_, 0)),         # logits
            pl.BlockSpec((L, BT, H), lambda b_: (0, b_, 0)),        # h_n
            pl.BlockSpec((L, BT, H), lambda b_: (0, b_, 0)),        # c_n
        ),
        scratch_shapes=[
            pltpu.VMEM((T, BT, H), jnp.float32),                    # seq_buf
            pltpu.VMEM((T, BT, 4 * H), jnp.float32),                # xg_buf
        ],
    )

    logits, h_n, c_n = pl.pallas_call(
        kernel,
        out_shape=(
            jax.ShapeDtypeStruct((B, fc_out), jnp.float32),
            jax.ShapeDtypeStruct((L, B, H), jnp.float32),
            jax.ShapeDtypeStruct((L, B, H), jnp.float32),
        ),
        grid_spec=grid_spec,
        compiler_params=pltpu.CompilerParams(
            dimension_semantics=("parallel",)),     # batch blocks -> megacore on v7x
    )(x_emb_tm, h0, c0, w_ih0, w_ih_rest, w_hh, b, w_fc, b_fc)
    return logits, (h_n, c_n)


def init_params(key, vocab_size, embedding_dim, hidden_size, output_size,
                num_layers, seq_length):
    """Deterministic synthetic parameters with the same shapes nn.* would create.

    Stored in torch gate order [i, f, g, o]; the wrapper handles permutation/bf16.
    """
    ks = jax.random.split(key, 8)
    H = hidden_size
    k = 1.0 / float(H) ** 0.5
    n_rest = max(num_layers - 1, 1)
    fc_out = output_size * seq_length
    u = lambda kk, shape: jax.random.uniform(kk, shape, jnp.float32, -k, k)
    params = {
        "embedding": jax.random.normal(ks[0], (vocab_size, embedding_dim), jnp.float32),
        # weight_ih_l0: torch (4H, E) stored transposed as (E, 4H)
        "w_ih0": u(ks[1], (embedding_dim, 4 * H)),
        # weight_ih_l{k>=1}: torch (4H, H) stored transposed, stacked
        "w_ih_rest": u(ks[2], (n_rest, H, 4 * H)),
        # weight_hh_l{k}: torch (4H, H) stored transposed, stacked
        "w_hh": u(ks[3], (num_layers, H, 4 * H)),
        # b = b_ih + b_hh (equivalent inside the gate sum)
        "b": u(ks[4], (num_layers, 1, 4 * H)) + u(ks[5], (num_layers, 1, 4 * H)),
        # fc: torch (out, H) stored transposed as (H, out)
        "w_fc": u(ks[6], (H, fc_out)),
        "b_fc": u(ks[7], (1, fc_out)),
    }
    return params


def reference_forward(params, x_tokens, hidden):
    """Pure-JAX f32 reference (torch gate order) used to validate the kernel."""
    h0, c0 = hidden
    x = params["embedding"][x_tokens].astype(jnp.float32)
    L, _, H = h0.shape
    T = x.shape[1]
    layer_in = x
    hs, cs = [], []
    for l in range(L):
        h, c = h0[l], c0[l]
        w_ih = params["w_ih0"] if l == 0 else params["w_ih_rest"][l - 1]
        w_hh = params["w_hh"][l]
        bias = params["b"][l]
        outs = []
        for t in range(T):
            gates = layer_in[:, t, :] @ w_ih + h @ w_hh + bias
            i = jax.nn.sigmoid(gates[:, :H])
            f = jax.nn.sigmoid(gates[:, H:2 * H])
            g = jnp.tanh(gates[:, 2 * H:3 * H])
            o = jax.nn.sigmoid(gates[:, 3 * H:])
            c = f * c + i * g
            h = o * jnp.tanh(c)
            outs.append(h)
        layer_in = jnp.stack(outs, axis=1)
        hs.append(h)
        cs.append(c)
    logits = layer_in[:, -1, :] @ params["w_fc"] + params["b_fc"]
    return logits, (jnp.stack(hs), jnp.stack(cs))


if __name__ == "__main__":
    # Small shapes consistent with the module's forward:
    #   x: (batch, seq_length) int tokens, hidden: 2 x (num_layers, batch, H)
    vocab_size = 16
    embedding_dim = 64
    hidden_size = 128      # 4H = 512 -> gate slices are 128-lane aligned
    num_layers = 2
    seq_length = 8         # LSTM sequence length AND fc output multiplier
    output_size = vocab_size
    batch = 16             # multiple of the 8-row sublane tile; grid of 2 batch blocks

    key = jax.random.PRNGKey(0)
    pkey, xkey, hkey, ckey = jax.random.split(key, 4)

    params = init_params(pkey, vocab_size, embedding_dim, hidden_size,
                         output_size, num_layers, seq_length)
    x = jax.random.randint(xkey, (batch, seq_length), 0, vocab_size, dtype=jnp.int32)
    h0 = jax.random.normal(hkey, (num_layers, batch, hidden_size), jnp.float32)
    c0 = jax.random.normal(ckey, (num_layers, batch, hidden_size), jnp.float32)

    logits, (h_n, c_n) = char_lstm_forward(params, x, (h0, c0), block_b=8)
    jax.block_until_ready((logits, h_n, c_n))

    ref_logits, (ref_h, ref_c) = reference_forward(params, x, (h0, c0))
    assert logits.shape == (batch, output_size * seq_length)
    # bf16 weights/matmul LHS -> loosened tolerance vs. the f32 reference.
    assert jnp.allclose(logits, ref_logits, atol=5e-2, rtol=5e-2)
    assert jnp.allclose(h_n, ref_h, atol=5e-2, rtol=5e-2)
    assert jnp.allclose(c_n, ref_c, atol=5e-2, rtol=5e-2)

    print("KERNEL_OK")
</pallas_src>

<mosaic_0001>
module attributes {stable_mosaic.version = 11 : i64} {
  func.func @_char_lstm_kernel(%arg0: i32, %arg1: memref<8x8x64xf32, #tpu.memory_space<vmem>>, %arg2: memref<2x8x128xf32, #tpu.memory_space<vmem>>, %arg3: memref<2x8x128xf32, #tpu.memory_space<vmem>>, %arg4: memref<64x512xbf16, #tpu.memory_space<vmem>>, %arg5: memref<1x128x512xbf16, #tpu.memory_space<vmem>>, %arg6: memref<2x128x512xbf16, #tpu.memory_space<vmem>>, %arg7: memref<2x1x512xf32, #tpu.memory_space<vmem>>, %arg8: memref<128x128xbf16, #tpu.memory_space<vmem>>, %arg9: memref<1x128xf32, #tpu.memory_space<vmem>>, %arg10: memref<8x128xf32, #tpu.memory_space<vmem>>, %arg11: memref<2x8x128xf32, #tpu.memory_space<vmem>>, %arg12: memref<2x8x128xf32, #tpu.memory_space<vmem>>, %arg13: memref<8x8x128xf32, #tpu.memory_space<vmem>>, %arg14: memref<8x8x512xf32, #tpu.memory_space<vmem>>) attributes {dimension_semantics = [#tpu.dimension_semantics<parallel>], iteration_bounds = array<i64: 2>, scalar_prefetch = 0 : i64, scratch_operands = 2 : i64, tpu.core_type = #tpu.core_type<tc>, window_params = [{transform_indices = @transform_0, window_bounds = array<i64: 8, 8, 64>}, {transform_indices = @transform_1, window_bounds = array<i64: 2, 8, 128>}, {transform_indices = @transform_2, window_bounds = array<i64: 2, 8, 128>}, {pipeline_mode = #tpu.pipeline_mode<synchronous>, transform_indices = @transform_3, window_bounds = array<i64: 64, 512>}, {pipeline_mode = #tpu.pipeline_mode<synchronous>, transform_indices = @transform_4, window_bounds = array<i64: 1, 128, 512>}, {pipeline_mode = #tpu.pipeline_mode<synchronous>, transform_indices = @transform_5, window_bounds = array<i64: 2, 128, 512>}, {pipeline_mode = #tpu.pipeline_mode<synchronous>, transform_indices = @transform_6, window_bounds = array<i64: 2, 1, 512>}, {pipeline_mode = #tpu.pipeline_mode<synchronous>, transform_indices = @transform_7, window_bounds = array<i64: 128, 128>}, {pipeline_mode = #tpu.pipeline_mode<synchronous>, transform_indices = @transform_8, window_bounds = array<i64: 1, 128>}, {transform_indices = @transform_9, window_bounds = array<i64: 8, 128>}, {transform_indices = @transform_10, window_bounds = array<i64: 2, 8, 128>}, {transform_indices = @transform_11, window_bounds = array<i64: 2, 8, 128>}]} {
    %c0 = arith.constant 0 : index
    %c0_0 = arith.constant 0 : index
    %c0_1 = arith.constant 0 : index
    %0 = vector.load %arg1[%c0, %c0_0, %c0_1] : memref<8x8x64xf32, #tpu.memory_space<vmem>>, vector<8x8x64xf32>
    %1 = vector.shape_cast %0 : vector<8x8x64xf32> to vector<64x64xf32>
    %2 = arith.truncf %1 : vector<64x64xf32> to vector<64x64xbf16>
    %c0_2 = arith.constant 0 : index
    %c0_3 = arith.constant 0 : index
    %3 = vector.load %arg4[%c0_2, %c0_3] : memref<64x512xbf16, #tpu.memory_space<vmem>>, vector<64x512xbf16>
    %cst = arith.constant dense<0.000000e+00> : vector<64x512xf32>
    %4 = tpu.matmul %2, %3, %cst {dimension_numbers = #tpu.dot_dimension_numbers<[1], [0], [0], [1], [0, 0, 1, 1], [], []>} : vector<64x64xbf16>, vector<64x512xbf16>, vector<64x512xf32> -> vector<64x512xf32>
    %c0_4 = arith.constant 0 : index
    %c0_5 = arith.constant 0 : index
    %c0_6 = arith.constant 0 : index
    %5 = vector.load %arg7[%c0_4, %c0_5, %c0_6] : memref<2x1x512xf32, #tpu.memory_space<vmem>>, vector<1x1x512xf32>
    %6 = vector.shape_cast %5 : vector<1x1x512xf32> to vector<1x512xf32>
    %7 = vector.broadcast %6 : vector<1x512xf32> to vector<64x512xf32>
    %8 = arith.addf %4, %7 : vector<64x512xf32>
    %9 = vector.shape_cast %8 : vector<64x512xf32> to vector<8x8x512xf32>
    %c0_7 = arith.constant 0 : index
    %c0_8 = arith.constant 0 : index
    %c0_9 = arith.constant 0 : index
    %10 = vector.load %arg14[%c0_7, %c0_8, %c0_9] : memref<8x8x512xf32, #tpu.memory_space<vmem>>, vector<8x8x512xf32>
    tpu.vector_store %arg14[%c0_7, %c0_8, %c0_9], %9 {strides = array<i32>} : memref<8x8x512xf32, #tpu.memory_space<vmem>>, vector<8x8x512xf32>,
    %c0_10 = arith.constant 0 : index
    %c0_11 = arith.constant 0 : index
    %c0_12 = arith.constant 0 : index
    %11 = vector.load %arg2[%c0_10, %c0_11, %c0_12] : memref<2x8x128xf32, #tpu.memory_space<vmem>>, vector<1x8x128xf32>
    %12 = vector.shape_cast %11 : vector<1x8x128xf32> to vector<8x128xf32>
    %c0_13 = arith.constant 0 : index
    %c0_14 = arith.constant 0 : index
    %c0_15 = arith.constant 0 : index
    %13 = vector.load %arg3[%c0_13, %c0_14, %c0_15] : memref<2x8x128xf32, #tpu.memory_space<vmem>>, vector<1x8x128xf32>
    %14 = vector.shape_cast %13 : vector<1x8x128xf32> to vector<8x128xf32>
    %c0_16 = arith.constant 0 : index
    %c0_17 = arith.constant 0 : index
    %c0_18 = arith.constant 0 : index
    %15 = vector.load %arg6[%c0_16, %c0_17, %c0_18] : memref<2x128x512xbf16, #tpu.memory_space<vmem>>, vector<1x128x512xbf16>
    %16 = vector.shape_cast %15 : vector<1x128x512xbf16> to vector<128x512xbf16>
    %c0_19 = arith.constant 0 : index
    %c0_20 = arith.constant 0 : index
    %c0_21 = arith.constant 0 : index
    %17 = vector.load %arg14[%c0_19, %c0_20, %c0_21] : memref<8x8x512xf32, #tpu.memory_space<vmem>>, vector<1x8x512xf32>
    %18 = vector.shape_cast %17 : vector<1x8x512xf32> to vector<8x512xf32>
    %19 = arith.truncf %12 : vector<8x128xf32> to vector<8x128xbf16>
    %cst_22 = arith.constant dense<0.000000e+00> : vector<8x512xf32>
    %20 = tpu.matmul %19, %16, %cst_22 {dimension_numbers = #tpu.dot_dimension_numbers<[1], [0], [0], [1], [0, 0, 1, 1], [], []>} : vector<8x128xbf16>, vector<128x512xbf16>, vector<8x512xf32> -> vector<8x512xf32>
    %21 = arith.addf %18, %20 : vector<8x512xf32>
    %22 = vector.extract_strided_slice %21 {offsets = [0, 0], sizes = [8, 384], strides = [1, 1]} : vector<8x512xf32> to vector<8x384xf32>
    %23 = arith.negf %22 : vector<8x384xf32>
    %24 = math.exp %23 : vector<8x384xf32>
    %cst_23 = arith.constant 1.000000e+00 : f32
    %25 = vector.broadcast %cst_23 : f32 to vector<8x384xf32>
    %26 = arith.addf %25, %24 : vector<8x384xf32>
    %27 = arith.divf %25, %26 : vector<8x384xf32>
    %28 = vector.extract_strided_slice %27 {offsets = [0, 0], sizes = [8, 128], strides = [1, 1]} : vector<8x384xf32> to vector<8x128xf32>
    %29 = vector.extract_strided_slice %27 {offsets = [0, 128], sizes = [8, 128], strides = [1, 1]} : vector<8x384xf32> to vector<8x128xf32>
    %30 = vector.extract_strided_slice %27 {offsets = [0, 256], sizes = [8, 128], strides = [1, 1]} : vector<8x384xf32> to vector<8x128xf32>
    %31 = vector.extract_strided_slice %21 {offsets = [0, 384], sizes = [8, 128], strides = [1, 1]} : vector<8x512xf32> to vector<8x128xf32>
    %32 = math.tanh %31 : vector<8x128xf32>
    %33 = arith.mulf %29, %14 : vector<8x128xf32>
    %34 = arith.mulf %28, %32 : vector<8x128xf32>
    %35 = arith.addf %33, %34 : vector<8x128xf32>
    %36 = math.tanh %35 : vector<8x128xf32>
    %37 = arith.mulf %30, %36 : vector<8x128xf32>
    %c0_24 = arith.constant 0 : index
    %c0_25 = arith.constant 0 : index
    %c0_26 = arith.constant 0 : index
    %38 = vector.load %arg13[%c0_24, %c0_25, %c0_26] : memref<8x8x128xf32, #tpu.memory_space<vmem>>, vector<1x8x128xf32>
    %39 = vector.shape_cast %38 : vector<1x8x128xf32> to vector<8x128xf32>
    %40 = vector.shape_cast %37 : vector<8x128xf32> to vector<1x8x128xf32>
    tpu.vector_store %arg13[%c0_24, %c0_25, %c0_26], %40 {strides = array<i32>} : memref<8x8x128xf32, #tpu.memory_space<vmem>>, vector<1x8x128xf32>,
    %c1 = arith.constant 1 : index
    %c0_27 = arith.constant 0 : index
    %c0_28 = arith.constant 0 : index
    %41 = vector.load %arg14[%c1, %c0_27, %c0_28] : memref<8x8x512xf32, #tpu.memory_space<vmem>>, vector<1x8x512xf32>
    %42 = vector.shape_cast %41 : vector<1x8x512xf32> to vector<8x512xf32>
    %43 = arith.truncf %37 : vector<8x128xf32> to vector<8x128xbf16>
    %cst_29 = arith.constant dense<0.000000e+00> : vector<8x512xf32>
    %44 = tpu.matmul %43, %16, %cst_29 {dimension_numbers = #tpu.dot_dimension_numbers<[1], [0], [0], [1], [0, 0, 1, 1], [], []>} : vector<8x128xbf16>, vector<128x512xbf16>, vector<8x512xf32> -> vector<8x512xf32>
    %45 = arith.addf %42, %44 : vector<8x512xf32>
    %46 = vector.extract_strided_slice %45 {offsets = [0, 0], sizes = [8, 384], strides = [1, 1]} : vector<8x512xf32> to vector<8x384xf32>
    %47 = arith.negf %46 : vector<8x384xf32>
    %48 = math.exp %47 : vector<8x384xf32>
    %cst_30 = arith.constant 1.000000e+00 : f32
    %49 = vector.broadcast %cst_30 : f32 to vector<8x384xf32>
    %50 = arith.addf %49, %48 : vector<8x384xf32>
    %51 = arith.divf %49, %50 : vector<8x384xf32>
    %52 = vector.extract_strided_slice %51 {offsets = [0, 0], sizes = [8, 128], strides = [1, 1]} : vector<8x384xf32> to vector<8x128xf32>
    %53 = vector.extract_strided_slice %51 {offsets = [0, 128], sizes = [8, 128], strides = [1, 1]} : vector<8x384xf32> to vector<8x128xf32>
    %54 = vector.extract_strided_slice %51 {offsets = [0, 256], sizes = [8, 128], strides = [1, 1]} : vector<8x384xf32> to vector<8x128xf32>
    %55 = vector.extract_strided_slice %45 {offsets = [0, 384], sizes = [8, 128], strides = [1, 1]} : vector<8x512xf32> to vector<8x128xf32>
    %56 = math.tanh %55 : vector<8x128xf32>
    %57 = arith.mulf %53, %35 : vector<8x128xf32>
    %58 = arith.mulf %52, %56 : vector<8x128xf32>
    %59 = arith.addf %57, %58 : vector<8x128xf32>
    %60 = math.tanh %59 : vector<8x128xf32>
    %61 = arith.mulf %54, %60 : vector<8x128xf32>
    %c1_31 = arith.constant 1 : index
    %c0_32 = arith.constant 0 : index
    %c0_33 = arith.constant 0 : index
    %62 = vector.load %arg13[%c1_31, %c0_32, %c0_33] : memref<8x8x128xf32, #tpu.memory_space<vmem>>, vector<1x8x128xf32>
    %63 = vector.shape_cast %62 : vector<1x8x128xf32> to vector<8x128xf32>
    %64 = vector.shape_cast %61 : vector<8x128xf32> to vector<1x8x128xf32>
    tpu.vector_store %arg13[%c1_31, %c0_32, %c0_33], %64 {strides = array<i32>} : memref<8x8x128xf32, #tpu.memory_space<vmem>>, vector<1x8x128xf32>,
    %c2 = arith.constant 2 : index
    %c0_34 = arith.constant 0 : index
    %c0_35 = arith.constant 0 : index
    %65 = vector.load %arg14[%c2, %c0_34, %c0_35] : memref<8x8x512xf32, #tpu.memory_space<vmem>>, vector<1x8x512xf32>
    %66 = vector.shape_cast %65 : vector<1x8x512xf32> to vector<8x512xf32>
    %67 = arith.truncf %61 : vector<8x128xf32> to vector<8x128xbf16>
    %cst_36 = arith.constant dense<0.000000e+00> : vector<8x512xf32>
    %68 = tpu.matmul %67, %16, %cst_36 {dimension_numbers = #tpu.dot_dimension_numbers<[1], [0], [0], [1], [0, 0, 1, 1], [], []>} : vector<8x128xbf16>, vector<128x512xbf16>, vector<8x512xf32> -> vector<8x512xf32>
    %69 = arith.addf %66, %68 : vector<8x512xf32>
    %70 = vector.extract_strided_slice %69 {offsets = [0, 0], sizes = [8, 384], strides = [1, 1]} : vector<8x512xf32> to vector<8x384xf32>
    %71 = arith.negf %70 : vector<8x384xf32>
    %72 = math.exp %71 : vector<8x384xf32>
    %cst_37 = arith.constant 1.000000e+00 : f32
    %73 = vector.broadcast %cst_37 : f32 to vector<8x384xf32>
    %74 = arith.addf %73, %72 : vector<8x384xf32>
    %75 = arith.divf %73, %74 : vector<8x384xf32>
    %76 = vector.extract_strided_slice %75 {offsets = [0, 0], sizes = [8, 128], strides = [1, 1]} : vector<8x384xf32> to vector<8x128xf32>
    %77 = vector.extract_strided_slice %75 {offsets = [0, 128], sizes = [8, 128], strides = [1, 1]} : vector<8x384xf32> to vector<8x128xf32>
    %78 = vector.extract_strided_slice %75 {offsets = [0, 256], sizes = [8, 128], strides = [1, 1]} : vector<8x384xf32> to vector<8x128xf32>
    %79 = vector.extract_strided_slice %69 {offsets = [0, 384], sizes = [8, 128], strides = [1, 1]} : vector<8x512xf32> to vector<8x128xf32>
    %80 = math.tanh %79 : vector<8x128xf32>
    %81 = arith.mulf %77, %59 : vector<8x128xf32>
    %82 = arith.mulf %76, %80 : vector<8x128xf32>
    %83 = arith.addf %81, %82 : vector<8x128xf32>
    %84 = math.tanh %83 : vector<8x128xf32>
    %85 = arith.mulf %78, %84 : vector<8x128xf32>
    %c2_38 = arith.constant 2 : index
    %c0_39 = arith.constant 0 : index
    %c0_40 = arith.constant 0 : index
    %86 = vector.load %arg13[%c2_38, %c0_39, %c0_40] : memref<8x8x128xf32, #tpu.memory_space<vmem>>, vector<1x8x128xf32>
    %87 = vector.shape_cast %86 : vector<1x8x128xf32> to vector<8x128xf32>
    %88 = vector.shape_cast %85 : vector<8x128xf32> to vector<1x8x128xf32>
    tpu.vector_store %arg13[%c2_38, %c0_39, %c0_40], %88 {strides = array<i32>} : memref<8x8x128xf32, #tpu.memory_space<vmem>>, vector<1x8x128xf32>,
    %c3 = arith.constant 3 : index
    %c0_41 = arith.constant 0 : index
    %c0_42 = arith.constant 0 : index
    %89 = vector.load %arg14[%c3, %c0_41, %c0_42] : memref<8x8x512xf32, #tpu.memory_space<vmem>>, vector<1x8x512xf32>
    %90 = vector.shape_cast %89 : vector<1x8x512xf32> to vector<8x512xf32>
    %91 = arith.truncf %85 : vector<8x128xf32> to vector<8x128xbf16>
    %cst_43 = arith.constant dense<0.000000e+00> : vector<8x512xf32>
    %92 = tpu.matmul %91, %16, %cst_43 {dimension_numbers = #tpu.dot_dimension_numbers<[1], [0], [0], [1], [0, 0, 1, 1], [], []>} : vector<8x128xbf16>, vector<128x512xbf16>, vector<8x512xf32> -> vector<8x512xf32>
    %93 = arith.addf %90, %92 : vector<8x512xf32>
    %94 = vector.extract_strided_slice %93 {offsets = [0, 0], sizes = [8, 384], strides = [1, 1]} : vector<8x512xf32> to vector<8x384xf32>
    %95 = arith.negf %94 : vector<8x384xf32>
    %96 = math.exp %95 : vector<8x384xf32>
    %cst_44 = arith.constant 1.000000e+00 : f32
    %97 = vector.broadcast %cst_44 : f32 to vector<8x384xf32>
    %98 = arith.addf %97, %96 : vector<8x384xf32>
    %99 = arith.divf %97, %98 : vector<8x384xf32>
    %100 = vector.extract_strided_slice %99 {offsets = [0, 0], sizes = [8, 128], strides = [1, 1]} : vector<8x384xf32> to vector<8x128xf32>
    %101 = vector.extract_strided_slice %99 {offsets = [0, 128], sizes = [8, 128], strides = [1, 1]} : vector<8x384xf32> to vector<8x128xf32>
    %102 = vector.extract_strided_slice %99 {offsets = [0, 256], sizes = [8, 128], strides = [1, 1]} : vector<8x384xf32> to vector<8x128xf32>
    %103 = vector.extract_strided_slice %93 {offsets = [0, 384], sizes = [8, 128], strides = [1, 1]} : vector<8x512xf32> to vector<8x128xf32>
    %104 = math.tanh %103 : vector<8x128xf32>
    %105 = arith.mulf %101, %83 : vector<8x128xf32>
    %106 = arith.mulf %100, %104 : vector<8x128xf32>
    %107 = arith.addf %105, %106 : vector<8x128xf32>
    %108 = math.tanh %107 : vector<8x128xf32>
    %109 = arith.mulf %102, %108 : vector<8x128xf32>
    %c3_45 = arith.constant 3 : index
    %c0_46 = arith.constant 0 : index
    %c0_47 = arith.constant 0 : index
    %110 = vector.load %arg13[%c3_45, %c0_46, %c0_47] : memref<8x8x128xf32, #tpu.memory_space<vmem>>, vector<1x8x128xf32>
    %111 = vector.shape_cast %110 : vector<1x8x128xf32> to vector<8x128xf32>
    %112 = vector.shape_cast %109 : vector<8x128xf32> to vector<1x8x128xf32>
    tpu.vector_store %arg13[%c3_45, %c0_46, %c0_47], %112 {strides = array<i32>} : memref<8x8x128xf32, #tpu.memory_space<vmem>>, vector<1x8x128xf32>,
    %c4 = arith.constant 4 : index
    %c0_48 = arith.constant 0 : index
    %c0_49 = arith.constant 0 : index
    %113 = vector.load %arg14[%c4, %c0_48, %c0_49] : memref<8x8x512xf32, #tpu.memory_space<vmem>>, vector<1x8x512xf32>
    %114 = vector.shape_cast %113 : vector<1x8x512xf32> to vector<8x512xf32>
    %115 = arith.truncf %109 : vector<8x128xf32> to vector<8x128xbf16>
    %cst_50 = arith.constant dense<0.000000e+00> : vector<8x512xf32>
    %116 = tpu.matmul %115, %16, %cst_50 {dimension_numbers = #tpu.dot_dimension_numbers<[1], [0], [0], [1], [0, 0, 1, 1], [], []>} : vector<8x128xbf16>, vector<128x512xbf16>, vector<8x512xf32> -> vector<8x512xf32>
    %117 = arith.addf %114, %116 : vector<8x512xf32>
    %118 = vector.extract_strided_slice %117 {offsets = [0, 0], sizes = [8, 384], strides = [1, 1]} : vector<8x512xf32> to vector<8x384xf32>
    %119 = arith.negf %118 : vector<8x384xf32>
    %120 = math.exp %119 : vector<8x384xf32>
    %cst_51 = arith.constant 1.000000e+00 : f32
    %121 = vector.broadcast %cst_51 : f32 to vector<8x384xf32>
    %122 = arith.addf %121, %120 : vector<8x384xf32>
    %123 = arith.divf %121, %122 : vector<8x384xf32>
    %124 = vector.extract_strided_slice %123 {offsets = [0, 0], sizes = [8, 128], strides = [1, 1]} : vector<8x384xf32> to vector<8x128xf32>
    %125 = vector.extract_strided_slice %123 {offsets = [0, 128], sizes = [8, 128], strides = [1, 1]} : vector<8x384xf32> to vector<8x128xf32>
    %126 = vector.extract_strided_slice %123 {offsets = [0, 256], sizes = [8, 128], strides = [1, 1]} : vector<8x384xf32> to vector<8x128xf32>
    %127 = vector.extract_strided_slice %117 {offsets = [0, 384], sizes = [8, 128], strides = [1, 1]} : vector<8x512xf32> to vector<8x128xf32>
    %128 = math.tanh %127 : vector<8x128xf32>
    %129 = arith.mulf %125, %107 : vector<8x128xf32>
    %130 = arith.mulf %124, %128 : vector<8x128xf32>
    %131 = arith.addf %129, %130 : vector<8x128xf32>
    %132 = math.tanh %131 : vector<8x128xf32>
    %133 = arith.mulf %126, %132 : vector<8x128xf32>
    %c4_52 = arith.constant 4 : index
    %c0_53 = arith.constant 0 : index
    %c0_54 = arith.constant 0 : index
    %134 = vector.load %arg13[%c4_52, %c0_53, %c0_54] : memref<8x8x128xf32, #tpu.memory_space<vmem>>, vector<1x8x128xf32>
    %135 = vector.shape_cast %134 : vector<1x8x128xf32> to vector<8x128xf32>
    %136 = vector.shape_cast %133 : vector<8x128xf32> to vector<1x8x128xf32>
    tpu.vector_store %arg13[%c4_52, %c0_53, %c0_54], %136 {strides = array<i32>} : memref<8x8x128xf32, #tpu.memory_space<vmem>>, vector<1x8x128xf32>,
    %c5 = arith.constant 5 : index
    %c0_55 = arith.constant 0 : index
    %c0_56 = arith.constant 0 : index
    %137 = vector.load %arg14[%c5, %c0_55, %c0_56] : memref<8x8x512xf32, #tpu.memory_space<vmem>>, vector<1x8x512xf32>
    %138 = vector.shape_cast %137 : vector<1x8x512xf32> to vector<8x512xf32>
    %139 = arith.truncf %133 : vector<8x128xf32> to vector<8x128xbf16>
    %cst_57 = arith.constant dense<0.000000e+00> : vector<8x512xf32>
    %140 = tpu.matmul %139, %16, %cst_57 {dimension_numbers = #tpu.dot_dimension_numbers<[1], [0], [0], [1], [0, 0, 1, 1], [], []>} : vector<8x128xbf16>, vector<128x512xbf16>, vector<8x512xf32> -> vector<8x512xf32>
    %141 = arith.addf %138, %140 : vector<8x512xf32>
    %142 = vector.extract_strided_slice %141 {offsets = [0, 0], sizes = [8, 384], strides = [1, 1]} : vector<8x512xf32> to vector<8x384xf32>
    %143 = arith.negf %142 : vector<8x384xf32>
    %144 = math.exp %143 : vector<8x384xf32>
    %cst_58 = arith.constant 1.000000e+00 : f32
    %145 = vector.broadcast %cst_58 : f32 to vector<8x384xf32>
    %146 = arith.addf %145, %144 : vector<8x384xf32>
    %147 = arith.divf %145, %146 : vector<8x384xf32>
    %148 = vector.extract_strided_slice %147 {offsets = [0, 0], sizes = [8, 128], strides = [1, 1]} : vector<8x384xf32> to vector<8x128xf32>
    %149 = vector.extract_strided_slice %147 {offsets = [0, 128], sizes = [8, 128], strides = [1, 1]} : vector<8x384xf32> to vector<8x128xf32>
    %150 = vector.extract_strided_slice %147 {offsets = [0, 256], sizes = [8, 128], strides = [1, 1]} : vector<8x384xf32> to vector<8x128xf32>
    %151 = vector.extract_strided_slice %141 {offsets = [0, 384], sizes = [8, 128], strides = [1, 1]} : vector<8x512xf32> to vector<8x128xf32>
    %152 = math.tanh %151 : vector<8x128xf32>
    %153 = arith.mulf %149, %131 : vector<8x128xf32>
    %154 = arith.mulf %148, %152 : vector<8x128xf32>
    %155 = arith.addf %153, %154 : vector<8x128xf32>
    %156 = math.tanh %155 : vector<8x128xf32>
    %157 = arith.mulf %150, %156 : vector<8x128xf32>
    %c5_59 = arith.constant 5 : index
    %c0_60 = arith.constant 0 : index
    %c0_61 = arith.constant 0 : index
    %158 = vector.load %arg13[%c5_59, %c0_60, %c0_61] : memref<8x8x128xf32, #tpu.memory_space<vmem>>, vector<1x8x128xf32>
    %159 = vector.shape_cast %158 : vector<1x8x128xf32> to vector<8x128xf32>
    %160 = vector.shape_cast %157 : vector<8x128xf32> to vector<1x8x128xf32>
    tpu.vector_store %arg13[%c5_59, %c0_60, %c0_61], %160 {strides = array<i32>} : memref<8x8x128xf32, #tpu.memory_space<vmem>>, vector<1x8x128xf32>,
    %c6 = arith.constant 6 : index
    %c0_62 = arith.constant 0 : index
    %c0_63 = arith.constant 0 : index
    %161 = vector.load %arg14[%c6, %c0_62, %c0_63] : memref<8x8x512xf32, #tpu.memory_space<vmem>>, vector<1x8x512xf32>
    %162 = vector.shape_cast %161 : vector<1x8x512xf32> to vector<8x512xf32>
    %163 = arith.truncf %157 : vector<8x128xf32> to vector<8x128xbf16>
    %cst_64 = arith.constant dense<0.000000e+00> : vector<8x512xf32>
    %164 = tpu.matmul %163, %16, %cst_64 {dimension_numbers = #tpu.dot_dimension_numbers<[1], [0], [0], [1], [0, 0, 1, 1], [], []>} : vector<8x128xbf16>, vector<128x512xbf16>, vector<8x512xf32> -> vector<8x512xf32>
    %165 = arith.addf %162, %164 : vector<8x512xf32>
    %166 = vector.extract_strided_slice %165 {offsets = [0, 0], sizes = [8, 384], strides = [1, 1]} : vector<8x512xf32> to vector<8x384xf32>
    %167 = arith.negf %166 : vector<8x384xf32>
    %168 = math.exp %167 : vector<8x384xf32>
    %cst_65 = arith.constant 1.000000e+00 : f32
    %169 = vector.broadcast %cst_65 : f32 to vector<8x384xf32>
    %170 = arith.addf %169, %168 : vector<8x384xf32>
    %171 = arith.divf %169, %170 : vector<8x384xf32>
    %172 = vector.extract_strided_slice %171 {offsets = [0, 0], sizes = [8, 128], strides = [1, 1]} : vector<8x384xf32> to vector<8x128xf32>
    %173 = vector.extract_strided_slice %171 {offsets = [0, 128], sizes = [8, 128], strides = [1, 1]} : vector<8x384xf32> to vector<8x128xf32>
    %174 = vector.extract_strided_slice %171 {offsets = [0, 256], sizes = [8, 128], strides = [1, 1]} : vector<8x384xf32> to vector<8x128xf32>
    %175 = vector.extract_strided_slice %165 {offsets = [0, 384], sizes = [8, 128], strides = [1, 1]} : vector<8x512xf32> to vector<8x128xf32>
    %176 = math.tanh %175 : vector<8x128xf32>
    %177 = arith.mulf %173, %155 : vector<8x128xf32>
    %178 = arith.mulf %172, %176 : vector<8x128xf32>
    %179 = arith.addf %177, %178 : vector<8x128xf32>
    %180 = math.tanh %179 : vector<8x128xf32>
    %181 = arith.mulf %174, %180 : vector<8x128xf32>
    %c6_66 = arith.constant 6 : index
    %c0_67 = arith.constant 0 : index
    %c0_68 = arith.constant 0 : index
    %182 = vector.load %arg13[%c6_66, %c0_67, %c0_68] : memref<8x8x128xf32, #tpu.memory_space<vmem>>, vector<1x8x128xf32>
    %183 = vector.shape_cast %182 : vector<1x8x128xf32> to vector<8x128xf32>
    %184 = vector.shape_cast %181 : vector<8x128xf32> to vector<1x8x128xf32>
    tpu.vector_store %arg13[%c6_66, %c0_67, %c0_68], %184 {strides = array<i32>} : memref<8x8x128xf32, #tpu.memory_space<vmem>>, vector<1x8x128xf32>,
    %c7 = arith.constant 7 : index
    %c0_69 = arith.constant 0 : index
    %c0_70 = arith.constant 0 : index
    %185 = vector.load %arg14[%c7, %c0_69, %c0_70] : memref<8x8x512xf32, #tpu.memory_space<vmem>>, vector<1x8x512xf32>
    %186 = vector.shape_cast %185 : vector<1x8x512xf32> to vector<8x512xf32>
    %187 = arith.truncf %181 : vector<8x128xf32> to vector<8x128xbf16>
    %cst_71 = arith.constant dense<0.000000e+00> : vector<8x512xf32>
    %188 = tpu.matmul %187, %16, %cst_71 {dimension_numbers = #tpu.dot_dimension_numbers<[1], [0], [0], [1], [0, 0, 1, 1], [], []>} : vector<8x128xbf16>, vector<128x512xbf16>, vector<8x512xf32> -> vector<8x512xf32>
    %189 = arith.addf %186, %188 : vector<8x512xf32>
    %190 = vector.extract_strided_slice %189 {offsets = [0, 0], sizes = [8, 384], strides = [1, 1]} : vector<8x512xf32> to vector<8x384xf32>
    %191 = arith.negf %190 : vector<8x384xf32>
    %192 = math.exp %191 : vector<8x384xf32>
    %cst_72 = arith.constant 1.000000e+00 : f32
    %193 = vector.broadcast %cst_72 : f32 to vector<8x384xf32>
    %194 = arith.addf %193, %192 : vector<8x384xf32>
    %195 = arith.divf %193, %194 : vector<8x384xf32>
    %196 = vector.extract_strided_slice %195 {offsets = [0, 0], sizes = [8, 128], strides = [1, 1]} : vector<8x384xf32> to vector<8x128xf32>
    %197 = vector.extract_strided_slice %195 {offsets = [0, 128], sizes = [8, 128], strides = [1, 1]} : vector<8x384xf32> to vector<8x128xf32>
    %198 = vector.extract_strided_slice %195 {offsets = [0, 256], sizes = [8, 128], strides = [1, 1]} : vector<8x384xf32> to vector<8x128xf32>
    %199 = vector.extract_strided_slice %189 {offsets = [0, 384], sizes = [8, 128], strides = [1, 1]} : vector<8x512xf32> to vector<8x128xf32>
    %200 = math.tanh %199 : vector<8x128xf32>
    %201 = arith.mulf %197, %179 : vector<8x128xf32>
    %202 = arith.mulf %196, %200 : vector<8x128xf32>
    %203 = arith.addf %201, %202 : vector<8x128xf32>
    %204 = math.tanh %203 : vector<8x128xf32>
    %205 = arith.mulf %198, %204 : vector<8x128xf32>
    %c7_73 = arith.constant 7 : index
    %c0_74 = arith.constant 0 : index
    %c0_75 = arith.constant 0 : index
    %206 = vector.load %arg13[%c7_73, %c0_74, %c0_75] : memref<8x8x128xf32, #tpu.memory_space<vmem>>, vector<1x8x128xf32>
    %207 = vector.shape_cast %206 : vector<1x8x128xf32> to vector<8x128xf32>
    %208 = vector.shape_cast %205 : vector<8x128xf32> to vector<1x8x128xf32>
    tpu.vector_store %arg13[%c7_73, %c0_74, %c0_75], %208 {strides = array<i32>} : memref<8x8x128xf32, #tpu.memory_space<vmem>>, vector<1x8x128xf32>,
    %c0_76 = arith.constant 0 : index
    %c0_77 = arith.constant 0 : index
    %c0_78 = arith.constant 0 : index
    %209 = vector.load %arg11[%c0_76, %c0_77, %c0_78] : memref<2x8x128xf32, #tpu.memory_space<vmem>>, vector<1x8x128xf32>
    %210 = vector.shape_cast %209 : vector<1x8x128xf32> to vector<8x128xf32>
    %211 = vector.shape_cast %205 : vector<8x128xf32> to vector<1x8x128xf32>
    tpu.vector_store %arg11[%c0_76, %c0_77, %c0_78], %211 {strides = array<i32>} : memref<2x8x128xf32, #tpu.memory_space<vmem>>, vector<1x8x128xf32>,
    %c0_79 = arith.constant 0 : index
    %c0_80 = arith.constant 0 : index
    %c0_81 = arith.constant 0 : index
    %212 = vector.load %arg12[%c0_79, %c0_80, %c0_81] : memref<2x8x128xf32, #tpu.memory_space<vmem>>, vector<1x8x128xf32>
    %213 = vector.shape_cast %212 : vector<1x8x128xf32> to vector<8x128xf32>
    %214 = vector.shape_cast %203 : vector<8x128xf32> to vector<1x8x128xf32>
    tpu.vector_store %arg12[%c0_79, %c0_80, %c0_81], %214 {strides = array<i32>} : memref<2x8x128xf32, #tpu.memory_space<vmem>>, vector<1x8x128xf32>,
    %c0_82 = arith.constant 0 : index
    %c0_83 = arith.constant 0 : index
    %c0_84 = arith.constant 0 : index
    %215 = vector.load %arg13[%c0_82, %c0_83, %c0_84] : memref<8x8x128xf32, #tpu.memory_space<vmem>>, vector<8x8x128xf32>
    %216 = vector.shape_cast %215 : vector<8x8x128xf32> to vector<64x128xf32>
    %217 = arith.truncf %216 : vector<64x128xf32> to vector<64x128xbf16>
    %c0_85 = arith.constant 0 : index
    %c0_86 = arith.constant 0 : index
    %c0_87 = arith.constant 0 : index
    %218 = vector.load %arg5[%c0_85, %c0_86, %c0_87] : memref<1x128x512xbf16, #tpu.memory_space<vmem>>, vector<1x128x512xbf16>
    %219 = vector.shape_cast %218 : vector<1x128x512xbf16> to vector<128x512xbf16>
    %cst_88 = arith.constant dense<0.000000e+00> : vector<64x512xf32>
    %220 = tpu.matmul %217, %219, %cst_88 {dimension_numbers = #tpu.dot_dimension_numbers<[1], [0], [0], [1], [0, 0, 1, 1], [], []>} : vector<64x128xbf16>, vector<128x512xbf16>, vector<64x512xf32> -> vector<64x512xf32>
    %c1_89 = arith.constant 1 : index
    %c0_90 = arith.constant 0 : index
    %c0_91 = arith.constant 0 : index
    %221 = vector.load %arg7[%c1_89, %c0_90, %c0_91] : memref<2x1x512xf32, #tpu.memory_space<vmem>>, vector<1x1x512xf32>
    %222 = vector.shape_cast %221 : vector<1x1x512xf32> to vector<1x512xf32>
    %223 = vector.broadcast %222 : vector<1x512xf32> to vector<64x512xf32>
    %224 = arith.addf %220, %223 : vector<64x512xf32>
    %225 = vector.shape_cast %224 : vector<64x512xf32> to vector<8x8x512xf32>
    %c0_92 = arith.constant 0 : index
    %c0_93 = arith.constant 0 : index
    %c0_94 = arith.constant 0 : index
    %226 = vector.load %arg14[%c0_92, %c0_93, %c0_94] : memref<8x8x512xf32, #tpu.memory_space<vmem>>, vector<8x8x512xf32>
    tpu.vector_store %arg14[%c0_92, %c0_93, %c0_94], %225 {strides = array<i32>} : memref<8x8x512xf32, #tpu.memory_space<vmem>>, vector<8x8x512xf32>,
    %c1_95 = arith.constant 1 : index
    %c0_96 = arith.constant 0 : index
    %c0_97 = arith.constant 0 : index
    %227 = vector.load %arg2[%c1_95, %c0_96, %c0_97] : memref<2x8x128xf32, #tpu.memory_space<vmem>>, vector<1x8x128xf32>
    %228 = vector.shape_cast %227 : vector<1x8x128xf32> to vector<8x128xf32>
    %c1_98 = arith.constant 1 : index
    %c0_99 = arith.constant 0 : index
    %c0_100 = arith.constant 0 : index
    %229 = vector.load %arg3[%c1_98, %c0_99, %c0_100] : memref<2x8x128xf32, #tpu.memory_space<vmem>>, vector<1x8x128xf32>
    %230 = vector.shape_cast %229 : vector<1x8x128xf32> to vector<8x128xf32>
    %c1_101 = arith.constant 1 : index
    %c0_102 = arith.constant 0 : index
    %c0_103 = arith.constant 0 : index
    %231 = vector.load %arg6[%c1_101, %c0_102, %c0_103] : memref<2x128x512xbf16, #tpu.memory_space<vmem>>, vector<1x128x512xbf16>
    %232 = vector.shape_cast %231 : vector<1x128x512xbf16> to vector<128x512xbf16>
    %c0_104 = arith.constant 0 : index
    %c0_105 = arith.constant 0 : index
    %c0_106 = arith.constant 0 : index
    %233 = vector.load %arg14[%c0_104, %c0_105, %c0_106] : memref<8x8x512xf32, #tpu.memory_space<vmem>>, vector<1x8x512xf32>
    %234 = vector.shape_cast %233 : vector<1x8x512xf32> to vector<8x512xf32>
    %235 = arith.truncf %228 : vector<8x128xf32> to vector<8x128xbf16>
    %cst_107 = arith.constant dense<0.000000e+00> : vector<8x512xf32>
    %236 = tpu.matmul %235, %232, %cst_107 {dimension_numbers = #tpu.dot_dimension_numbers<[1], [0], [0], [1], [0, 0, 1, 1], [], []>} : vector<8x128xbf16>, vector<128x512xbf16>, vector<8x512xf32> -> vector<8x512xf32>
    %237 = arith.addf %234, %236 : vector<8x512xf32>
    %238 = vector.extract_strided_slice %237 {offsets = [0, 0], sizes = [8, 384], strides = [1, 1]} : vector<8x512xf32> to vector<8x384xf32>
    %239 = arith.negf %238 : vector<8x384xf32>
    %240 = math.exp %239 : vector<8x384xf32>
    %cst_108 = arith.constant 1.000000e+00 : f32
    %241 = vector.broadcast %cst_108 : f32 to vector<8x384xf32>
    %242 = arith.addf %241, %240 : vector<8x384xf32>
    %243 = arith.divf %241, %242 : vector<8x384xf32>
    %244 = vector.extract_strided_slice %243 {offsets = [0, 0], sizes = [8, 128], strides = [1, 1]} : vector<8x384xf32> to vector<8x128xf32>
    %245 = vector.extract_strided_slice %243 {offsets = [0, 128], sizes = [8, 128], strides = [1, 1]} : vector<8x384xf32> to vector<8x128xf32>
    %246 = vector.extract_strided_slice %243 {offsets = [0, 256], sizes = [8, 128], strides = [1, 1]} : vector<8x384xf32> to vector<8x128xf32>
    %247 = vector.extract_strided_slice %237 {offsets = [0, 384], sizes = [8, 128], strides = [1, 1]} : vector<8x512xf32> to vector<8x128xf32>
    %248 = math.tanh %247 : vector<8x128xf32>
    %249 = arith.mulf %245, %230 : vector<8x128xf32>
    %250 = arith.mulf %244, %248 : vector<8x128xf32>
    %251 = arith.addf %249, %250 : vector<8x128xf32>
    %252 = math.tanh %251 : vector<8x128xf32>
    %253 = arith.mulf %246, %252 : vector<8x128xf32>
    %c1_109 = arith.constant 1 : index
    %c0_110 = arith.constant 0 : index
    %c0_111 = arith.constant 0 : index
    %254 = vector.load %arg14[%c1_109, %c0_110, %c0_111] : memref<8x8x512xf32, #tpu.memory_space<vmem>>, vector<1x8x512xf32>
    %255 = vector.shape_cast %254 : vector<1x8x512xf32> to vector<8x512xf32>
    %256 = arith.truncf %253 : vector<8x128xf32> to vector<8x128xbf16>
    %cst_112 = arith.constant dense<0.000000e+00> : vector<8x512xf32>
    %257 = tpu.matmul %256, %232, %cst_112 {dimension_numbers = #tpu.dot_dimension_numbers<[1], [0], [0], [1], [0, 0, 1, 1], [], []>} : vector<8x128xbf16>, vector<128x512xbf16>, vector<8x512xf32> -> vector<8x512xf32>
    %258 = arith.addf %255, %257 : vector<8x512xf32>
    %259 = vector.extract_strided_slice %258 {offsets = [0, 0], sizes = [8, 384], strides = [1, 1]} : vector<8x512xf32> to vector<8x384xf32>
    %260 = arith.negf %259 : vector<8x384xf32>
    %261 = math.exp %260 : vector<8x384xf32>
    %cst_113 = arith.constant 1.000000e+00 : f32
    %262 = vector.broadcast %cst_113 : f32 to vector<8x384xf32>
    %263 = arith.addf %262, %261 : vector<8x384xf32>
    %264 = arith.divf %262, %263 : vector<8x384xf32>
    %265 = vector.extract_strided_slice %264 {offsets = [0, 0], sizes = [8, 128], strides = [1, 1]} : vector<8x384xf32> to vector<8x128xf32>
    %266 = vector.extract_strided_slice %264 {offsets = [0, 128], sizes = [8, 128], strides = [1, 1]} : vector<8x384xf32> to vector<8x128xf32>
    %267 = vector.extract_strided_slice %264 {offsets = [0, 256], sizes = [8, 128], strides = [1, 1]} : vector<8x384xf32> to vector<8x128xf32>
    %268 = vector.extract_strided_slice %258 {offsets = [0, 384], sizes = [8, 128], strides = [1, 1]} : vector<8x512xf32> to vector<8x128xf32>
    %269 = math.tanh %268 : vector<8x128xf32>
    %270 = arith.mulf %266, %251 : vector<8x128xf32>
    %271 = arith.mulf %265, %269 : vector<8x128xf32>
    %272 = arith.addf %270, %271 : vector<8x128xf32>
    %273 = math.tanh %272 : vector<8x128xf32>
    %274 = arith.mulf %267, %273 : vector<8x128xf32>
    %c2_114 = arith.constant 2 : index
    %c0_115 = arith.constant 0 : index
    %c0_116 = arith.constant 0 : index
    %275 = vector.load %arg14[%c2_114, %c0_115, %c0_116] : memref<8x8x512xf32, #tpu.memory_space<vmem>>, vector<1x8x512xf32>
    %276 = vector.shape_cast %275 : vector<1x8x512xf32> to vector<8x512xf32>
    %277 = arith.truncf %274 : vector<8x128xf32> to vector<8x128xbf16>
    %cst_117 = arith.constant dense<0.000000e+00> : vector<8x512xf32>
    %278 = tpu.matmul %277, %232, %cst_117 {dimension_numbers = #tpu.dot_dimension_numbers<[1], [0], [0], [1], [0, 0, 1, 1], [], []>} : vector<8x128xbf16>, vector<128x512xbf16>, vector<8x512xf32> -> vector<8x512xf32>
    %279 = arith.addf %276, %278 : vector<8x512xf32>
    %280 = vector.extract_strided_slice %279 {offsets = [0, 0], sizes = [8, 384], strides = [1, 1]} : vector<8x512xf32> to vector<8x384xf32>
    %281 = arith.negf %280 : vector<8x384xf32>
    %282 = math.exp %281 : vector<8x384xf32>
    %cst_118 = arith.constant 1.000000e+00 : f32
    %283 = vector.broadcast %cst_118 : f32 to vector<8x384xf32>
    %284 = arith.addf %283, %282 : vector<8x384xf32>
    %285 = arith.divf %283, %284 : vector<8x384xf32>
    %286 = vector.extract_strided_slice %285 {offsets = [0, 0], sizes = [8, 128], strides = [1, 1]} : vector<8x384xf32> to vector<8x128xf32>
    %287 = vector.extract_strided_slice %285 {offsets = [0, 128], sizes = [8, 128], strides = [1, 1]} : vector<8x384xf32> to vector<8x128xf32>
    %288 = vector.extract_strided_slice %285 {offsets = [0, 256], sizes = [8, 128], strides = [1, 1]} : vector<8x384xf32> to vector<8x128xf32>
    %289 = vector.extract_strided_slice %279 {offsets = [0, 384], sizes = [8, 128], strides = [1, 1]} : vector<8x512xf32> to vector<8x128xf32>
    %290 = math.tanh %289 : vector<8x128xf32>
    %291 = arith.mulf %287, %272 : vector<8x128xf32>
    %292 = arith.mulf %286, %290 : vector<8x128xf32>
    %293 = arith.addf %291, %292 : vector<8x128xf32>
    %294 = math.tanh %293 : vector<8x128xf32>
    %295 = arith.mulf %288, %294 : vector<8x128xf32>
    %c3_119 = arith.constant 3 : index
    %c0_120 = arith.constant 0 : index
    %c0_121 = arith.constant 0 : index
    %296 = vector.load %arg14[%c3_119, %c0_120, %c0_121] : memref<8x8x512xf32, #tpu.memory_space<vmem>>, vector<1x8x512xf32>
    %297 = vector.shape_cast %296 : vector<1x8x512xf32> to vector<8x512xf32>
    %298 = arith.truncf %295 : vector<8x128xf32> to vector<8x128xbf16>
    %cst_122 = arith.constant dense<0.000000e+00> : vector<8x512xf32>
    %299 = tpu.matmul %298, %232, %cst_122 {dimension_numbers = #tpu.dot_dimension_numbers<[1], [0], [0], [1], [0, 0, 1, 1], [], []>} : vector<8x128xbf16>, vector<128x512xbf16>, vector<8x512xf32> -> vector<8x512xf32>
    %300 = arith.addf %297, %299 : vector<8x512xf32>
    %301 = vector.extract_strided_slice %300 {offsets = [0, 0], sizes = [8, 384], strides = [1, 1]} : vector<8x512xf32> to vector<8x384xf32>
    %302 = arith.negf %301 : vector<8x384xf32>
    %303 = math.exp %302 : vector<8x384xf32>
    %cst_123 = arith.constant 1.000000e+00 : f32
    %304 = vector.broadcast %cst_123 : f32 to vector<8x384xf32>
    %305 = arith.addf %304, %303 : vector<8x384xf32>
    %306 = arith.divf %304, %305 : vector<8x384xf32>
    %307 = vector.extract_strided_slice %306 {offsets = [0, 0], sizes = [8, 128], strides = [1, 1]} : vector<8x384xf32> to vector<8x128xf32>
    %308 = vector.extract_strided_slice %306 {offsets = [0, 128], sizes = [8, 128], strides = [1, 1]} : vector<8x384xf32> to vector<8x128xf32>
    %309 = vector.extract_strided_slice %306 {offsets = [0, 256], sizes = [8, 128], strides = [1, 1]} : vector<8x384xf32> to vector<8x128xf32>
    %310 = vector.extract_strided_slice %300 {offsets = [0, 384], sizes = [8, 128], strides = [1, 1]} : vector<8x512xf32> to vector<8x128xf32>
    %311 = math.tanh %310 : vector<8x128xf32>
    %312 = arith.mulf %308, %293 : vector<8x128xf32>
    %313 = arith.mulf %307, %311 : vector<8x128xf32>
    %314 = arith.addf %312, %313 : vector<8x128xf32>
    %315 = math.tanh %314 : vector<8x128xf32>
    %316 = arith.mulf %309, %315 : vector<8x128xf32>
    %c4_124 = arith.constant 4 : index
    %c0_125 = arith.constant 0 : index
    %c0_126 = arith.constant 0 : index
    %317 = vector.load %arg14[%c4_124, %c0_125, %c0_126] : memref<8x8x512xf32, #tpu.memory_space<vmem>>, vector<1x8x512xf32>
    %318 = vector.shape_cast %317 : vector<1x8x512xf32> to vector<8x512xf32>
    %319 = arith.truncf %316 : vector<8x128xf32> to vector<8x128xbf16>
    %cst_127 = arith.constant dense<0.000000e+00> : vector<8x512xf32>
    %320 = tpu.matmul %319, %232, %cst_127 {dimension_numbers = #tpu.dot_dimension_numbers<[1], [0], [0], [1], [0, 0, 1, 1], [], []>} : vector<8x128xbf16>, vector<128x512xbf16>, vector<8x512xf32> -> vector<8x512xf32>
    %321 = arith.addf %318, %320 : vector<8x512xf32>
    %322 = vector.extract_strided_slice %321 {offsets = [0, 0], sizes = [8, 384], strides = [1, 1]} : vector<8x512xf32> to vector<8x384xf32>
    %323 = arith.negf %322 : vector<8x384xf32>
    %324 = math.exp %323 : vector<8x384xf32>
    %cst_128 = arith.constant 1.000000e+00 : f32
    %325 = vector.broadcast %cst_128 : f32 to vector<8x384xf32>
    %326 = arith.addf %325, %324 : vector<8x384xf32>
    %327 = arith.divf %325, %326 : vector<8x384xf32>
    %328 = vector.extract_strided_slice %327 {offsets = [0, 0], sizes = [8, 128], strides = [1, 1]} : vector<8x384xf32> to vector<8x128xf32>
    %329 = vector.extract_strided_slice %327 {offsets = [0, 128], sizes = [8, 128], strides = [1, 1]} : vector<8x384xf32> to vector<8x128xf32>
    %330 = vector.extract_strided_slice %327 {offsets = [0, 256], sizes = [8, 128], strides = [1, 1]} : vector<8x384xf32> to vector<8x128xf32>
    %331 = vector.extract_strided_slice %321 {offsets = [0, 384], sizes = [8, 128], strides = [1, 1]} : vector<8x512xf32> to vector<8x128xf32>
    %332 = math.tanh %331 : vector<8x128xf32>
    %333 = arith.mulf %329, %314 : vector<8x128xf32>
    %334 = arith.mulf %328, %332 : vector<8x128xf32>
    %335 = arith.addf %333, %334 : vector<8x128xf32>
    %336 = math.tanh %335 : vector<8x128xf32>
    %337 = arith.mulf %330, %336 : vector<8x128xf32>
    %c5_129 = arith.constant 5 : index
    %c0_130 = arith.constant 0 : index
    %c0_131 = arith.constant 0 : index
    %338 = vector.load %arg14[%c5_129, %c0_130, %c0_131] : memref<8x8x512xf32, #tpu.memory_space<vmem>>, vector<1x8x512xf32>
    %339 = vector.shape_cast %338 : vector<1x8x512xf32> to vector<8x512xf32>
    %340 = arith.truncf %337 : vector<8x128xf32> to vector<8x128xbf16>
    %cst_132 = arith.constant dense<0.000000e+00> : vector<8x512xf32>
    %341 = tpu.matmul %340, %232, %cst_132 {dimension_numbers = #tpu.dot_dimension_numbers<[1], [0], [0], [1], [0, 0, 1, 1], [], []>} : vector<8x128xbf16>, vector<128x512xbf16>, vector<8x512xf32> -> vector<8x512xf32>
    %342 = arith.addf %339, %341 : vector<8x512xf32>
    %343 = vector.extract_strided_slice %342 {offsets = [0, 0], sizes = [8, 384], strides = [1, 1]} : vector<8x512xf32> to vector<8x384xf32>
    %344 = arith.negf %343 : vector<8x384xf32>
    %345 = math.exp %344 : vector<8x384xf32>
    %cst_133 = arith.constant 1.000000e+00 : f32
    %346 = vector.broadcast %cst_133 : f32 to vector<8x384xf32>
    %347 = arith.addf %346, %345 : vector<8x384xf32>
    %348 = arith.divf %346, %347 : vector<8x384xf32>
    %349 = vector.extract_strided_slice %348 {offsets = [0, 0], sizes = [8, 128], strides = [1, 1]} : vector<8x384xf32> to vector<8x128xf32>
    %350 = vector.extract_strided_slice %348 {offsets = [0, 128], sizes = [8, 128], strides = [1, 1]} : vector<8x384xf32> to vector<8x128xf32>
    %351 = vector.extract_strided_slice %348 {offsets = [0, 256], sizes = [8, 128], strides = [1, 1]} : vector<8x384xf32> to vector<8x128xf32>
    %352 = vector.extract_strided_slice %342 {offsets = [0, 384], sizes = [8, 128], strides = [1, 1]} : vector<8x512xf32> to vector<8x128xf32>
    %353 = math.tanh %352 : vector<8x128xf32>
    %354 = arith.mulf %350, %335 : vector<8x128xf32>
    %355 = arith.mulf %349, %353 : vector<8x128xf32>
    %356 = arith.addf %354, %355 : vector<8x128xf32>
    %357 = math.tanh %356 : vector<8x128xf32>
    %358 = arith.mulf %351, %357 : vector<8x128xf32>
    %c6_134 = arith.constant 6 : index
    %c0_135 = arith.constant 0 : index
    %c0_136 = arith.constant 0 : index
    %359 = vector.load %arg14[%c6_134, %c0_135, %c0_136] : memref<8x8x512xf32, #tpu.memory_space<vmem>>, vector<1x8x512xf32>
    %360 = vector.shape_cast %359 : vector<1x8x512xf32> to vector<8x512xf32>
    %361 = arith.truncf %358 : vector<8x128xf32> to vector<8x128xbf16>
    %cst_137 = arith.constant dense<0.000000e+00> : vector<8x512xf32>
    %362 = tpu.matmul %361, %232, %cst_137 {dimension_numbers = #tpu.dot_dimension_numbers<[1], [0], [0], [1], [0, 0, 1, 1], [], []>} : vector<8x128xbf16>, vector<128x512xbf16>, vector<8x512xf32> -> vector<8x512xf32>
    %363 = arith.addf %360, %362 : vector<8x512xf32>
    %364 = vector.extract_strided_slice %363 {offsets = [0, 0], sizes = [8, 384], strides = [1, 1]} : vector<8x512xf32> to vector<8x384xf32>
    %365 = arith.negf %364 : vector<8x384xf32>
    %366 = math.exp %365 : vector<8x384xf32>
    %cst_138 = arith.constant 1.000000e+00 : f32
    %367 = vector.broadcast %cst_138 : f32 to vector<8x384xf32>
    %368 = arith.addf %367, %366 : vector<8x384xf32>
    %369 = arith.divf %367, %368 : vector<8x384xf32>
    %370 = vector.extract_strided_slice %369 {offsets = [0, 0], sizes = [8, 128], strides = [1, 1]} : vector<8x384xf32> to vector<8x128xf32>
    %371 = vector.extract_strided_slice %369 {offsets = [0, 128], sizes = [8, 128], strides = [1, 1]} : vector<8x384xf32> to vector<8x128xf32>
    %372 = vector.extract_strided_slice %369 {offsets = [0, 256], sizes = [8, 128], strides = [1, 1]} : vector<8x384xf32> to vector<8x128xf32>
    %373 = vector.extract_strided_slice %363 {offsets = [0, 384], sizes = [8, 128], strides = [1, 1]} : vector<8x512xf32> to vector<8x128xf32>
    %374 = math.tanh %373 : vector<8x128xf32>
    %375 = arith.mulf %371, %356 : vector<8x128xf32>
    %376 = arith.mulf %370, %374 : vector<8x128xf32>
    %377 = arith.addf %375, %376 : vector<8x128xf32>
    %378 = math.tanh %377 : vector<8x128xf32>
    %379 = arith.mulf %372, %378 : vector<8x128xf32>
    %c7_139 = arith.constant 7 : index
    %c0_140 = arith.constant 0 : index
    %c0_141 = arith.constant 0 : index
    %380 = vector.load %arg14[%c7_139, %c0_140, %c0_141] : memref<8x8x512xf32, #tpu.memory_space<vmem>>, vector<1x8x512xf32>
    %381 = vector.shape_cast %380 : vector<1x8x512xf32> to vector<8x512xf32>
    %382 = arith.truncf %379 : vector<8x128xf32> to vector<8x128xbf16>
    %cst_142 = arith.constant dense<0.000000e+00> : vector<8x512xf32>
    %383 = tpu.matmul %382, %232, %cst_142 {dimension_numbers = #tpu.dot_dimension_numbers<[1], [0], [0], [1], [0, 0, 1, 1], [], []>} : vector<8x128xbf16>, vector<128x512xbf16>, vector<8x512xf32> -> vector<8x512xf32>
    %384 = arith.addf %381, %383 : vector<8x512xf32>
    %385 = vector.extract_strided_slice %384 {offsets = [0, 0], sizes = [8, 384], strides = [1, 1]} : vector<8x512xf32> to vector<8x384xf32>
    %386 = arith.negf %385 : vector<8x384xf32>
    %387 = math.exp %386 : vector<8x384xf32>
    %cst_143 = arith.constant 1.000000e+00 : f32
    %388 = vector.broadcast %cst_143 : f32 to vector<8x384xf32>
    %389 = arith.addf %388, %387 : vector<8x384xf32>
    %390 = arith.divf %388, %389 : vector<8x384xf32>
    %391 = vector.extract_strided_slice %390 {offsets = [0, 0], sizes = [8, 128], strides = [1, 1]} : vector<8x384xf32> to vector<8x128xf32>
    %392 = vector.extract_strided_slice %390 {offsets = [0, 128], sizes = [8, 128], strides = [1, 1]} : vector<8x384xf32> to vector<8x128xf32>
    %393 = vector.extract_strided_slice %390 {offsets = [0, 256], sizes = [8, 128], strides = [1, 1]} : vector<8x384xf32> to vector<8x128xf32>
    %394 = vector.extract_strided_slice %384 {offsets = [0, 384], sizes = [8, 128], strides = [1, 1]} : vector<8x512xf32> to vector<8x128xf32>
    %395 = math.tanh %394 : vector<8x128xf32>
    %396 = arith.mulf %392, %377 : vector<8x128xf32>
    %397 = arith.mulf %391, %395 : vector<8x128xf32>
    %398 = arith.addf %396, %397 : vector<8x128xf32>
    %399 = math.tanh %398 : vector<8x128xf32>
    %400 = arith.mulf %393, %399 : vector<8x128xf32>
    %c1_144 = arith.constant 1 : index
    %c0_145 = arith.constant 0 : index
    %c0_146 = arith.constant 0 : index
    %401 = vector.load %arg11[%c1_144, %c0_145, %c0_146] : memref<2x8x128xf32, #tpu.memory_space<vmem>>, vector<1x8x128xf32>
    %402 = vector.shape_cast %401 : vector<1x8x128xf32> to vector<8x128xf32>
    %403 = vector.shape_cast %400 : vector<8x128xf32> to vector<1x8x128xf32>
    tpu.vector_store %arg11[%c1_144, %c0_145, %c0_146], %403 {strides = array<i32>} : memref<2x8x128xf32, #tpu.memory_space<vmem>>, vector<1x8x128xf32>,
    %c1_147 = arith.constant 1 : index
    %c0_148 = arith.constant 0 : index
    %c0_149 = arith.constant 0 : index
    %404 = vector.load %arg12[%c1_147, %c0_148, %c0_149] : memref<2x8x128xf32, #tpu.memory_space<vmem>>, vector<1x8x128xf32>
    %405 = vector.shape_cast %404 : vector<1x8x128xf32> to vector<8x128xf32>
    %406 = vector.shape_cast %398 : vector<8x128xf32> to vector<1x8x128xf32>
    tpu.vector_store %arg12[%c1_147, %c0_148, %c0_149], %406 {strides = array<i32>} : memref<2x8x128xf32, #tpu.memory_space<vmem>>, vector<1x8x128xf32>,
    %407 = arith.truncf %400 : vector<8x128xf32> to vector<8x128xbf16>
    %c0_150 = arith.constant 0 : index
    %c0_151 = arith.constant 0 : index
    %408 = vector.load %arg8[%c0_150, %c0_151] : memref<128x128xbf16, #tpu.memory_space<vmem>>, vector<128x128xbf16>
    %cst_152 = arith.constant dense<0.000000e+00> : vector<8x128xf32>
    %409 = tpu.matmul %407, %408, %cst_152 {dimension_numbers = #tpu.dot_dimension_numbers<[1], [0], [0], [1], [0, 0, 1, 1], [], []>} : vector<8x128xbf16>, vector<128x128xbf16>, vector<8x128xf32> -> vector<8x128xf32>
    %c0_153 = arith.constant 0 : index
    %c0_154 = arith.constant 0 : index
    %410 = vector.load %arg9[%c0_153, %c0_154] : memref<1x128xf32, #tpu.memory_space<vmem>>, vector<1x128xf32>
    %411 = vector.broadcast %410 : vector<1x128xf32> to vector<8x128xf32>
    %412 = arith.addf %409, %411 : vector<8x128xf32>
    %c0_155 = arith.constant 0 : index
    %c0_156 = arith.constant 0 : index
    %413 = vector.load %arg10[%c0_155, %c0_156] : memref<8x128xf32, #tpu.memory_space<vmem>>, vector<8x128xf32>
    tpu.vector_store %arg10[%c0_155, %c0_156], %412 {strides = array<i32>} : memref<8x128xf32, #tpu.memory_space<vmem>>, vector<8x128xf32>,
    return
  }
  func.func @transform_0(%arg0: i32) -> (i32, i32, i32) {
    %c0_i32 = arith.constant 0 : i32
    %c0_i32_0 = arith.constant 0 : i32
    %c0_i32_1 = arith.constant 0 : i32
    return %c0_i32, %arg0, %c0_i32_0 : i32, i32, i32
  }
  func.func @transform_1(%arg0: i32) -> (i32, i32, i32) {
    %c0_i32 = arith.constant 0 : i32
    %c0_i32_0 = arith.constant 0 : i32
    %c0_i32_1 = arith.constant 0 : i32
    return %c0_i32, %arg0, %c0_i32_0 : i32, i32, i32
  }
  func.func @transform_2(%arg0: i32) -> (i32, i32, i32) {
    %c0_i32 = arith.constant 0 : i32
    %c0_i32_0 = arith.constant 0 : i32
    %c0_i32_1 = arith.constant 0 : i32
    return %c0_i32, %arg0, %c0_i32_0 : i32, i32, i32
  }
  func.func @transform_3(%arg0: i32) -> (i32, i32) {
    %c0_i32 = arith.constant 0 : i32
    %c0_i32_0 = arith.constant 0 : i32
    %c0_i32_1 = arith.constant 0 : i32
    return %c0_i32, %c0_i32_0 : i32, i32
  }
  func.func @transform_4(%arg0: i32) -> (i32, i32, i32) {
    %c0_i32 = arith.constant 0 : i32
    %c0_i32_0 = arith.constant 0 : i32
    %c0_i32_1 = arith.constant 0 : i32
    %c0_i32_2 = arith.constant 0 : i32
    return %c0_i32, %c0_i32_0, %c0_i32_1 : i32, i32, i32
  }
  func.func @transform_5(%arg0: i32) -> (i32, i32, i32) {
    %c0_i32 = arith.constant 0 : i32
    %c0_i32_0 = arith.constant 0 : i32
    %c0_i32_1 = arith.constant 0 : i32
    %c0_i32_2 = arith.constant 0 : i32
    return %c0_i32, %c0_i32_0, %c0_i32_1 : i32, i32, i32
  }
  func.func @transform_6(%arg0: i32) -> (i32, i32, i32) {
    %c0_i32 = arith.constant 0 : i32
    %c0_i32_0 = arith.constant 0 : i32
    %c0_i32_1 = arith.constant 0 : i32
    %c0_i32_2 = arith.constant 0 : i32
    return %c0_i32, %c0_i32_0, %c0_i32_1 : i32, i32, i32
  }
  func.func @transform_7(%arg0: i32) -> (i32, i32) {
    %c0_i32 = arith.constant 0 : i32
    %c0_i32_0 = arith.constant 0 : i32
    %c0_i32_1 = arith.constant 0 : i32
    return %c0_i32, %c0_i32_0 : i32, i32
  }
  func.func @transform_8(%arg0: i32) -> (i32, i32) {
    %c0_i32 = arith.constant 0 : i32
    %c0_i32_0 = arith.constant 0 : i32
    %c0_i32_1 = arith.constant 0 : i32
    return %c0_i32, %c0_i32_0 : i32, i32
  }
  func.func @transform_9(%arg0: i32) -> (i32, i32) {
    %c0_i32 = arith.constant 0 : i32
    %c0_i32_0 = arith.constant 0 : i32
    return %arg0, %c0_i32 : i32, i32
  }
  func.func @transform_10(%arg0: i32) -> (i32, i32, i32) {
    %c0_i32 = arith.constant 0 : i32
    %c0_i32_0 = arith.constant 0 : i32
    %c0_i32_1 = arith.constant 0 : i32
    return %c0_i32, %arg0, %c0_i32_0 : i32, i32, i32
  }
  func.func @transform_11(%arg0: i32) -> (i32, i32, i32) {
    %c0_i32 = arith.constant 0 : i32
    %c0_i32_0 = arith.constant 0 : i32
    %c0_i32_1 = arith.constant 0 : i32
    return %c0_i32, %arg0, %c0_i32_0 : i32, i32, i32
  }
}

</mosaic_0001>

<bundles_post_ra>
// kernel: tpu_custom_call.1
= control target key start
LH: loop header
LB: loop body
LE: loop exit
PB: predicated region body
PF: predicated region fallthrough
CT: control target
= control target key end

     0   :  { %s6876_s0 = inlined_call_operand.hbm [shape: f32[8,16,64], index: 0, kind: input, shape index: {}]   ;;  %s6877_s1 = inlined_call_operand.hbm [shape: f32[2,16,128], index: 1, kind: input, shape index: {}]   ;;  %s6878_s2 = inlined_call_operand.hbm [shape: f32[2,16,128], index: 2, kind: input, shape index: {}]   ;;  %s6879_s3 = inlined_call_operand.hbm [shape: bf16[64,512], index: 3, kind: input, shape index: {}]   ;;  %s6880_s4 = inlined_call_operand.hbm [shape: bf16[1,128,512], index: 4, kind: input, shape index: {}]   ;;  %s6881_s5 = inlined_call_operand.hbm [shape: bf16[2,128,512], index: 5, kind: input, shape index: {}]   ;;  %s6882_s6 = inlined_call_operand.vmem [shape: f32[2,1,512], index: 6, kind: input, shape index: {}]   ;;  %s6883_s7 = inlined_call_operand.hbm [shape: bf16[128,128], index: 7, kind: input, shape index: {}]   ;;  %s6884_s8 = inlined_call_operand.vmem [shape: f32[1,128], index: 8, kind: input, shape index: {}]   ;;  %s6885_s9 = inlined_call_operand.hbm [shape: f32[16,128], index: 9, kind: output, shape index: {0}]   ;;  %s6886_s10 = inlined_call_operand.hbm [shape: f32[2,16,128], index: 10, kind: output, shape index: {1}]   ;;  %s6887_s11 = inlined_call_operand.hbm [shape: f32[2,16,128], index: 11, kind: output, shape index: {2}]  }
   0x1   :  { %6928 = sst [smem:[#allocation57_spill]] %s6877_s1 }
   0x2   :  { %6929 = sst [smem:[#allocation58_spill]] %s6879_s3 }
   0x3   :  { %6930 = sst [smem:[#allocation59_spill]] %s6881_s5 }
   0x4   :  { %6931 = sst [smem:[#allocation60_spill]] %s6882_s6 }
   0x5   :  { %6932 = sst [smem:[#allocation61_spill]] %s6884_s8 }
   0x6   :  { %6933 = sst [smem:[#allocation62_spill]] %s6885_s9 }
   0x7   :  { %6934 = sst [smem:[#allocation63_spill]] %s6886_s10 }
   0x8   :  { %6935 = sst [smem:[#allocation64_spill]] %s6887_s11 }
   0x9   :  { %17 = vsyncpa [#allocation5], 0 }
   0xa   :  { %19 = vsyncpa [#allocation5 + $0x1], 0 }
   0xb   :  { %20 = vsyncpa [#allocation8], 0 }
   0xc   :  { %22 = vsyncpa [#allocation8 + $0x1], 0 }
   0xd   :  { %23 = vsyncpa [#allocation11], 0 }
   0xe   :  { %24 = vsyncpa [#allocation14], 0 }
   0xf   :  { %25 = vsyncpa [#allocation6], 0 }
  0x10   :  { %27 = vsyncpa [#allocation6 + $0x1], 0 }
  0x11   :  { %28 = vsyncpa [#allocation18], 0 }
  0x12   :  { %30 = vsyncpa [#allocation18 + $0x1], 0  ;;  %s5202_s17 = smov 0   ;;  %s5204_s18 = smov 0  }
  0x13   :  { %s5206_s19 = smov 0   ;;  %s5208_s20 = smov 0  }
  0x14 LB: > { %6936 = sst [smem:[#allocation26_spill]] %s5106_s17  ;;  %s5223_s21 = sadd.s32 4294967295, %s5118_s20   ;;  %s5118_s20 = sphi %s5208_s20, %s7078_s20   ;;  %s5114_s19 = sphi %s5206_s19, %s7080_s19   ;;  %s5110_s18 = sphi %s5204_s18, %s7082_s18   ;;  %s5106_s17 = sphi %s5202_s17, %s7081_s17  }
  0x15   : > { %6937 = sst [smem:[#allocation27_spill]] %s5114_s19  ;;  %s6888_s22 = sadd.s32 4294967294, %s5118_s20  }
  0x16   : > { %6938 = sst [smem:[#allocation28_spill]] %s5118_s20  ;;  %p56_p0 = scmp.ne.s32.totalorder %s5110_s18, %s5106_s17 }
  0x17   : > { %6939 = sst [smem:[#allocation29_spill]] %s5223_s21  ;;  %p6889_p1 = scmp.eq.s32.totalorder %s5223_s21, 0 }
  0x18   : > { %p264_p3 = scmp.eq.s32.totalorder %s6888_s22, 1  ;;  %p3921_p5 = scmp.ge.s32.totalorder %s5118_s20, 1 }
  0x19   : > { %p5234_p4 = por %p6889_p1, %p56_p0  ;;  %p323_p7 = scmp.lt.s32.totalorder %s5118_s20, 3 }
  0x1a   : > { %p5239_p6 = por %p264_p3, %p56_p0  ;;  %s5120_s26 = smov [#allocation10]  }
  0x1b   : > { %s6940_s23 = scalar_select %p5234_p4, 1, 0 }
  0x1c   : > { %s6941_s24 = scalar_select %p5239_p6, 1, 0 }
  0x1d   : > { %p5244_p8 = pnand %p3921_p5, %p323_p7  ;;  %s335_s27 = sshll.u32 %s5120_s26, 4  ;;  %s5248_s27 = int_to_ptr.vmem [resolvable:$true] %s335_s27 }
  0x1e   : > { %6942 = sst [smem:[#allocation30_spill]] %s6941_s24  ;;  %s5121_s29 = smov [#allocation13]  }
  0x1f   : > { %s6943_s25 = scalar_select %p5244_p8, 1, 0 }
  0x20   : > { %p4191_p9 = pneg %p5244_p8  ;;  %s361_s30 = sshll.u32 %s5121_s29, 4  ;;  %s5259_s30 = int_to_ptr.vmem [resolvable:$true] %s361_s30 }
  0x21   : > { %s6945_s3 = sld [smem:[#allocation58_spill]] }
  0x22   : > { %p5255_p11 = pnand %p4191_p9, %p6889_p1 }
  0x24   : > { %s6944_s28 = scalar_select %p5255_p11, 1, 0 }
  0x25   : > { %p5269_p13 = pneg %p5255_p11 }
  0x27   : > { %s4778_s14 = scalar_lea.hbm %s6945_s3, 2048 }
  0x28   : > { %p4779_p12 = scmp.ne.s32.totalorder %s6945_s3, %s4778_s14  ;;  %p4785_p5 = scmp.lt.u32.totalorder %s4778_s14, %s6945_s3 }
  0x29   : > { %s6946_s26 = scalar_select %p5269_p13, 1, 0 }
  0x2a   : > { %p4781_p0 = pnand %p5269_p13, %p4779_p12 }
  0x2c   : > { %p4782_p3 = pneg %p4781_p0 }
  0x2e   : > { %p4787_p7 = pnand %p4785_p5, %p4782_p3 }
  0x30   : > { %4790 = shalt.err (!%p4787_p7)
}
  0x31   : > { %s4791_s12 = scalar_lea.vmem %s5248_s27, 2048  ;;  %p4799_p2 = scmp.lt.s32.totalorder %s5248_s27, %s5248_s27 }
  0x32   : > { %p4792_p9 = scmp.ne.s32.totalorder %s5248_s27, %s4791_s12  ;;  %p4800_p6 = scmp.lt.s32.totalorder %s4791_s12, %s4791_s12 }
  0x34   : > { %p4794_p10 = pnand %p4792_p9, %p5269_p13  ;;  %p4801_p12 = por %p4800_p6, %p4799_p2 }
  0x36   : > { %p4795_p1 = pneg %p4794_p10 }
  0x38   : > { %p4802_p0 = pnand %p4801_p12, %p4795_p1 }
  0x3a   : > { %4805 = shalt.err (!%p4802_p0)
}
  0x3b   : > { %s6894_s13 = smov 256   ;;  %s6893_s22 = smov 16  }
  0x3c   : > { %4194 = dma.hbm_to_vmem [thread:$0]  (!%p5255_p11), %s6945_s3, 2048, %s5248_s27, [#allocation11], %s6894_s13, %s6894_s13, %s6893_s22  }
  0x3d   : > { %s6947_s5 = sld [smem:[#allocation59_spill]] }
  0x43   : > { %s4806_s12 = scalar_lea.hbm %s6947_s5, 8192 }
  0x44   : > { %p4807_p1 = scmp.ne.s32.totalorder %s6947_s5, %s4806_s12  ;;  %p4813_p10 = scmp.lt.u32.totalorder %s4806_s12, %s6947_s5 }
  0x46   : > { %p4809_p2 = pnand %p4807_p1, %p5269_p13 }
  0x48   : > { %p4810_p6 = pneg %p4809_p2 }
  0x4a   : > { %p4815_p3 = pnand %p4813_p10, %p4810_p6 }
  0x4c   : > { %4818 = shalt.err (!%p4815_p3)
}
  0x4d   : > { %s4819_s27 = scalar_lea.vmem %s5259_s30, 8192  ;;  %p4827_p12 = scmp.lt.s32.totalorder %s5259_s30, %s5259_s30 }
  0x4e   : > { %p4820_p5 = scmp.ne.s32.totalorder %s5259_s30, %s4819_s27  ;;  %p4828_p0 = scmp.lt.s32.totalorder %s4819_s27, %s4819_s27 }
  0x50   : > { %p4822_p7 = pnand %p4820_p5, %p5269_p13  ;;  %p4829_p1 = por %p4828_p0, %p4827_p12 }
  0x52   : > { %p4823_p9 = pneg %p4822_p7 }
  0x54   : > { %p4830_p2 = pnand %p4829_p1, %p4823_p9 }
  0x56   : > { %4833 = shalt.err (!%p4830_p2)
}
  0x57   : > { %4200 = dma.hbm_to_vmem [thread:$0]  (!%p5255_p11), %s6947_s5, 8192, %s5259_s30, [#allocation14], %s6894_s13, %s6894_s13, %s6893_s22  }
  0x58   : > { %s5320_s17 = sadd.s32 1, %s5118_s20   ;;  %s43_s24 = sadd.s32 1, %s5114_s19 }
  0x59   : > { %6948 = sst [smem:[#allocation31_spill]] %s5320_s17  ;;  %s40_s14 = ssub.s32 %s5118_s20, %s5320_s17 }
  0x5a   : > { %p50_p6 = scmp.ne.s32.totalorder %s5114_s19, %s5110_s18  ;;  %p41_p10 = scmp.eq.s32.totalorder %s40_s14, 0 }
  0x5b   : > { %p51_p3 = scmp.eq.s32.totalorder %s5118_s20, 0  ;;  %p6949_p5 = scmp.eq.s32.totalorder %s5223_s21, 1 }
  0x5c   : > { %p4228_p9 = scmp.lt.s32.totalorder %s5118_s20, 2  ;;  %s5339_s29 = sand.u32 1, %s5114_s19  }
  0x5d   : > { %p5330_p7 = por %p6949_p5, %p50_p6  ;;  %p52_p12 = por %p51_p3, %p50_p6 }
  0x5e   : > { %s5336_s16 = scalar_select %p41_p10, %s5114_s19, %s43_s24  }
  0x5f   : > { %s6950_s15 = scalar_select %p5330_p7, 1, 0 }
  0x60   : > { %6952 = sst [smem:[#allocation33_spill]] %s5336_s16  ;;  %s5342_s30 = sshll.u32 %s5118_s20, 7 }
  0x61   : > { %6951 = sst [smem:[#allocation32_spill]] %s6950_s15  ;;  %p5344_p0 = pnand %p4228_p9, %p52_p12 }
  0x62   : > { %s414_s27 = sand.u32 1, %s5118_s20   ;;  %s6896_s8 = sshll.u32 %s5339_s29, 4 }
  0x63   : > { %s6953_s12 = scalar_select %p5344_p0, 1, 0 }
  0x64   : > { %s6954_s1 = sld [smem:[#allocation57_spill]]  ;;  %s418_s22 = scalar_lea.vmem [#allocation7], %s6896_s8 }
  0x65   : > { %s424_s13 = sshll.u32 %s418_s22, 4  ;;  %s5360_s3 = scalar_lea.sflag [#allocation8], %s414_s27  ;;  %s5358_s13 = int_to_ptr.vmem [resolvable:$true] %s424_s13 }
  0x66   : > { %p5366_p2 = pneg %p5344_p0 }
  0x68   : > { %s6955_s16 = scalar_select %p5366_p2, 1, 0 }
  0x6a   : > { %s5354_s24 = scalar_lea.hbm %s6954_s1, %s5342_s30  ;;  %s4839_s8 = scalar_lea.hbm %s6954_s1, 512 }
  0x6b   : > { %s4834_s5 = scalar_lea.hbm %s5354_s24, 256  ;;  %p4840_p3 = scmp.lt.u32.totalorder %s5354_s24, %s6954_s1 }
  0x6c   : > { %p4835_p1 = scmp.ne.s32.totalorder %s5354_s24, %s4834_s5  ;;  %p4841_p5 = scmp.lt.u32.totalorder %s4839_s8, %s4834_s5 }
  0x6d   : > { %p4843_p12 = scmp.lt.u32.totalorder %s4834_s5, %s5354_s24 }
  0x6e   : > { %p4837_p6 = pnand %p5366_p2, %p4835_p1  ;;  %p4842_p9 = por %p4841_p5, %p4840_p3 }
  0x70   : > { %p4838_p10 = pneg %p4837_p6  ;;  %p4844_p7 = por %p4843_p12, %p4842_p9 }
  0x72   : > { %p4845_p4 = pnand %p4844_p7, %p4838_p10 }
  0x74   : > { %4848 = shalt.err (!%p4845_p4)
}
  0x75   : > { %s4849_s27 = scalar_lea.vmem %s5358_s13, 256  ;;  %s5124_s9 = smov [#allocation7]  }
  0x76   : > { %p4850_p1 = scmp.ne.s32.totalorder %s5358_s13, %s4849_s27  ;;  %s4854_s14 = sshll.u32 %s5124_s9, 4  ;;  %s4855_s14 = int_to_ptr.vmem [resolvable:$false] %s4854_s14 }
  0x77   : > { %s4856_s19 = scalar_lea.vmem %s4855_s14, 512  ;;  %p4857_p11 = scmp.lt.s32.totalorder %s5358_s13, %s4855_s14 }
  0x78   : > { %p4852_p6 = pnand %p4850_p1, %p5366_p2  ;;  %p4858_p13 = scmp.lt.s32.totalorder %s4856_s19, %s4849_s27 }
  0x7a   : > { %p4853_p8 = pneg %p4852_p6  ;;  %p4859_p3 = por %p4858_p13, %p4857_p11 }
  0x7c   : > { %p4860_p5 = pnand %p4859_p3, %p4853_p8 }
  0x7e   : > { %4863 = shalt.err (!%p4860_p5)
}
  0x7f   : > { %s5125_s5 = smov 128   ;;  %s5126_s8 = smov 8  }
  0x80   : > { %s6956_s22 = smov 256   ;;  %s6957_s9 = sshll.u32 %s5339_s29, 4 }
  0x81   : > { %4210 = dma.hbm_to_vmem [thread:$0]  (!%p5344_p0), %s5354_s24, 256, %s5358_s13, %s5360_s3, %s6956_s22, %s5125_s5, %s5126_s8  }
  0x82   : > { %s438_s1 = scalar_lea.vmem [#allocation9], %s6957_s9  ;;  %s5127_s27 = smov [#allocation12]  }
  0x83   : > { %s444_s14 = sshll.u32 %s438_s1, 4  ;;  %s348_s19 = sshll.u32 %s5127_s27, 4  ;;  %s349_s19 = int_to_ptr.vmem [resolvable:$true] %s348_s19  ;;  %s5416_s14 = int_to_ptr.vmem [resolvable:$true] %s444_s14 }
  0x84   : > { %s5128_s17 = smov [#allocation15]   ;;  %s4864_s15 = scalar_lea.hbm %s6880_s4, 4096 }
  0x85   : > { %s377_s20 = sshll.u32 %s5128_s17, 4  ;;  %p4865_p4 = scmp.ne.s32.totalorder %s6880_s4, %s4864_s15  ;;  %s378_s20 = int_to_ptr.vmem [resolvable:$true] %s377_s20 }
  0x86   : > { %p6958_p8 = scmp.ne.s32.totalorder %s6946_s26, 0  ;;  %p4871_p7 = scmp.lt.u32.totalorder %s4864_s15, %s6880_s4 }
  0x88   : > { %p4867_p11 = pnand %p4865_p4, %p6958_p8 }
  0x8a   : > { %p4868_p13 = pneg %p4867_p11 }
  0x8c   : > { %p4873_p10 = pnand %p4871_p7, %p4868_p13 }
  0x8e   : > { %4876 = shalt.err (!%p4873_p10)
}
  0x8f   : > { %s4877_s1 = scalar_lea.vmem %s349_s19, 4096  ;;  %p4885_p6 = scmp.lt.s32.totalorder %s349_s19, %s349_s19 }
  0x90   : > { %p4878_p9 = scmp.ne.s32.totalorder %s349_s19, %s4877_s1  ;;  %p4886_p3 = scmp.lt.s32.totalorder %s4877_s1, %s4877_s1 }
  0x92   : > { %p4880_p12 = pnand %p4878_p9, %p6958_p8  ;;  %p4887_p5 = por %p4886_p3, %p4885_p6 }
  0x94   : > { %p4881_p1 = pneg %p4880_p12 }
  0x96   : > { %p4888_p0 = pnand %p4887_p5, %p4881_p1 }
  0x98   : > { %4891 = shalt.err (!%p4888_p0)
}
  0x99   : > { %p6959_p4 = scmp.ne.s32.totalorder %s6944_s28, 0  ;;  %s6960_s6 = smov 16  }
  0x9a   : > { %s4892_s15 = scalar_lea.hbm %s6883_s7, 1024 }
  0x9b   : > { %4197 = dma.hbm_to_vmem [thread:$0]  (!%p6959_p4), %s6880_s4, 4096, %s349_s19, [#allocation11], %s6956_s22, %s6956_s22, %s6960_s6  }
  0x9c   : > { %p4893_p0 = scmp.ne.s32.totalorder %s6883_s7, %s4892_s15  ;;  %p4899_p7 = scmp.lt.u32.totalorder %s4892_s15, %s6883_s7 }
  0x9e   : > { %p4895_p11 = pnand %p4893_p0, %p6958_p8 }
  0xa0   : > { %p4896_p13 = pneg %p4895_p11 }
  0xa2   : > { %p4901_p10 = pnand %p4899_p7, %p4896_p13 }
  0xa4   : > { %4904 = shalt.err (!%p4901_p10)
}
  0xa5   : > { %s4905_s19 = scalar_lea.vmem %s378_s20, 1024  ;;  %p4913_p6 = scmp.lt.s32.totalorder %s378_s20, %s378_s20 }
  0xa6   : > { %p4906_p9 = scmp.ne.s32.totalorder %s378_s20, %s4905_s19  ;;  %p4914_p3 = scmp.lt.s32.totalorder %s4905_s19, %s4905_s19 }
  0xa8   : > { %p4908_p12 = pnand %p4906_p9, %p6958_p8  ;;  %p4915_p5 = por %p4914_p3, %p4913_p6 }
  0xaa   : > { %p4909_p1 = pneg %p4908_p12 }
  0xac   : > { %p4916_p2 = pnand %p4915_p5, %p4909_p1 }
  0xae   : > { %4919 = shalt.err (!%p4916_p2)
}
  0xaf   : > { %s5129_s1 = smov 64   ;;  %s5130_s6 = smov 4  }
  0xb0   : > { %4203 = dma.hbm_to_vmem [thread:$0]  (!%p6959_p4), %s6883_s7, 1024, %s378_s20, [#allocation14], %s5129_s1, %s5129_s1, %s5130_s6  }
  0xb1   : > { %s3927_s26 = sshll.u32 %s5339_s29, 6  ;;  %s5441_s15 = scalar_lea.hbm %s6876_s0, %s5342_s30 }
  0xb2   : > { %s398_s9 = scalar_lea.vmem [#allocation4], %s3927_s26  ;;  %s5447_s28 = scalar_lea.hbm %s6878_s2, %s5342_s30 }
  0xb3   : > { %s404_s27 = sshll.u32 %s398_s9, 4  ;;  %s395_s20 = scalar_lea.sflag [#allocation5], %s5339_s29  ;;  %s5449_s27 = int_to_ptr.vmem [resolvable:$true] %s404_s27 }
  0xb4   : > { %s4920_s19 = scalar_lea.hbm %s5441_s15, 1024  ;;  %p6961_p8 = scmp.ne.s32.totalorder %s6955_s16, 0 }
  0xb5   : > { %p4921_p2 = scmp.ne.s32.totalorder %s5441_s15, %s4920_s19  ;;  %s4925_s10 = scalar_lea.hbm %s6876_s0, 2048 }
  0xb6   : > { %p4926_p11 = scmp.lt.u32.totalorder %s5441_s15, %s6876_s0  ;;  %p4927_p13 = scmp.lt.u32.totalorder %s4925_s10, %s4920_s19 }
  0xb7   : > { %p4923_p4 = pnand %p4921_p2, %p6961_p8  ;;  %p4929_p10 = scmp.lt.u32.totalorder %s4920_s19, %s5441_s15 }
  0xb8   : > { %p4928_p7 = por %p4927_p13, %p4926_p11 }
  0xb9   : > { %p4924_p0 = pneg %p4923_p4 }
  0xba   : > { %p4930_p9 = por %p4929_p10, %p4928_p7 }
  0xbc   : > { %p4931_p12 = pnand %p4930_p9, %p4924_p0 }
  0xbe   : > { %4934 = shalt.err (!%p4931_p12)
}
  0xbf   : > { %s4935_s30 = scalar_lea.vmem %s5449_s27, 1024  ;;  %s5131_s21 = smov [#allocation4]  }
  0xc0   : > { %p4936_p1 = scmp.ne.s32.totalorder %s5449_s27, %s4935_s30  ;;  %s4940_s17 = sshll.u32 %s5131_s21, 4  ;;  %s4941_s17 = int_to_ptr.vmem [resolvable:$false] %s4940_s17 }
  0xc1   : > { %s4942_s9 = scalar_lea.vmem %s4941_s17, 2048  ;;  %p4943_p5 = scmp.lt.s32.totalorder %s5449_s27, %s4941_s17 }
  0xc2   : > { %p4938_p6 = pnand %p4936_p1, %p6961_p8  ;;  %p4944_p2 = scmp.lt.s32.totalorder %s4942_s9, %s4935_s30 }
  0xc4   : > { %p4939_p3 = pneg %p4938_p6  ;;  %p4945_p4 = por %p4944_p2, %p4943_p5 }
  0xc6   : > { %p4946_p11 = pnand %p4945_p4, %p4939_p3 }
  0xc8   : > { %4949 = shalt.err (!%p4946_p11)
}
  0xc9   : > { %p6962_p0 = scmp.ne.s32.totalorder %s6953_s12, 0  ;;  %s4950_s13 = scalar_lea.hbm %s5447_s28, 256 }
  0xca   : > { %p4951_p13 = scmp.ne.s32.totalorder %s5447_s28, %s4950_s13  ;;  %s4955_s1 = scalar_lea.hbm %s6878_s2, 512 }
  0xcb   : > { %4207 = dma.hbm_to_vmem [thread:$0]  (!%p6962_p0), %s5441_s15, 1024, %s5449_s27, %s395_s20, %s6956_s22, %s5125_s5, %s5126_s8  }
  0xcc   : > { %p4953_p7 = pnand %p4951_p13, %p6961_p8  ;;  %p4956_p9 = scmp.lt.u32.totalorder %s5447_s28, %s6878_s2 }
  0xcd   : > { %p4957_p12 = scmp.lt.u32.totalorder %s4955_s1, %s4950_s13  ;;  %p4959_p6 = scmp.lt.u32.totalorder %s4950_s13, %s5447_s28 }
  0xce   : > { %p4954_p10 = pneg %p4953_p7 }
  0xcf   : > { %p4958_p1 = por %p4957_p12, %p4956_p9 }
  0xd1   : > { %p4960_p3 = por %p4959_p6, %p4958_p1 }
  0xd3   : > { %p4961_p5 = pnand %p4960_p3, %p4954_p10 }
  0xd5   : > { %4964 = shalt.err (!%p4961_p5)
}
  0xd6   : > { %s4965_s29 = scalar_lea.vmem %s5416_s14, 256  ;;  %s5132_s15 = smov [#allocation9]  }
  0xd7   : > { %p4966_p2 = scmp.ne.s32.totalorder %s5416_s14, %s4965_s29  ;;  %s4970_s27 = sshll.u32 %s5132_s15, 4  ;;  %s4971_s27 = int_to_ptr.vmem [resolvable:$false] %s4970_s27 }
  0xd8   : > { %s4972_s20 = scalar_lea.vmem %s4971_s27, 512  ;;  %p4973_p13 = scmp.lt.s32.totalorder %s5416_s14, %s4971_s27 }
  0xd9   : > { %p4968_p4 = pnand %p4966_p2, %p6961_p8  ;;  %p4974_p7 = scmp.lt.s32.totalorder %s4972_s20, %s4965_s29 }
  0xdb   : > { %p4969_p11 = pneg %p4968_p4  ;;  %p4975_p9 = por %p4974_p7, %p4973_p13 }
  0xdd   : > { %p4976_p12 = pnand %p4975_p9, %p4969_p11 }
  0xdf   : > { %4979 = shalt.err (!%p4976_p12)
}
  0xe0   : > { %4213 = dma.hbm_to_vmem [thread:$0]  (!%p6962_p0), %s5447_s28, 256, %s5416_s14, %s5360_s3, %s6956_s22, %s5125_s5, %s5126_s8  }
  0xe1   : > { %p6963_p8 = scmp.ne.s32.totalorder %s6943_s25, 0 }
  0xe3   : > { %456 = sbr.rel (%p6963_p8) target bundleno = 4699 (0x125b), region = 56 }
  0xea   : > { %s5506_s16 = sand.u32 1, %s5110_s18   ;;  %p6964_p10 = scmp.ne.s32.totalorder %s6940_s23, 0 }
  0xeb   : > { %s3934_s11 = sshll.u32 %s5506_s16, 6  ;;  %s459_s26 = scalar_lea.sflag [#allocation5], %s5506_s16 }
  0xec   : > { %s5510_s30 = scalar_lea.vmem [#allocation4], %s3934_s11 }
  0xed   : > { %5081 = dma.done.wait (%p6964_p10), %s459_s26, 1024  }
  0xee   : > { %5083 = vsyncadd (%p6964_p10), %s459_s26, 4294966272  ;;  %s6965_s12 = sld [smem:[#allocation29_spill]]  ;;  %s5518_s25 = sshll.u32 %s5506_s16, 4 }
  0xef   : > { %s471_s8 = scalar_lea.vmem [#allocation7], %s5518_s25 }
  0xf4   : > { %s467_s3 = sand.u32 1, %s6965_s12  }
  0xf5   : > { %s468_s5 = scalar_lea.sflag [#allocation8], %s467_s3 }
  0xf6   : > { %5085 = dma.done.wait (%p6964_p10), %s468_s5, 512  }
  0xf7   : > { %5087 = vsyncadd (%p6964_p10), %s468_s5, 4294966784  ;;  %s480_s22 = scalar_lea.vmem [#allocation9], %s5518_s25  ;;  %p6966_p0 = scmp.eq.s32.totalorder %s6965_s12, 0 }
  0xf9   : > { %5089 = dma.done.wait (%p6966_p0), [#allocation11], 6144   ;;  %p6967_p1 = pmov %p6966_p0 }
  0xfa   : > { %p6968_p6 = pmov %p6966_p0 }
  0xfb   : > { %5091 = vsyncadd (%p6967_p1), [#allocation11], 4294961152 }
  0xfc   : > { %5093 = dma.done.wait (%p6968_p6), [#allocation14], 9216   ;;  %p6969_p3 = pmov %p6966_p0 }
  0xfd   : > { %v6924_v0 = vmov 0   ;;  %v4282_v1 = vld [vmem:[#allocation10 + $0x4] ss:$16 sps:$4 sm:$0xff]   ;;  %v4284_v2 = vld [vmem:[#allocation10 + $0xc] ss:$16 sps:$4 sm:$0xff]   ;;  %vm686_vm0 = vcmask 523264   ;;  %v586_v63 = vlaneseq }
  0xfe   : > { %5095 = vsyncadd (%p6969_p3), [#allocation14], 4294958080  ;;  %731 = vmatprep.mubr.bf16.mxu0 %v6924_v0  ;;  %804 = vmatprep.mubr.bf16.mxu1 %v6924_v0  ;;  %v4286_v3 = vld [vmem:[#allocation10] ss:$16 sps:$4 sm:$0xff]   ;;  %v4287_v4 = vld [vmem:[#allocation10 + $0x8] ss:$16 sps:$4 sm:$0xff]  }
  0xff   : > { %699 = vmatprep.subr.bf16.mxu0 %v4282_v1  ;;  %772 = vmatprep.subr.bf16.mxu1 %v4284_v2  ;;  %v4288_v5 = vld [vmem:[#allocation10 + $0x24] ss:$16 sps:$4 sm:$0xff]   ;;  %v4290_v6 = vld [vmem:[#allocation10 + $0x2c] ss:$16 sps:$4 sm:$0xff]   ;;  %v4292_v7 = vld [vmem:[#allocation10 + $0x20] ss:$16 sps:$4 sm:$0xff]  }
 0x100   : > { %700 = vmatpush1.bf16.msra.mxu0 %v4286_v3  ;;  %773 = vmatpush1.bf16.msra.mxu1 %v4287_v4  ;;  %v4293_v8 = vld [vmem:[#allocation10 + $0x28] ss:$16 sps:$4 sm:$0xff]   ;;  %v4294_v9 = vld [vmem:[#allocation10 + $0x44] ss:$16 sps:$4 sm:$0xff]   ;;  %v4296_v10 = vld [vmem:[#allocation10 + $0x4c] ss:$16 sps:$4 sm:$0xff]  }
 0x101   : > { %701 = vmatprep.subr.bf16.mxu0 %v4288_v5  ;;  %774 = vmatprep.subr.bf16.mxu1 %v4290_v6  ;;  %v4298_v11 = vld [vmem:[#allocation10 + $0x40] ss:$16 sps:$4 sm:$0xff]   ;;  %v4299_v12 = vld [vmem:[#allocation10 + $0x48] ss:$16 sps:$4 sm:$0xff]   ;;  %v4300_v13 = vld [vmem:[#allocation10 + $0x64] ss:$16 sps:$4 sm:$0xff]  }
 0x102   : > { %v4302_v14 = vld [vmem:[#allocation10 + $0x6c] ss:$16 sps:$4 sm:$0xff]   ;;  %v4304_v15 = vld [vmem:[#allocation10 + $0x60] ss:$16 sps:$4 sm:$0xff]   ;;  %v4305_v16 = vld [vmem:[#allocation10 + $0x68] ss:$16 sps:$4 sm:$0xff]  }
 0x103   : > { %v556_v17 = vld [vmem:[%s5510_s30] sm:$0xff]  ;;  %v557_v18 = vld [vmem:[%s5510_s30 + $0x8] sm:$0xff]  ;;  %v558_v28 = vld [vmem:[%s5510_s30 + $0x10] sm:$0xff]  ;;  %v5696_v1 = vshrl.u32 %v586_v63, 7  ;;  %s6971_s28 = sld [smem:[#allocation60_spill]]  ;;  %s6272_s21 = scalar_lea.vmem [#allocation19], %s5518_s25 }
 0x104   : > { %702 = vmatpush1.bf16.msra.mxu0 %v4292_v7  ;;  %775 = vmatpush1.bf16.msra.mxu1 %v4293_v8  ;;  %v5540_v19 = vld [vmem:[#allocation13 + $0x4] ss:$16 sps:$4 sm:$0xff]   ;;  %v5542_v20 = vld [vmem:[#allocation13 + $0xc] ss:$16 sps:$4 sm:$0xff]   ;;  %v564_v21 = vpack.c.bf16 %v557_v18, %v556_v17  ;;  %v5544_v22 = vld [vmem:[#allocation13] ss:$16 sps:$4 sm:$0xff]  }
 0x105   : > { %703 = vmatprep.subr.bf16.mxu0 %v4294_v9  ;;  %776 = vmatprep.subr.bf16.mxu1 %v4296_v10  ;;  %v5546_v23 = vld [vmem:[#allocation13 + $0x8] ss:$16 sps:$4 sm:$0xff]   ;;  %v5548_v24 = vld [vmem:[#allocation13 + $0x24] ss:$16 sps:$4 sm:$0xff]   ;;  %v5552_v25 = vld [vmem:[#allocation13 + $0x2c] ss:$16 sps:$4 sm:$0xff]  }
 0x106   : > { %v5554_v26 = vld [vmem:[#allocation13 + $0x20] ss:$16 sps:$4 sm:$0xff]   ;;  %v5558_v27 = vld [vmem:[#allocation13 + $0x28] ss:$16 sps:$4 sm:$0xff]   ;;  %v5564_v30 = vld [vmem:[#allocation13 + $0x44] ss:$16 sps:$4 sm:$0xff]  }
 0x107   : > { %v559_v29 = vld [vmem:[%s5510_s30 + $0x18] sm:$0xff]  ;;  %v5572_v33 = vld [vmem:[#allocation13 + $0x40] ss:$16 sps:$4 sm:$0xff]   ;;  %v5580_v35 = vld [vmem:[#allocation13 + $0x64] ss:$16 sps:$4 sm:$0xff]   ;;  %6970 = vst [vmem:[#allocation34_spill] sm:$0xff] %v5696_v1 }
 0x108   : > { %704 = vmatpush1.bf16.msra.mxu0 %v4298_v11  ;;  %777 = vmatpush1.bf16.msra.mxu1 %v4299_v12  ;;  %v5568_v31 = vld [vmem:[#allocation13 + $0x4c] ss:$16 sps:$4 sm:$0xff]   ;;  %v565_v32 = vpack.c.bf16 %v559_v29, %v558_v28  ;;  %v5576_v34 = vld [vmem:[#allocation13 + $0x48] ss:$16 sps:$4 sm:$0xff]   ;;  %v5584_v37 = vld [vmem:[#allocation13 + $0x60] ss:$16 sps:$4 sm:$0xff]  }
 0x109   : > { %705 = vmatprep.subr.bf16.mxu0 %v4300_v13  ;;  %778 = vmatprep.subr.bf16.mxu1 %v4302_v14  ;;  %v5582_v36 = vld [vmem:[#allocation13 + $0x6c] ss:$16 sps:$4 sm:$0xff]   ;;  %v5588_v38 = vld [vmem:[#allocation13 + $0x68] ss:$16 sps:$4 sm:$0xff]   ;;  %v560_v39 = vld [vmem:[%s5510_s30 + $0x20] sm:$0xff]  ;;  %v6922_v2 = vsub.s32 2, %v5696_v1 }
 0x10a   : > { %v561_v40 = vld [vmem:[%s5510_s30 + $0x28] sm:$0xff]  ;;  %v5594_v41 = vld [vmem:[#allocation13 + $0x84] ss:$16 sps:$4 sm:$0xff]   ;;  %v5602_v44 = vld [vmem:[#allocation13 + $0x80] ss:$16 sps:$4 sm:$0xff]   ;;  %v6920_v3 = vsub.s32 3, %v5696_v1 }
 0x10b   : > { %v5598_v42 = vld [vmem:[#allocation13 + $0x8c] ss:$16 sps:$4 sm:$0xff]   ;;  %v566_v43 = vpack.c.bf16 %v561_v40, %v560_v39  ;;  %v5604_v45 = vld [vmem:[#allocation13 + $0x88] ss:$16 sps:$4 sm:$0xff]   ;;  %v5608_v46 = vld [vmem:[#allocation13 + $0xa4] ss:$16 sps:$4 sm:$0xff]  }
 0x10c   : > { %706 = vmatpush1.bf16.msra.mxu0 %v4304_v15  ;;  %779 = vmatpush1.bf16.msra.mxu1 %v4305_v16  ;;  %v5612_v47 = vld [vmem:[#allocation13 + $0xac] ss:$16 sps:$4 sm:$0xff]   ;;  %v5614_v48 = vld [vmem:[#allocation13 + $0xa0] ss:$16 sps:$4 sm:$0xff]   ;;  %v5616_v49 = vld [vmem:[#allocation13 + $0xa8] ss:$16 sps:$4 sm:$0xff]  }
 0x10d   : > { %1076 = vmatprep.subr.bf16.mxu0 %v5540_v19  ;;  %1117 = vmatprep.subr.bf16.mxu1 %v5542_v20  ;;  %v562_v50 = vld [vmem:[%s5510_s30 + $0x30] sm:$0xff]  ;;  %v563_v51 = vld [vmem:[%s5510_s30 + $0x38] sm:$0xff]  ;;  %v6923_v4 = vsub.s32 0, %v5696_v1  ;;  %v584_v5 = vld [vmem:[%s6971_s28] sm:$0xf]  ;;  %v6921_v6 = vsub.s32 1, %v5696_v1 }
 0x10e   : > { %v5622_v52 = vld [vmem:[#allocation13 + $0xc4] ss:$16 sps:$4 sm:$0xff]   ;;  %v5624_v53 = vld [vmem:[#allocation13 + $0xcc] ss:$16 sps:$4 sm:$0xff]   ;;  %v5632_v54 = vld [vmem:[#allocation13 + $0xc0] ss:$16 sps:$4 sm:$0xff]   ;;  %v567_v56 = vpack.c.bf16 %v563_v51, %v562_v50  ;;  %v5707_v7 = vrot.slane %v584_v5, %v6922_v2  ;;  %v5715_v10 = vrot.slane %v584_v5, %v6920_v3 }
 0x10f   : > { %3960 = vmatmul.mubr.msk.bf16.vlgmr.msra.gmra.mrb[0].mxu0 %vm686_vm0, %v564_v21  ;;  %3964 = vmatmul.mubr.msk.bf16.vlgmr.msra.gmra.mrb[0].mxu1 %vm686_vm0, %v564_v21  ;;  %v5634_v55 = vld [vmem:[#allocation13 + $0xc8] ss:$16 sps:$4 sm:$0xff]   ;;  %v5636_v57 = vld [vmem:[#allocation13 + $0xe4] ss:$16 sps:$4 sm:$0xff]   ;;  %v5638_v58 = vld [vmem:[#allocation13 + $0xec] ss:$16 sps:$4 sm:$0xff]   ;;  %v589_v11 = vrot.slane %v584_v5, %v6923_v4  ;;  %v593_v14 = vrot.slane %v584_v5, %v6921_v6 }
 0x110   : > { %1077 = vmatpush1.bf16.msra.mxu0 %v5544_v22  ;;  %1118 = vmatpush1.bf16.msra.mxu1 %v5546_v23  ;;  %v5644_v59 = vld [vmem:[#allocation13 + $0xe0] ss:$16 sps:$4 sm:$0xff]   ;;  %v5646_v60 = vld [vmem:[#allocation13 + $0xe8] ss:$16 sps:$4 sm:$0xff]   ;;  %s6300_s17 = scalar_lea.vmem [#allocation17], %s5518_s25  ;;  %vm5135_vm1 = vmmov 0  }
 0x111   : > { %1078 = vmatprep.subr.bf16.mxu0 %v5548_v24  ;;  %1119 = vmatprep.subr.bf16.mxu1 %v5552_v25  ;;  %v877_v61 = vld [vmem:[%s471_s8] sm:$0xff]  ;;  %s7066_s24 = sld [smem:[#allocation32_spill]]  ;;  %s3690_s19 = sshll.u32 %s6300_s17, 4  ;;  %s6747_s19 = int_to_ptr.vmem [resolvable:$true] %s3690_s19 }
 0x112   : > { %741 = vmatprep.mubr.bf16.mxu0 %v6924_v0  ;;  %814 = vmatprep.mubr.bf16.mxu1 %v6924_v0  ;;  %v915_v62 = vpack.c.bf16 %v877_v61, %v877_v61  ;;  %s3705_s1 = sshll.u32 %s6272_s21, 4  ;;  %s6750_s6 = sshll.u32 %s6965_s12, 7  ;;  %s6789_s1 = int_to_ptr.vmem [resolvable:$true] %s3705_s1 }
 0x113   : > { %s7067_s15 = sld [smem:[#allocation63_spill]]  ;;  %s6760_s20 = scalar_lea.sflag [#allocation18], %s467_s3 }
 0x114   : > { %1079 = vmatpush1.bf16.msra.mxu0 %v5554_v26  ;;  %1120 = vmatpush1.bf16.msra.mxu1 %v5558_v27  ;;  %s4980_s11 = scalar_lea.vmem %s6747_s19, 256  ;;  %s5136_s26 = smov [#allocation17]  }
 0x115   : > { %1080 = vmatprep.subr.bf16.mxu0 %v5564_v30  ;;  %1121 = vmatprep.subr.bf16.mxu1 %v5568_v31  ;;  %p4981_p5 = scmp.ne.s32.totalorder %s6747_s19, %s4980_s11  ;;  %s4984_s30 = sshll.u32 %s5136_s26, 4  ;;  %s4985_s30 = int_to_ptr.vmem [resolvable:$false] %s4984_s30 }
 0x116   : > { %s4986_s25 = scalar_lea.vmem %s4985_s30, 512  ;;  %p4987_p13 = scmp.lt.s32.totalorder %s6747_s19, %s4985_s30 }
 0x117   : > { %3961 = vmatmul.mubr.msk.bf16.gmra.mrb[4].mxu0 %vm686_vm0, %v565_v32  ;;  %3965 = vmatmul.mubr.msk.bf16.gmra.mrb[4].mxu1 %vm686_vm0, %v565_v32  ;;  %p7068_p2 = scmp.ne.s32.totalorder %s7066_s24, 0  ;;  %p4988_p7 = scmp.lt.s32.totalorder %s4986_s25, %s4980_s11 }
 0x118   : > { %1081 = vmatpush1.bf16.msra.mxu0 %v5572_v33  ;;  %1122 = vmatpush1.bf16.msra.mxu1 %v5576_v34 }
 0x119   : > { %1082 = vmatprep.subr.bf16.mxu0 %v5580_v35  ;;  %1123 = vmatprep.subr.bf16.mxu1 %v5582_v36  ;;  %s6756_s27 = scalar_lea.hbm %s7067_s15, %s6750_s6  ;;  %p4982_p4 = pnand %p4981_p5, %p7068_p2 }
 0x11a   : > { %751 = vmatprep.mubr.bf16.mxu0 %v6924_v0  ;;  %824 = vmatprep.mubr.bf16.mxu1 %v6924_v0  ;;  %p4989_p9 = por %p4988_p7, %p4987_p13 }
 0x11b   : > { %p4983_p11 = pneg %p4982_p4 }
 0x11c   : > { %1083 = vmatpush1.bf16.msra.mxu0 %v5584_v37  ;;  %1124 = vmatpush1.bf16.msra.mxu1 %v5588_v38 }
 0x11d   : > { %1084 = vmatprep.subr.bf16.mxu0 %v5594_v41  ;;  %1125 = vmatprep.subr.bf16.mxu1 %v5598_v42  ;;  %p4990_p12 = pnand %p4989_p9, %p4983_p11 }
 0x11f   : > { %3962 = vmatmul.mubr.msk.bf16.gmra.mrb[8].mxu0 %vm686_vm0, %v566_v43  ;;  %3966 = vmatmul.mubr.msk.bf16.gmra.mrb[8].mxu1 %vm686_vm0, %v566_v43 }
 0x120   : > { %1085 = vmatpush1.bf16.msra.mxu0 %v5602_v44  ;;  %1126 = vmatpush1.bf16.msra.mxu1 %v5604_v45 }
 0x121   : > { %1086 = vmatprep.subr.bf16.mxu0 %v5608_v46  ;;  %1127 = vmatprep.subr.bf16.mxu1 %v5612_v47 }
 0x122   : > { %761 = vmatprep.mubr.bf16.mxu0 %v6924_v0  ;;  %834 = vmatprep.mubr.bf16.mxu1 %v6924_v0 }
 0x124   : > { %1087 = vmatpush1.bf16.msra.mxu0 %v5614_v48  ;;  %1128 = vmatpush1.bf16.msra.mxu1 %v5616_v49 }
 0x125   : > { %1088 = vmatprep.subr.bf16.mxu0 %v5622_v52  ;;  %1129 = vmatprep.subr.bf16.mxu1 %v5624_v53 }
 0x127   : > { %3963 = vmatmul.mubr.msk.bf16.gmra.mrb[12].mxu0 %vm686_vm0, %v567_v56  ;;  %3967 = vmatmul.mubr.msk.bf16.gmra.mrb[12].mxu1 %vm686_vm0, %v567_v56 }
 0x128   : > { %1089 = vmatpush1.bf16.msra.mxu0 %v5632_v54  ;;  %1130 = vmatpush1.bf16.msra.mxu1 %v5634_v55 }
 0x129   : > { %1090 = vmatprep.subr.bf16.mxu0 %v5636_v57  ;;  %1131 = vmatprep.subr.bf16.mxu1 %v5638_v58 }
 0x12a   : > { %1108 = vmatprep.mubr.bf16.mxu0 %v6924_v0  ;;  %1149 = vmatprep.mubr.bf16.mxu1 %v6924_v0 }
 0x12c   : > { %1091 = vmatpush1.bf16.msra.mxu0 %v5644_v59  ;;  %1132 = vmatpush1.bf16.msra.mxu1 %v5646_v60 }
 0x12d   : > { %1193 = vmatprep.subr.bf16.mxu0 %v5540_v19  ;;  %1234 = vmatprep.subr.bf16.mxu1 %v5542_v20 }
 0x12f   : > { %1109 = vmatmul.mubr.bf16.vlgmr.msra.gmra.mrb[16].mxu0 %v915_v62  ;;  %1150 = vmatmul.mubr.bf16.vlgmr.msra.gmra.mrb[16].mxu1 %v915_v62 }
 0x130   : > { %1194 = vmatpush1.bf16.msra.mxu0 %v5544_v22  ;;  %1235 = vmatpush1.bf16.msra.mxu1 %v5546_v23 }
 0x131   : > { %1195 = vmatprep.subr.bf16.mxu0 %v5548_v24  ;;  %1236 = vmatprep.subr.bf16.mxu1 %v5552_v25 }
 0x132   : > { %1225 = vmatprep.mubr.bf16.mxu0 %v6924_v0  ;;  %1266 = vmatprep.mubr.bf16.mxu1 %v6924_v0 }
 0x134   : > { %1196 = vmatpush1.bf16.msra.mxu0 %v5554_v26  ;;  %1237 = vmatpush1.bf16.msra.mxu1 %v5558_v27 }
 0x135   : > { %1197 = vmatprep.subr.bf16.mxu0 %v5564_v30  ;;  %1238 = vmatprep.subr.bf16.mxu1 %v5568_v31 }
 0x138   : > { %1198 = vmatpush1.bf16.msra.mxu0 %v5572_v33  ;;  %1239 = vmatpush1.bf16.msra.mxu1 %v5576_v34 }
 0x139   : > { %1199 = vmatprep.subr.bf16.mxu0 %v5580_v35  ;;  %1240 = vmatprep.subr.bf16.mxu1 %v5582_v36 }
 0x13c   : > { %1200 = vmatpush1.bf16.msra.mxu0 %v5584_v37  ;;  %1241 = vmatpush1.bf16.msra.mxu1 %v5588_v38 }
 0x13d   : > { %1201 = vmatprep.subr.bf16.mxu0 %v5594_v41  ;;  %1242 = vmatprep.subr.bf16.mxu1 %v5598_v42 }
 0x140   : > { %1202 = vmatpush1.bf16.msra.mxu0 %v5602_v44  ;;  %1243 = vmatpush1.bf16.msra.mxu1 %v5604_v45 }
 0x141   : > { %1203 = vmatprep.subr.bf16.mxu0 %v5608_v46  ;;  %1244 = vmatprep.subr.bf16.mxu1 %v5612_v47 }
 0x144   : > { %1204 = vmatpush1.bf16.msra.mxu0 %v5614_v48  ;;  %1245 = vmatpush1.bf16.msra.mxu1 %v5616_v49 }
 0x145   : > { %1205 = vmatprep.subr.bf16.mxu0 %v5622_v52  ;;  %1246 = vmatprep.subr.bf16.mxu1 %v5624_v53 }
 0x148   : > { %1206 = vmatpush1.bf16.msra.mxu0 %v5632_v54  ;;  %1247 = vmatpush1.bf16.msra.mxu1 %v5634_v55 }
 0x149   : > { %1207 = vmatprep.subr.bf16.mxu0 %v5636_v57  ;;  %1248 = vmatprep.subr.bf16.mxu1 %v5638_v58 }
 0x14c   : > { %1208 = vmatpush1.bf16.msra.mxu0 %v5644_v59  ;;  %1249 = vmatpush1.bf16.msra.mxu1 %v5646_v60 }
 0x14d   : > { %1311 = vmatprep.subr.bf16.mxu0 %v5540_v19  ;;  %1352 = vmatprep.subr.bf16.mxu1 %v5542_v20 }
 0x1e2   : > { %v5709_v8 = vpop.f32.mrb[0].mxu0  ;;  %v5711_v9 = vpop.f32.mrb[0].mxu1 }
 0x1e3   : > { %v735_v12 = vpop.f32.mrb[1].mxu0  ;;  %v808_v13 = vpop.f32.mrb[1].mxu1 }
 0x1e4   : > { %v737_v15 = vpop.f32.mrb[2].mxu0  ;;  %v810_v16 = vpop.f32.mrb[2].mxu1 }
 0x1e5   : > { %v5721_v17 = vadd.f32 %v737_v15, %v589_v11  ;;  %v739_v18 = vpop.f32.mrb[3].mxu0  ;;  %v5724_v21 = vadd.f32 %v810_v16, %v5707_v7  ;;  %v812_v28 = vpop.f32.mrb[3].mxu1 }
 0x1e6   : > { %v5726_v29 = vadd.f32 %v739_v18, %v593_v14  ;;  %v5729_v32 = vadd.f32 %v812_v28, %v5715_v10 }
 0x1ea   : > { %v743_v39 = vpop.f32.mrb[4].mxu0  ;;  %v816_v40 = vpop.f32.mrb[4].mxu1 }
 0x1eb   : > { %v5731_v43 = vadd.f32 %v743_v39, %v589_v11  ;;  %v745_v50 = vpop.f32.mrb[5].mxu0  ;;  %v5734_v51 = vadd.f32 %v816_v40, %v5707_v7  ;;  %v818_v56 = vpop.f32.mrb[5].mxu1 }
 0x1ec   : > { %v5736_v61 = vadd.f32 %v745_v50, %v593_v14  ;;  %v747_v62 = vpop.f32.mrb[6].mxu0  ;;  %v5739_v63 = vadd.f32 %v818_v56, %v5715_v10  ;;  %v820_v5 = vpop.f32.mrb[6].mxu1 }
 0x1ed   : > { %v5741_v15 = vadd.f32 %v747_v62, %v589_v11  ;;  %v749_v16 = vpop.f32.mrb[7].mxu0  ;;  %v5744_v18 = vadd.f32 %v820_v5, %v5707_v7  ;;  %v822_v28 = vpop.f32.mrb[7].mxu1 }
 0x1ee   : > { %6972 = vst [vmem:[#allocation35_spill] sm:$0xff] %v5739_v63  ;;  %v5746_v39 = vadd.f32 %v749_v16, %v593_v14  ;;  %v5749_v40 = vadd.f32 %v822_v28, %v5715_v10 }
 0x1ef   : > { %6973 = vst [vmem:[#allocation36_spill] sm:$0xff] %v5741_v15  ;;  %6974 = vst [vmem:[#allocation37_spill] sm:$0xff] %v5744_v18 }
 0x1f0   : > { %6975 = vst [vmem:[#allocation38_spill] sm:$0xff] %v5746_v39  ;;  %6976 = vst [vmem:[#allocation39_spill] sm:$0xff] %v5749_v40 }
 0x1f2   : > { %v753_v3 = vpop.f32.mrb[8].mxu0  ;;  %v826_v50 = vpop.f32.mrb[8].mxu1 }
 0x1f3   : > { %v5751_v6 = vadd.f32 %v753_v3, %v589_v11  ;;  %v755_v2 = vpop.f32.mrb[9].mxu0  ;;  %v5754_v56 = vadd.f32 %v826_v50, %v5707_v7  ;;  %v828_v62 = vpop.f32.mrb[9].mxu1 }
 0x1f4   : > { %v5756_v4 = vadd.f32 %v755_v2, %v593_v14  ;;  %v757_v0 = vpop.f32.mrb[10].mxu0  ;;  %v5759_v5 = vadd.f32 %v828_v62, %v5715_v10  ;;  %v830_v16 = vpop.f32.mrb[10].mxu1 }
 0x1f5   : > { %6977 = vst [vmem:[#allocation40_spill] sm:$0xff] %v5751_v6  ;;  %6978 = vst [vmem:[#allocation41_spill] sm:$0xff] %v5754_v56  ;;  %v5761_v1 = vadd.f32 %v757_v0, %v589_v11  ;;  %v759_v28 = vpop.f32.mrb[11].mxu0  ;;  %v5764_v40 = vadd.f32 %v830_v16, %v5707_v7  ;;  %v832_v3 = vpop.f32.mrb[11].mxu1 }
 0x1f6   : > { %6979 = vst [vmem:[#allocation42_spill] sm:$0xff] %v5756_v4  ;;  %6980 = vst [vmem:[#allocation43_spill] sm:$0xff] %v5759_v5  ;;  %v5766_v6 = vadd.f32 %v759_v28, %v593_v14  ;;  %v5769_v50 = vadd.f32 %v832_v3, %v5715_v10 }
 0x1f7   : > { %6981 = vst [vmem:[#allocation44_spill] sm:$0xff] %v5761_v1  ;;  %6982 = vst [vmem:[#allocation45_spill] sm:$0xff] %v5764_v40 }
 0x1f8   : > { %6983 = vst [vmem:[#allocation46_spill] sm:$0xff] %v5766_v6  ;;  %6984 = vst [vmem:[#allocation47_spill] sm:$0xff] %v5769_v50 }
 0x1fa   : > { %v763_v56 = vpop.f32.mrb[12].mxu0  ;;  %v836_v2 = vpop.f32.mrb[12].mxu1 }
 0x1fb   : > { %v5771_v4 = vadd.f32 %v763_v56, %v589_v11  ;;  %v765_v39 = vpop.f32.mrb[13].mxu0  ;;  %v5774_v62 = vadd.f32 %v836_v2, %v5707_v7  ;;  %v838_v0 = vpop.f32.mrb[13].mxu1 }
 0x1fc   : > { %v5776_v1 = vadd.f32 %v765_v39, %v593_v14  ;;  %v767_v5 = vpop.f32.mrb[14].mxu0  ;;  %v5779_v16 = vadd.f32 %v838_v0, %v5715_v10  ;;  %v840_v28 = vpop.f32.mrb[14].mxu1  ;;  %v734_v39 = vadd.f32 %v5709_v8, %v589_v11  ;;  %v736_v0 = vadd.f32 %v735_v12, %v593_v14 }
 0x1fd   : > { %6985 = vst [vmem:[#allocation48_spill] sm:$0xff] %v5771_v4  ;;  %6986 = vst [vmem:[#allocation49_spill] sm:$0xff] %v5774_v62  ;;  %v5781_v6 = vadd.f32 %v767_v5, %v589_v11  ;;  %v769_v3 = vpop.f32.mrb[15].mxu0  ;;  %v5784_v50 = vadd.f32 %v840_v28, %v5707_v7  ;;  %v842_v56 = vpop.f32.mrb[15].mxu1 }
 0x1fe   : > { %6987 = vst [vmem:[#allocation50_spill] sm:$0xff] %v5776_v1  ;;  %6988 = vst [vmem:[#allocation51_spill] sm:$0xff] %v5779_v16  ;;  %v5786_v4 = vadd.f32 %v769_v3, %v593_v14  ;;  %v5789_v2 = vadd.f32 %v842_v56, %v5715_v10  ;;  %v807_v1 = vadd.f32 %v5711_v9, %v5707_v7 }
 0x1ff   : > { %6989 = vst [vmem:[#allocation52_spill] sm:$0xff] %v5781_v6  ;;  %6990 = vst [vmem:[#allocation53_spill] sm:$0xff] %v5784_v50  ;;  %v809_v16 = vadd.f32 %v808_v13, %v5715_v10  ;;  %v878_v13 = vld [vmem:[%s480_s22] sm:$0xff] }
 0x200   : > { %6991 = vst [vmem:[#allocation54_spill] sm:$0xff] %v5786_v4  ;;  %6992 = vst [vmem:[#allocation55_spill] sm:$0xff] %v5789_v2 }
 0x202   : > { %v1110_v5 = vpop.f32.mrb[16].mxu0  ;;  %v1151_v6 = vpop.f32.mrb[16].mxu1 }
 0x203   : > { %v1158_v62 = vadd.f32 %v1110_v5, %v734_v39  ;;  %v1160_v40 = vadd.f32 %v1151_v6, %v807_v1  ;;  %v1112_v28 = vpop.f32.mrb[17].mxu0  ;;  %v1153_v50 = vpop.f32.mrb[17].mxu1  ;;  %v6993_v39 = vmov 0  }
 0x204   : > { %v1159_v18 = vadd.f32 %v1112_v28, %v736_v0  ;;  %v1161_v3 = vadd.f32 %v1153_v50, %v809_v16  ;;  %v1114_v4 = vpop.f32.mrb[18].mxu0  ;;  %v1155_v15 = vpop.f32.mrb[18].mxu1 }
 0x205   : > { %v4000_v56 = vmul.f32 -1.442695, %v1158_v62  ;;  %v1115_v2 = vpop.f32.mrb[19].mxu0  ;;  %v1156_v63 = vpop.f32.mrb[19].mxu1  ;;  %v4002_v7 = vmul.f32 -1.442695, %v1160_v40 }
 0x206   : > { %v4001_v8 = vmul.f32 -1.442695, %v1159_v18 }
 0x207   : > { %4458 = vpow2.f32 %v4000_v56 }
 0x208   : > { %4460 = vpow2.f32 %v4001_v8 }
 0x209   : > { %4462 = vtanh.f32 %v1161_v3 }
 0x20a   : > { %4464 = vpow2.f32 %v4002_v7 }
 0x211   : > { %v4459_v9 = vpop.eup %4458 }
 0x212   : > { %v1171_v10 = vadd.f32 1.0, %v4459_v9  ;;  %v4461_v11 = vpop.eup %4460 }
 0x213   : > { %v1172_v1 = vadd.f32 1.0, %v4461_v11  ;;  %v4463_v6 = vpop.eup %4462 }
 0x214   : > { %4466 = vrcp.f32 %v1171_v10  ;;  %v4465_v12 = vpop.eup %4464 }
 0x215   : > { %4468 = vrcp.f32 %v1172_v1  ;;  %v1173_v15 = vadd.f32 1.0, %v4465_v12 }
 0x217   : > { %4470 = vrcp.f32 %v1173_v15 }
 0x21e   : > { %v4467_v4 = vpop.eup %4466 }
 0x21f   : > { %v1182_v14 = vmul.f32 %v4467_v4, %v4463_v6  ;;  %v4469_v63 = vpop.eup %4468 }
 0x220   : > { %v1181_v18 = vmul.f32 %v4469_v63, %v878_v13 }
 0x221   : > { %v4471_v40 = vpop.eup %4470 }
 0x222   : > { %v5797_v50 = vadd.f32 %v1182_v14, %v1181_v18 }
 0x224   : > { %4472 = vtanh.f32 %v5797_v50 }
 0x22e   : > { %v4473_v62 = vpop.eup %4472 }
 0x22f   : > { %v5800_v16 = vmul.f32 %v4473_v62, %v4471_v40 }
 0x231   : > { %v1192_v2 = vpack.c.bf16 %v5800_v16, %v5800_v16 }
 0x233   : > { %1226 = vmatmul.mubr.bf16.vlgmr.msra.gmra.mrb[20].mxu0 %v1192_v2  ;;  %1267 = vmatmul.mubr.bf16.vlgmr.msra.gmra.mrb[20].mxu1 %v1192_v2 }
 0x234   : > { %1312 = vmatpush1.bf16.msra.mxu0 %v5544_v22  ;;  %1353 = vmatpush1.bf16.msra.mxu1 %v5546_v23 }
 0x235   : > { %1313 = vmatprep.subr.bf16.mxu0 %v5548_v24  ;;  %1354 = vmatprep.subr.bf16.mxu1 %v5552_v25 }
 0x236   : > { %1343 = vmatprep.mubr.bf16.mxu0 %v6993_v39  ;;  %1384 = vmatprep.mubr.bf16.mxu1 %v6993_v39 }
 0x238   : > { %1314 = vmatpush1.bf16.msra.mxu0 %v5554_v26  ;;  %1355 = vmatpush1.bf16.msra.mxu1 %v5558_v27 }
 0x239   : > { %1315 = vmatprep.subr.bf16.mxu0 %v5564_v30  ;;  %1356 = vmatprep.subr.bf16.mxu1 %v5568_v31 }
 0x23c   : > { %1316 = vmatpush1.bf16.msra.mxu0 %v5572_v33  ;;  %1357 = vmatpush1.bf16.msra.mxu1 %v5576_v34 }
 0x23d   : > { %1317 = vmatprep.subr.bf16.mxu0 %v5580_v35  ;;  %1358 = vmatprep.subr.bf16.mxu1 %v5582_v36 }
 0x240   : > { %1318 = vmatpush1.bf16.msra.mxu0 %v5584_v37  ;;  %1359 = vmatpush1.bf16.msra.mxu1 %v5588_v38 }
 0x241   : > { %1319 = vmatprep.subr.bf16.mxu0 %v5594_v41  ;;  %1360 = vmatprep.subr.bf16.mxu1 %v5598_v42 }
 0x244   : > { %1320 = vmatpush1.bf16.msra.mxu0 %v5602_v44  ;;  %1361 = vmatpush1.bf16.msra.mxu1 %v5604_v45 }
 0x245   : > { %1321 = vmatprep.subr.bf16.mxu0 %v5608_v46  ;;  %1362 = vmatprep.subr.bf16.mxu1 %v5612_v47 }
 0x248   : > { %1322 = vmatpush1.bf16.msra.mxu0 %v5614_v48  ;;  %1363 = vmatpush1.bf16.msra.mxu1 %v5616_v49 }
 0x249   : > { %1323 = vmatprep.subr.bf16.mxu0 %v5622_v52  ;;  %1364 = vmatprep.subr.bf16.mxu1 %v5624_v53 }
 0x24c   : > { %1324 = vmatpush1.bf16.msra.mxu0 %v5632_v54  ;;  %1365 = vmatpush1.bf16.msra.mxu1 %v5634_v55 }
 0x24d   : > { %1325 = vmatprep.subr.bf16.mxu0 %v5636_v57  ;;  %1366 = vmatprep.subr.bf16.mxu1 %v5638_v58 }
 0x250   : > { %1326 = vmatpush1.bf16.msra.mxu0 %v5644_v59  ;;  %1367 = vmatpush1.bf16.msra.mxu1 %v5646_v60 }
 0x251   : > { %1429 = vmatprep.subr.bf16.mxu0 %v5540_v19  ;;  %1470 = vmatprep.subr.bf16.mxu1 %v5542_v20 }
 0x306   : > { %v1227_v0 = vpop.f32.mrb[20].mxu0  ;;  %v1268_v5 = vpop.f32.mrb[20].mxu1 }
 0x307   : > { %v1275_v28 = vadd.f32 %v1227_v0, %v5721_v17  ;;  %v1277_v3 = vadd.f32 %v1268_v5, %v5724_v21  ;;  %v1229_v56 = vpop.f32.mrb[21].mxu0  ;;  %v1270_v8 = vpop.f32.mrb[21].mxu1 }
 0x308   : > { %v1276_v7 = vadd.f32 %v1229_v56, %v5726_v29  ;;  %v1278_v9 = vadd.f32 %v1270_v8, %v5729_v32  ;;  %v1231_v10 = vpop.f32.mrb[22].mxu0  ;;  %v1272_v11 = vpop.f32.mrb[22].mxu1 }
 0x309   : > { %v4003_v1 = vmul.f32 -1.442695, %v1275_v28  ;;  %v1232_v6 = vpop.f32.mrb[23].mxu0  ;;  %v1273_v12 = vpop.f32.mrb[23].mxu1  ;;  %v4005_v13 = vmul.f32 -1.442695, %v1277_v3 }
 0x30a   : > { %v4004_v4 = vmul.f32 -1.442695, %v1276_v7  ;;  %v6994_v6 = vld [vmem:[#allocation35_spill] sm:$0xff] }
 0x30b   : > { %4474 = vpow2.f32 %v4003_v1 }
 0x30c   : > { %4476 = vpow2.f32 %v4004_v4 }
 0x30d   : > { %4478 = vtanh.f32 %v1278_v9 }
 0x30e   : > { %4480 = vpow2.f32 %v4005_v13 }
 0x315   : > { %v4475_v14 = vpop.eup %4474 }
 0x316   : > { %v1288_v63 = vadd.f32 1.0, %v4475_v14  ;;  %v4477_v17 = vpop.eup %4476 }
 0x317   : > { %v1289_v21 = vadd.f32 1.0, %v4477_v17  ;;  %v4479_v29 = vpop.eup %4478 }
 0x318   : > { %4482 = vrcp.f32 %v1288_v63  ;;  %v4481_v15 = vpop.eup %4480 }
 0x319   : > { %4484 = vrcp.f32 %v1289_v21  ;;  %v1290_v62 = vadd.f32 1.0, %v4481_v15 }
 0x31b   : > { %4486 = vrcp.f32 %v1290_v62 }
 0x322   : > { %v4483_v32 = vpop.eup %4482 }
 0x323   : > { %v1299_v18 = vmul.f32 %v4483_v32, %v4479_v29  ;;  %v4485_v40 = vpop.eup %4484 }
 0x324   : > { %v1298_v2 = vmul.f32 %v4485_v40, %v5797_v50 }
 0x325   : > { %v4487_v5 = vpop.eup %4486 }
 0x326   : > { %v5843_v0 = vadd.f32 %v1299_v18, %v1298_v2 }
 0x328   : > { %4488 = vtanh.f32 %v5843_v0 }
 0x332   : > { %v4489_v28 = vpop.eup %4488 }
 0x333   : > { %v5846_v3 = vmul.f32 %v4489_v28, %v4487_v5 }
 0x335   : > { %v1310_v56 = vpack.c.bf16 %v5846_v3, %v5846_v3 }
 0x337   : > { %1344 = vmatmul.mubr.bf16.vlgmr.msra.gmra.mrb[24].mxu0 %v1310_v56  ;;  %1385 = vmatmul.mubr.bf16.vlgmr.msra.gmra.mrb[24].mxu1 %v1310_v56 }
 0x338   : > { %1430 = vmatpush1.bf16.msra.mxu0 %v5544_v22  ;;  %1471 = vmatpush1.bf16.msra.mxu1 %v5546_v23 }
 0x339   : > { %1431 = vmatprep.subr.bf16.mxu0 %v5548_v24  ;;  %1472 = vmatprep.subr.bf16.mxu1 %v5552_v25 }
 0x33a   : > { %1461 = vmatprep.mubr.bf16.mxu0 %v6993_v39  ;;  %1502 = vmatprep.mubr.bf16.mxu1 %v6993_v39 }
 0x33c   : > { %1432 = vmatpush1.bf16.msra.mxu0 %v5554_v26  ;;  %1473 = vmatpush1.bf16.msra.mxu1 %v5558_v27 }
 0x33d   : > { %1433 = vmatprep.subr.bf16.mxu0 %v5564_v30  ;;  %1474 = vmatprep.subr.bf16.mxu1 %v5568_v31 }
 0x340   : > { %1434 = vmatpush1.bf16.msra.mxu0 %v5572_v33  ;;  %1475 = vmatpush1.bf16.msra.mxu1 %v5576_v34 }
 0x341   : > { %1435 = vmatprep.subr.bf16.mxu0 %v5580_v35  ;;  %1476 = vmatprep.subr.bf16.mxu1 %v5582_v36 }
 0x344   : > { %1436 = vmatpush1.bf16.msra.mxu0 %v5584_v37  ;;  %1477 = vmatpush1.bf16.msra.mxu1 %v5588_v38 }
 0x345   : > { %1437 = vmatprep.subr.bf16.mxu0 %v5594_v41  ;;  %1478 = vmatprep.subr.bf16.mxu1 %v5598_v42 }
 0x348   : > { %1438 = vmatpush1.bf16.msra.mxu0 %v5602_v44  ;;  %1479 = vmatpush1.bf16.msra.mxu1 %v5604_v45 }
 0x349   : > { %1439 = vmatprep.subr.bf16.mxu0 %v5608_v46  ;;  %1480 = vmatprep.subr.bf16.mxu1 %v5612_v47 }
 0x34c   : > { %1440 = vmatpush1.bf16.msra.mxu0 %v5614_v48  ;;  %1481 = vmatpush1.bf16.msra.mxu1 %v5616_v49 }
 0x34d   : > { %1441 = vmatprep.subr.bf16.mxu0 %v5622_v52  ;;  %1482 = vmatprep.subr.bf16.mxu1 %v5624_v53 }
 0x350   : > { %1442 = vmatpush1.bf16.msra.mxu0 %v5632_v54  ;;  %1483 = vmatpush1.bf16.msra.mxu1 %v5634_v55 }
 0x351   : > { %1443 = vmatprep.subr.bf16.mxu0 %v5636_v57  ;;  %1484 = vmatprep.subr.bf16.mxu1 %v5638_v58 }
 0x354   : > { %1444 = vmatpush1.bf16.msra.mxu0 %v5644_v59  ;;  %1485 = vmatpush1.bf16.msra.mxu1 %v5646_v60 }
 0x355   : > { %1547 = vmatprep.subr.bf16.mxu0 %v5540_v19  ;;  %1588 = vmatprep.subr.bf16.mxu1 %v5542_v20 }
 0x40a   : > { %v1345_v50 = vpop.f32.mrb[24].mxu0  ;;  %v1386_v8 = vpop.f32.mrb[24].mxu1 }
 0x40b   : > { %v1393_v7 = vadd.f32 %v1345_v50, %v5731_v43  ;;  %v1395_v9 = vadd.f32 %v1386_v8, %v5734_v51  ;;  %v1347_v10 = vpop.f32.mrb[25].mxu0  ;;  %v1388_v11 = vpop.f32.mrb[25].mxu1 }
 0x40c   : > { %v1394_v1 = vadd.f32 %v1347_v10, %v5736_v61  ;;  %v1396_v12 = vadd.f32 %v1388_v11, %v6994_v6  ;;  %v1349_v4 = vpop.f32.mrb[26].mxu0  ;;  %v1390_v13 = vpop.f32.mrb[26].mxu1 }
 0x40d   : > { %v4006_v14 = vmul.f32 -1.442695, %v1393_v7  ;;  %v1350_v63 = vpop.f32.mrb[27].mxu0  ;;  %v1391_v17 = vpop.f32.mrb[27].mxu1  ;;  %v4008_v20 = vmul.f32 -1.442695, %v1395_v9 }
 0x40e   : > { %v4007_v19 = vmul.f32 -1.442695, %v1394_v1 }
 0x40f   : > { %4490 = vpow2.f32 %v4006_v14 }
 0x410   : > { %4492 = vpow2.f32 %v4007_v19  ;;  %v5946_v19 = vld [vmem:[#allocation13] ss:$16 sps:$4 sm:$0xff]  }
 0x411   : > { %4494 = vtanh.f32 %v1396_v12 }
 0x412   : > { %4496 = vpow2.f32 %v4008_v20  ;;  %v5949_v20 = vld [vmem:[#allocation13 + $0x8] ss:$16 sps:$4 sm:$0xff]  }
 0x419   : > { %v4491_v21 = vpop.eup %4490 }
 0x41a   : > { %v1406_v29 = vadd.f32 1.0, %v4491_v21  ;;  %v4493_v43 = vpop.eup %4492  ;;  %v5952_v21 = vld [vmem:[#allocation13 + $0x24] ss:$16 sps:$4 sm:$0xff]  }
 0x41b   : > { %v1407_v51 = vadd.f32 1.0, %v4493_v43  ;;  %v4495_v61 = vpop.eup %4494  ;;  %v5960_v43 = vld [vmem:[#allocation13 + $0x20] ss:$16 sps:$4 sm:$0xff]  }
 0x41c   : > { %4498 = vrcp.f32 %v1406_v29  ;;  %v4497_v15 = vpop.eup %4496  ;;  %v5955_v29 = vld [vmem:[#allocation13 + $0x2c] ss:$16 sps:$4 sm:$0xff]  }
 0x41d   : > { %4500 = vrcp.f32 %v1407_v51  ;;  %v1408_v62 = vadd.f32 1.0, %v4497_v15  ;;  %v5963_v51 = vld [vmem:[#allocation13 + $0x28] ss:$16 sps:$4 sm:$0xff]   ;;  %v5969_v15 = vld [vmem:[#allocation13 + $0x4c] ss:$16 sps:$4 sm:$0xff]  }
 0x41f   : > { %4502 = vrcp.f32 %v1408_v62  ;;  %v5981_v62 = vld [vmem:[#allocation13 + $0x6c] ss:$16 sps:$4 sm:$0xff]  }
 0x426   : > { %v4499_v32 = vpop.eup %4498 }
 0x427   : > { %v1417_v18 = vmul.f32 %v4499_v32, %v4495_v61  ;;  %v4501_v40 = vpop.eup %4500  ;;  %v5966_v61 = vld [vmem:[#allocation13 + $0x44] ss:$16 sps:$4 sm:$0xff]   ;;  %v5972_v32 = vld [vmem:[#allocation13 + $0x40] ss:$16 sps:$4 sm:$0xff]  }
 0x428   : > { %v1416_v2 = vmul.f32 %v4501_v40, %v5843_v0  ;;  %v5978_v40 = vld [vmem:[#allocation13 + $0x64] ss:$16 sps:$4 sm:$0xff]  }
 0x429   : > { %v4503_v28 = vpop.eup %4502 }
 0x42a   : > { %v5889_v5 = vadd.f32 %v1417_v18, %v1416_v2  ;;  %v5975_v18 = vld [vmem:[#allocation13 + $0x48] ss:$16 sps:$4 sm:$0xff]   ;;  %v5984_v2 = vld [vmem:[#allocation13 + $0x60] ss:$16 sps:$4 sm:$0xff]  }
 0x42c   : > { %4504 = vtanh.f32 %v5889_v5 }
 0x436   : > { %v4505_v56 = vpop.eup %4504 }
 0x437   : > { %v5892_v50 = vmul.f32 %v4505_v56, %v4503_v28  ;;  %v5990_v28 = vld [vmem:[#allocation13 + $0x84] ss:$16 sps:$4 sm:$0xff]   ;;  %v5993_v56 = vld [vmem:[#allocation13 + $0x8c] ss:$16 sps:$4 sm:$0xff]  }
 0x439   : > { %v1428_v8 = vpack.c.bf16 %v5892_v50, %v5892_v50 }
 0x43b   : > { %1462 = vmatmul.mubr.bf16.vlgmr.msra.gmra.mrb[28].mxu0 %v1428_v8  ;;  %1503 = vmatmul.mubr.bf16.vlgmr.msra.gmra.mrb[28].mxu1 %v1428_v8  ;;  %v5996_v8 = vld [vmem:[#allocation13 + $0x80] ss:$16 sps:$4 sm:$0xff]  }
 0x43c   : > { %1548 = vmatpush1.bf16.msra.mxu0 %v5544_v22  ;;  %1589 = vmatpush1.bf16.msra.mxu1 %v5546_v23  ;;  %v5928_v22 = vld [vmem:[#allocation13 + $0x4] ss:$16 sps:$4 sm:$0xff]   ;;  %v5931_v23 = vld [vmem:[#allocation13 + $0xc] ss:$16 sps:$4 sm:$0xff]  }
 0x43d   : > { %1549 = vmatprep.subr.bf16.mxu0 %v5548_v24  ;;  %1590 = vmatprep.subr.bf16.mxu1 %v5552_v25 }
 0x43e   : > { %1579 = vmatprep.mubr.bf16.mxu0 %v6993_v39  ;;  %1620 = vmatprep.mubr.bf16.mxu1 %v6993_v39 }
 0x440   : > { %1550 = vmatpush1.bf16.msra.mxu0 %v5554_v26  ;;  %1591 = vmatpush1.bf16.msra.mxu1 %v5558_v27  ;;  %v6995_v26 = vld [vmem:[#allocation36_spill] sm:$0xff] }
 0x441   : > { %1551 = vmatprep.subr.bf16.mxu0 %v5564_v30  ;;  %1592 = vmatprep.subr.bf16.mxu1 %v5568_v31  ;;  %v6996_v30 = vld [vmem:[#allocation37_spill] sm:$0xff] }
 0x444   : > { %1552 = vmatpush1.bf16.msra.mxu0 %v5572_v33  ;;  %1593 = vmatpush1.bf16.msra.mxu1 %v5576_v34 }
 0x445   : > { %1553 = vmatprep.subr.bf16.mxu0 %v5580_v35  ;;  %1594 = vmatprep.subr.bf16.mxu1 %v5582_v36  ;;  %v6997_v35 = vld [vmem:[#allocation38_spill] sm:$0xff] }
 0x448   : > { %1554 = vmatpush1.bf16.msra.mxu0 %v5584_v37  ;;  %1595 = vmatpush1.bf16.msra.mxu1 %v5588_v38  ;;  %v6998_v37 = vld [vmem:[#allocation39_spill] sm:$0xff] }
 0x449   : > { %1555 = vmatprep.subr.bf16.mxu0 %v5594_v41  ;;  %1596 = vmatprep.subr.bf16.mxu1 %v5598_v42 }
 0x44c   : > { %1556 = vmatpush1.bf16.msra.mxu0 %v5602_v44  ;;  %1597 = vmatpush1.bf16.msra.mxu1 %v5604_v45 }
 0x44d   : > { %1557 = vmatprep.subr.bf16.mxu0 %v5608_v46  ;;  %1598 = vmatprep.subr.bf16.mxu1 %v5612_v47 }
 0x450   : > { %1558 = vmatpush1.bf16.msra.mxu0 %v5614_v48  ;;  %1599 = vmatpush1.bf16.msra.mxu1 %v5616_v49 }
 0x451   : > { %1559 = vmatprep.subr.bf16.mxu0 %v5622_v52  ;;  %1600 = vmatprep.subr.bf16.mxu1 %v5624_v53 }
 0x454   : > { %1560 = vmatpush1.bf16.msra.mxu0 %v5632_v54  ;;  %1601 = vmatpush1.bf16.msra.mxu1 %v5634_v55 }
 0x455   : > { %1561 = vmatprep.subr.bf16.mxu0 %v5636_v57  ;;  %1602 = vmatprep.subr.bf16.mxu1 %v5638_v58 }
 0x458   : > { %1562 = vmatpush1.bf16.msra.mxu0 %v5644_v59  ;;  %1603 = vmatpush1.bf16.msra.mxu1 %v5646_v60 }
 0x459   : > { %1665 = vmatprep.subr.bf16.mxu0 %v5928_v22  ;;  %1706 = vmatprep.subr.bf16.mxu1 %v5931_v23 }
 0x50e   : > { %v1463_v24 = vpop.f32.mrb[28].mxu0  ;;  %v1504_v25 = vpop.f32.mrb[28].mxu1 }
 0x50f   : > { %v1511_v27 = vadd.f32 %v1463_v24, %v6995_v26  ;;  %v1513_v31 = vadd.f32 %v1504_v25, %v6996_v30  ;;  %v1465_v33 = vpop.f32.mrb[29].mxu0  ;;  %v1506_v34 = vpop.f32.mrb[29].mxu1  ;;  %v5999_v24 = vld [vmem:[#allocation13 + $0x88] ss:$16 sps:$4 sm:$0xff]   ;;  %v6002_v25 = vld [vmem:[#allocation13 + $0xa4] ss:$16 sps:$4 sm:$0xff]  }
 0x510   : > { %v1512_v36 = vadd.f32 %v1465_v33, %v6997_v35  ;;  %v1514_v38 = vadd.f32 %v1506_v34, %v6998_v37  ;;  %v1467_v41 = vpop.f32.mrb[30].mxu0  ;;  %v1508_v42 = vpop.f32.mrb[30].mxu1  ;;  %v6005_v26 = vld [vmem:[#allocation13 + $0xac] ss:$16 sps:$4 sm:$0xff]   ;;  %v6011_v30 = vld [vmem:[#allocation13 + $0xa8] ss:$16 sps:$4 sm:$0xff]  }
 0x511   : > { %v4009_v44 = vmul.f32 -1.442695, %v1511_v27  ;;  %v1468_v45 = vpop.f32.mrb[31].mxu0  ;;  %v1509_v46 = vpop.f32.mrb[31].mxu1  ;;  %v4011_v48 = vmul.f32 -1.442695, %v1513_v31 }
 0x512   : > { %v4010_v47 = vmul.f32 -1.442695, %v1512_v36  ;;  %v6008_v27 = vld [vmem:[#allocation13 + $0xa0] ss:$16 sps:$4 sm:$0xff]   ;;  %v6014_v31 = vld [vmem:[#allocation13 + $0xc4] ss:$16 sps:$4 sm:$0xff]  }
 0x513   : > { %4506 = vpow2.f32 %v4009_v44  ;;  %v6017_v33 = vld [vmem:[#allocation13 + $0xcc] ss:$16 sps:$4 sm:$0xff]   ;;  %v6999_v36 = vld [vmem:[#allocation40_spill] sm:$0xff]  ;;  %v7001_v42 = vld [vmem:[#allocation42_spill] sm:$0xff] }
 0x514   : > { %4508 = vpow2.f32 %v4010_v47  ;;  %v7002_v44 = vld [vmem:[#allocation43_spill] sm:$0xff] }
 0x515   : > { %4510 = vtanh.f32 %v1514_v38  ;;  %v7000_v38 = vld [vmem:[#allocation41_spill] sm:$0xff] }
 0x516   : > { %4512 = vpow2.f32 %v4011_v48 }
 0x51d   : > { %v4507_v49 = vpop.eup %4506 }
 0x51e   : > { %v1524_v52 = vadd.f32 1.0, %v4507_v49  ;;  %v4509_v53 = vpop.eup %4508 }
 0x51f   : > { %v1525_v0 = vadd.f32 1.0, %v4509_v53  ;;  %v4511_v7 = vpop.eup %4510 }
 0x520   : > { %4514 = vrcp.f32 %v1524_v52  ;;  %v4513_v9 = vpop.eup %4512 }
 0x521   : > { %4516 = vrcp.f32 %v1525_v0  ;;  %v1526_v6 = vadd.f32 1.0, %v4513_v9 }
 0x523   : > { %4518 = vrcp.f32 %v1526_v6 }
 0x52a   : > { %v4515_v10 = vpop.eup %4514 }
 0x52b   : > { %v1535_v11 = vmul.f32 %v4515_v10, %v4511_v7  ;;  %v4517_v1 = vpop.eup %4516 }
 0x52c   : > { %v1534_v12 = vmul.f32 %v4517_v1, %v5889_v5  ;;  %v5987_v5 = vld [vmem:[#allocation13 + $0x68] ss:$16 sps:$4 sm:$0xff]  }
 0x52d   : > { %v4519_v13 = vpop.eup %4518 }
 0x52e   : > { %v5939_v4 = vadd.f32 %v1535_v11, %v1534_v12 }
 0x530   : > { %4520 = vtanh.f32 %v5939_v4 }
 0x53a   : > { %v4521_v14 = vpop.eup %4520 }
 0x53b   : > { %v5942_v63 = vmul.f32 %v4521_v14, %v4519_v13 }
 0x53d   : > { %v1546_v17 = vpack.c.bf16 %v5942_v63, %v5942_v63 }
 0x53f   : > { %1580 = vmatmul.mubr.bf16.vlgmr.msra.gmra.mrb[32].mxu0 %v1546_v17  ;;  %1621 = vmatmul.mubr.bf16.vlgmr.msra.gmra.mrb[32].mxu1 %v1546_v17 }
 0x540   : > { %1666 = vmatpush1.bf16.msra.mxu0 %v5946_v19  ;;  %1707 = vmatpush1.bf16.msra.mxu1 %v5949_v20 }
 0x541   : > { %1667 = vmatprep.subr.bf16.mxu0 %v5952_v21  ;;  %1708 = vmatprep.subr.bf16.mxu1 %v5955_v29 }
 0x542   : > { %1697 = vmatprep.mubr.bf16.mxu0 %v6993_v39  ;;  %1738 = vmatprep.mubr.bf16.mxu1 %v6993_v39 }
 0x544   : > { %1668 = vmatpush1.bf16.msra.mxu0 %v5960_v43  ;;  %1709 = vmatpush1.bf16.msra.mxu1 %v5963_v51 }
 0x545   : > { %1669 = vmatprep.subr.bf16.mxu0 %v5966_v61  ;;  %1710 = vmatprep.subr.bf16.mxu1 %v5969_v15 }
 0x548   : > { %1670 = vmatpush1.bf16.msra.mxu0 %v5972_v32  ;;  %1711 = vmatpush1.bf16.msra.mxu1 %v5975_v18 }
 0x549   : > { %1671 = vmatprep.subr.bf16.mxu0 %v5978_v40  ;;  %1712 = vmatprep.subr.bf16.mxu1 %v5981_v62 }
 0x54c   : > { %1672 = vmatpush1.bf16.msra.mxu0 %v5984_v2  ;;  %1713 = vmatpush1.bf16.msra.mxu1 %v5987_v5 }
 0x54d   : > { %1673 = vmatprep.subr.bf16.mxu0 %v5990_v28  ;;  %1714 = vmatprep.subr.bf16.mxu1 %v5993_v56 }
 0x550   : > { %1674 = vmatpush1.bf16.msra.mxu0 %v5996_v8  ;;  %1715 = vmatpush1.bf16.msra.mxu1 %v5999_v24 }
 0x551   : > { %1675 = vmatprep.subr.bf16.mxu0 %v6002_v25  ;;  %1716 = vmatprep.subr.bf16.mxu1 %v6005_v26 }
 0x554   : > { %1676 = vmatpush1.bf16.msra.mxu0 %v6008_v27  ;;  %1717 = vmatpush1.bf16.msra.mxu1 %v6011_v30 }
 0x555   : > { %1677 = vmatprep.subr.bf16.mxu0 %v6014_v31  ;;  %1718 = vmatprep.subr.bf16.mxu1 %v6017_v33 }
 0x558   : > { %1678 = vmatpush1.bf16.msra.mxu0 %v5632_v54  ;;  %1719 = vmatpush1.bf16.msra.mxu1 %v5634_v55 }
 0x559   : > { %1679 = vmatprep.subr.bf16.mxu0 %v5636_v57  ;;  %1720 = vmatprep.subr.bf16.mxu1 %v5638_v58 }
 0x55c   : > { %1680 = vmatpush1.bf16.msra.mxu0 %v5644_v59  ;;  %1721 = vmatpush1.bf16.msra.mxu1 %v5646_v60 }
 0x55d   : > { %1783 = vmatprep.subr.bf16.mxu0 %v5928_v22  ;;  %1824 = vmatprep.subr.bf16.mxu1 %v5931_v23 }
 0x612   : > { %v1581_v34 = vpop.f32.mrb[32].mxu0  ;;  %v1622_v35 = vpop.f32.mrb[32].mxu1 }
 0x613   : > { %v1629_v37 = vadd.f32 %v1581_v34, %v6999_v36  ;;  %v1631_v54 = vadd.f32 %v1622_v35, %v7000_v38  ;;  %v1583_v41 = vpop.f32.mrb[33].mxu0  ;;  %v1624_v55 = vpop.f32.mrb[33].mxu1  ;;  %v6072_v38 = vld [vmem:[#allocation13 + $0xe4] ss:$16 sps:$4 sm:$0xff]  }
 0x614   : > { %v1630_v57 = vadd.f32 %v1583_v41, %v7001_v42  ;;  %v1632_v58 = vadd.f32 %v1624_v55, %v7002_v44  ;;  %v1585_v45 = vpop.f32.mrb[34].mxu0  ;;  %v1626_v59 = vpop.f32.mrb[34].mxu1  ;;  %v6078_v41 = vld [vmem:[#allocation13 + $0xe0] ss:$16 sps:$4 sm:$0xff]   ;;  %v6081_v55 = vld [vmem:[#allocation13 + $0xe8] ss:$16 sps:$4 sm:$0xff]  }
 0x615   : > { %v4012_v46 = vmul.f32 -1.442695, %v1629_v37  ;;  %v1586_v60 = vpop.f32.mrb[35].mxu0  ;;  %v1627_v47 = vpop.f32.mrb[35].mxu1  ;;  %v4014_v49 = vmul.f32 -1.442695, %v1631_v54 }
 0x616   : > { %v4013_v48 = vmul.f32 -1.442695, %v1630_v57  ;;  %v6069_v37 = vld [vmem:[#allocation13 + $0xc8] ss:$16 sps:$4 sm:$0xff]   ;;  %v6075_v54 = vld [vmem:[#allocation13 + $0xec] ss:$16 sps:$4 sm:$0xff]  }
 0x617   : > { %4522 = vpow2.f32 %v4012_v46  ;;  %v7003_v44 = vld [vmem:[#allocation44_spill] sm:$0xff]  ;;  %v7004_v45 = vld [vmem:[#allocation45_spill] sm:$0xff]  ;;  %v7005_v47 = vld [vmem:[#allocation46_spill] sm:$0xff] }
 0x618   : > { %4524 = vpow2.f32 %v4013_v48 }
 0x619   : > { %4526 = vtanh.f32 %v1632_v58 }
 0x61a   : > { %4528 = vpow2.f32 %v4014_v49  ;;  %v7006_v49 = vld [vmem:[#allocation47_spill] sm:$0xff] }
 0x621   : > { %v4523_v52 = vpop.eup %4522 }
 0x622   : > { %v1642_v53 = vadd.f32 1.0, %v4523_v52  ;;  %v4525_v0 = vpop.eup %4524 }
 0x623   : > { %v1643_v7 = vadd.f32 1.0, %v4525_v0  ;;  %v4527_v9 = vpop.eup %4526 }
 0x624   : > { %4530 = vrcp.f32 %v1642_v53  ;;  %v4529_v10 = vpop.eup %4528 }
 0x625   : > { %4532 = vrcp.f32 %v1643_v7  ;;  %v1644_v12 = vadd.f32 1.0, %v4529_v10 }
 0x627   : > { %4534 = vrcp.f32 %v1644_v12 }
 0x62e   : > { %v4531_v11 = vpop.eup %4530 }
 0x62f   : > { %v1653_v1 = vmul.f32 %v4531_v11, %v4527_v9  ;;  %v4533_v6 = vpop.eup %4532 }
 0x630   : > { %v1652_v13 = vmul.f32 %v4533_v6, %v5939_v4  ;;  %v6066_v4 = vld [vmem:[#allocation13 + $0xc0] ss:$16 sps:$4 sm:$0xff]  }
 0x631   : > { %v4535_v17 = vpop.eup %4534 }
 0x632   : > { %v6033_v14 = vadd.f32 %v1653_v1, %v1652_v13 }
 0x634   : > { %4536 = vtanh.f32 %v6033_v14 }
 0x63e   : > { %v4537_v34 = vpop.eup %4536 }
 0x63f   : > { %v6036_v35 = vmul.f32 %v4537_v34, %v4535_v17 }
 0x641   : > { %v1664_v36 = vpack.c.bf16 %v6036_v35, %v6036_v35 }
 0x643   : > { %1698 = vmatmul.mubr.bf16.vlgmr.msra.gmra.mrb[36].mxu0 %v1664_v36  ;;  %1739 = vmatmul.mubr.bf16.vlgmr.msra.gmra.mrb[36].mxu1 %v1664_v36 }
 0x644   : > { %1784 = vmatpush1.bf16.msra.mxu0 %v5946_v19  ;;  %1825 = vmatpush1.bf16.msra.mxu1 %v5949_v20 }
 0x645   : > { %1785 = vmatprep.subr.bf16.mxu0 %v5952_v21  ;;  %1826 = vmatprep.subr.bf16.mxu1 %v5955_v29 }
 0x646   : > { %1815 = vmatprep.mubr.bf16.mxu0 %v6993_v39  ;;  %1856 = vmatprep.mubr.bf16.mxu1 %v6993_v39 }
 0x648   : > { %1786 = vmatpush1.bf16.msra.mxu0 %v5960_v43  ;;  %1827 = vmatpush1.bf16.msra.mxu1 %v5963_v51 }
 0x649   : > { %1787 = vmatprep.subr.bf16.mxu0 %v5966_v61  ;;  %1828 = vmatprep.subr.bf16.mxu1 %v5969_v15 }
 0x64c   : > { %1788 = vmatpush1.bf16.msra.mxu0 %v5972_v32  ;;  %1829 = vmatpush1.bf16.msra.mxu1 %v5975_v18 }
 0x64d   : > { %1789 = vmatprep.subr.bf16.mxu0 %v5978_v40  ;;  %1830 = vmatprep.subr.bf16.mxu1 %v5981_v62 }
 0x650   : > { %1790 = vmatpush1.bf16.msra.mxu0 %v5984_v2  ;;  %1831 = vmatpush1.bf16.msra.mxu1 %v5987_v5 }
 0x651   : > { %1791 = vmatprep.subr.bf16.mxu0 %v5990_v28  ;;  %1832 = vmatprep.subr.bf16.mxu1 %v5993_v56 }
 0x654   : > { %1792 = vmatpush1.bf16.msra.mxu0 %v5996_v8  ;;  %1833 = vmatpush1.bf16.msra.mxu1 %v5999_v24 }
 0x655   : > { %1793 = vmatprep.subr.bf16.mxu0 %v6002_v25  ;;  %1834 = vmatprep.subr.bf16.mxu1 %v6005_v26 }
 0x658   : > { %1794 = vmatpush1.bf16.msra.mxu0 %v6008_v27  ;;  %1835 = vmatpush1.bf16.msra.mxu1 %v6011_v30 }
 0x659   : > { %1795 = vmatprep.subr.bf16.mxu0 %v6014_v31  ;;  %1836 = vmatprep.subr.bf16.mxu1 %v6017_v33 }
 0x65c   : > { %1796 = vmatpush1.bf16.msra.mxu0 %v6066_v4  ;;  %1837 = vmatpush1.bf16.msra.mxu1 %v6069_v37 }
 0x65d   : > { %1797 = vmatprep.subr.bf16.mxu0 %v6072_v38  ;;  %1838 = vmatprep.subr.bf16.mxu1 %v6075_v54 }
 0x660   : > { %1798 = vmatpush1.bf16.msra.mxu0 %v6078_v41  ;;  %1839 = vmatpush1.bf16.msra.mxu1 %v6081_v55 }
 0x661   : > { %1901 = vmatprep.subr.bf16.mxu0 %v5928_v22  ;;  %1942 = vmatprep.subr.bf16.mxu1 %v5931_v23 }
 0x716   : > { %v1699_v42 = vpop.f32.mrb[36].mxu0  ;;  %v1740_v57 = vpop.f32.mrb[36].mxu1 }
 0x717   : > { %v1747_v58 = vadd.f32 %v1699_v42, %v7003_v44  ;;  %v1749_v59 = vadd.f32 %v1740_v57, %v7004_v45  ;;  %v1701_v46 = vpop.f32.mrb[37].mxu0  ;;  %v1742_v60 = vpop.f32.mrb[37].mxu1 }
 0x718   : > { %v1748_v48 = vadd.f32 %v1701_v46, %v7005_v47  ;;  %v1750_v52 = vadd.f32 %v1742_v60, %v7006_v49  ;;  %v1703_v53 = vpop.f32.mrb[38].mxu0  ;;  %v1744_v0 = vpop.f32.mrb[38].mxu1 }
 0x719   : > { %v4015_v7 = vmul.f32 -1.442695, %v1747_v58  ;;  %v1704_v9 = vpop.f32.mrb[39].mxu0  ;;  %v1745_v10 = vpop.f32.mrb[39].mxu1  ;;  %v4017_v23 = vmul.f32 -1.442695, %v1749_v59 }
 0x71a   : > { %v4016_v22 = vmul.f32 -1.442695, %v1748_v48  ;;  %v4354_v0 = vld [vmem:[#allocation12] ss:$16 sps:$4 sm:$0xff]   ;;  %v4362_v10 = vld [vmem:[#allocation12 + $0x24] ss:$16 sps:$4 sm:$0xff]  }
 0x71b   : > { %4538 = vpow2.f32 %v4015_v7  ;;  %v4357_v7 = vld [vmem:[#allocation12 + $0x8] ss:$16 sps:$4 sm:$0xff]  }
 0x71c   : > { %4540 = vpow2.f32 %v4016_v22  ;;  %v4365_v22 = vld [vmem:[#allocation12 + $0x2c] ss:$16 sps:$4 sm:$0xff]  }
 0x71d   : > { %4542 = vtanh.f32 %v1750_v52 }
 0x71e   : > { %4544 = vpow2.f32 %v4017_v23  ;;  %v4360_v23 = vld [vmem:[#allocation12 + $0x20] ss:$16 sps:$4 sm:$0xff]  }
 0x725   : > { %v4539_v11 = vpop.eup %4538 }
 0x726   : > { %v1760_v1 = vadd.f32 1.0, %v4539_v11  ;;  %v4541_v6 = vpop.eup %4540  ;;  %v4363_v11 = vld [vmem:[#allocation12 + $0x28] ss:$16 sps:$4 sm:$0xff]  }
 0x727   : > { %v1761_v12 = vadd.f32 1.0, %v4541_v6  ;;  %v4543_v13 = vpop.eup %4542  ;;  %v4371_v6 = vld [vmem:[#allocation12 + $0x4c] ss:$16 sps:$4 sm:$0xff]  }
 0x728   : > { %4546 = vrcp.f32 %v1760_v1  ;;  %v4545_v17 = vpop.eup %4544  ;;  %v4368_v1 = vld [vmem:[#allocation12 + $0x44] ss:$16 sps:$4 sm:$0xff]  }
 0x729   : > { %4548 = vrcp.f32 %v1761_v12  ;;  %v1762_v57 = vadd.f32 1.0, %v4545_v17  ;;  %v4366_v12 = vld [vmem:[#allocation12 + $0x40] ss:$16 sps:$4 sm:$0xff]   ;;  %v4374_v17 = vld [vmem:[#allocation12 + $0x64] ss:$16 sps:$4 sm:$0xff]  }
 0x72b   : > { %4550 = vrcp.f32 %v1762_v57  ;;  %v4380_v57 = vld [vmem:[#allocation12 + $0x84] ss:$16 sps:$4 sm:$0xff]  }
 0x732   : > { %v4547_v34 = vpop.eup %4546 }
 0x733   : > { %v1771_v36 = vmul.f32 %v4547_v34, %v4543_v13  ;;  %v4549_v42 = vpop.eup %4548  ;;  %v4369_v13 = vld [vmem:[#allocation12 + $0x48] ss:$16 sps:$4 sm:$0xff]   ;;  %v4377_v34 = vld [vmem:[#allocation12 + $0x6c] ss:$16 sps:$4 sm:$0xff]  }
 0x734   : > { %v1770_v44 = vmul.f32 %v4549_v42, %v6033_v14  ;;  %v4375_v42 = vld [vmem:[#allocation12 + $0x68] ss:$16 sps:$4 sm:$0xff]  }
 0x735   : > { %v4551_v45 = vpop.eup %4550 }
 0x736   : > { %v6091_v58 = vadd.f32 %v1771_v36, %v1770_v44  ;;  %v4372_v36 = vld [vmem:[#allocation12 + $0x60] ss:$16 sps:$4 sm:$0xff]   ;;  %v4383_v44 = vld [vmem:[#allocation12 + $0x8c] ss:$16 sps:$4 sm:$0xff]  }
 0x738   : > { %4552 = vtanh.f32 %v6091_v58 }
 0x742   : > { %v4553_v59 = vpop.eup %4552 }
 0x743   : > { %v6094_v46 = vmul.f32 %v4553_v59, %v4551_v45  ;;  %v4381_v45 = vld [vmem:[#allocation12 + $0x88] ss:$16 sps:$4 sm:$0xff]   ;;  %v4386_v59 = vld [vmem:[#allocation12 + $0xa4] ss:$16 sps:$4 sm:$0xff]  }
 0x745   : > { %v1782_v60 = vpack.c.bf16 %v6094_v46, %v6094_v46 }
 0x747   : > { %1816 = vmatmul.mubr.bf16.vlgmr.msra.gmra.mrb[40].mxu0 %v1782_v60  ;;  %1857 = vmatmul.mubr.bf16.vlgmr.msra.gmra.mrb[40].mxu1 %v1782_v60  ;;  %v4389_v60 = vld [vmem:[#allocation12 + $0xac] ss:$16 sps:$4 sm:$0xff]  }
 0x748   : > { %1902 = vmatpush1.bf16.msra.mxu0 %v5946_v19  ;;  %1943 = vmatpush1.bf16.msra.mxu1 %v5949_v20  ;;  %v4356_v19 = vld [vmem:[#allocation12 + $0x4] ss:$16 sps:$4 sm:$0xff]   ;;  %v4359_v20 = vld [vmem:[#allocation12 + $0xc] ss:$16 sps:$4 sm:$0xff]  }
 0x749   : > { %1903 = vmatprep.subr.bf16.mxu0 %v5952_v21  ;;  %1944 = vmatprep.subr.bf16.mxu1 %v5955_v29 }
 0x74a   : > { %1933 = vmatprep.mubr.bf16.mxu0 %v6993_v39  ;;  %1974 = vmatprep.mubr.bf16.mxu1 %v6993_v39 }
 0x74c   : > { %1904 = vmatpush1.bf16.msra.mxu0 %v5960_v43  ;;  %1945 = vmatpush1.bf16.msra.mxu1 %v5963_v51  ;;  %v7007_v43 = vld [vmem:[#allocation48_spill] sm:$0xff] }
 0x74d   : > { %1905 = vmatprep.subr.bf16.mxu0 %v5966_v61  ;;  %1946 = vmatprep.subr.bf16.mxu1 %v5969_v15  ;;  %v7008_v61 = vld [vmem:[#allocation49_spill] sm:$0xff] }
 0x750   : > { %1906 = vmatpush1.bf16.msra.mxu0 %v5972_v32  ;;  %1947 = vmatpush1.bf16.msra.mxu1 %v5975_v18 }
 0x751   : > { %1907 = vmatprep.subr.bf16.mxu0 %v5978_v40  ;;  %1948 = vmatprep.subr.bf16.mxu1 %v5981_v62  ;;  %v7009_v40 = vld [vmem:[#allocation50_spill] sm:$0xff] }
 0x754   : > { %1908 = vmatpush1.bf16.msra.mxu0 %v5984_v2  ;;  %1949 = vmatpush1.bf16.msra.mxu1 %v5987_v5  ;;  %v7010_v2 = vld [vmem:[#allocation51_spill] sm:$0xff] }
 0x755   : > { %1909 = vmatprep.subr.bf16.mxu0 %v5990_v28  ;;  %1950 = vmatprep.subr.bf16.mxu1 %v5993_v56 }
 0x758   : > { %1910 = vmatpush1.bf16.msra.mxu0 %v5996_v8  ;;  %1951 = vmatpush1.bf16.msra.mxu1 %v5999_v24 }
 0x759   : > { %1911 = vmatprep.subr.bf16.mxu0 %v6002_v25  ;;  %1952 = vmatprep.subr.bf16.mxu1 %v6005_v26 }
 0x75c   : > { %1912 = vmatpush1.bf16.msra.mxu0 %v6008_v27  ;;  %1953 = vmatpush1.bf16.msra.mxu1 %v6011_v30 }
 0x75d   : > { %1913 = vmatprep.subr.bf16.mxu0 %v6014_v31  ;;  %1954 = vmatprep.subr.bf16.mxu1 %v6017_v33 }
 0x760   : > { %1914 = vmatpush1.bf16.msra.mxu0 %v6066_v4  ;;  %1955 = vmatpush1.bf16.msra.mxu1 %v6069_v37 }
 0x761   : > { %1915 = vmatprep.subr.bf16.mxu0 %v6072_v38  ;;  %1956 = vmatprep.subr.bf16.mxu1 %v6075_v54 }
 0x764   : > { %1916 = vmatpush1.bf16.msra.mxu0 %v6078_v41  ;;  %1957 = vmatpush1.bf16.msra.mxu1 %v6081_v55 }
 0x765   : > { %2242 = vmatprep.subr.bf16.mxu0 %v4356_v19  ;;  %2315 = vmatprep.subr.bf16.mxu1 %v4359_v20  ;;  %v4384_v19 = vld [vmem:[#allocation12 + $0xa0] ss:$16 sps:$4 sm:$0xff]   ;;  %v4387_v20 = vld [vmem:[#allocation12 + $0xa8] ss:$16 sps:$4 sm:$0xff]  }
 0x81a   : > { %v1817_v21 = vpop.f32.mrb[40].mxu0  ;;  %v1858_v29 = vpop.f32.mrb[40].mxu1 }
 0x81b   : > { %v1865_v51 = vadd.f32 %v1817_v21, %v7007_v43  ;;  %v1867_v15 = vadd.f32 %v1858_v29, %v7008_v61  ;;  %v1819_v32 = vpop.f32.mrb[41].mxu0  ;;  %v1860_v18 = vpop.f32.mrb[41].mxu1  ;;  %v4392_v21 = vld [vmem:[#allocation12 + $0xc4] ss:$16 sps:$4 sm:$0xff]   ;;  %v4395_v29 = vld [vmem:[#allocation12 + $0xcc] ss:$16 sps:$4 sm:$0xff]  }
 0x81c   : > { %v1866_v62 = vadd.f32 %v1819_v32, %v7009_v40  ;;  %v1868_v5 = vadd.f32 %v1860_v18, %v7010_v2  ;;  %v1821_v28 = vpop.f32.mrb[42].mxu0  ;;  %v1862_v56 = vpop.f32.mrb[42].mxu1  ;;  %v4390_v43 = vld [vmem:[#allocation12 + $0xc0] ss:$16 sps:$4 sm:$0xff]   ;;  %v4398_v61 = vld [vmem:[#allocation12 + $0xe4] ss:$16 sps:$4 sm:$0xff]   ;;  %v2023_v40 = vpack.c.bf16 %v5846_v3, %v5800_v16  ;;  %v2025_v2 = vpack.c.bf16 %v6094_v46, %v6036_v35 }
 0x81d   : > { %v4018_v8 = vmul.f32 -1.442695, %v1865_v51  ;;  %v1822_v24 = vpop.f32.mrb[43].mxu0  ;;  %v1863_v25 = vpop.f32.mrb[43].mxu1  ;;  %v4020_v27 = vmul.f32 -1.442695, %v1867_v15 }
 0x81e   : > { %v4019_v26 = vmul.f32 -1.442695, %v1866_v62  ;;  %v4393_v51 = vld [vmem:[#allocation12 + $0xc8] ss:$16 sps:$4 sm:$0xff]   ;;  %v4401_v15 = vld [vmem:[#allocation12 + $0xec] ss:$16 sps:$4 sm:$0xff]   ;;  %v2024_v62 = vpack.c.bf16 %v5942_v63, %v5892_v50 }
 0x81f   : > { %4554 = vpow2.f32 %v4018_v8  ;;  %v4396_v32 = vld [vmem:[#allocation12 + $0xe0] ss:$16 sps:$4 sm:$0xff]   ;;  %v4399_v18 = vld [vmem:[#allocation12 + $0xe8] ss:$16 sps:$4 sm:$0xff]   ;;  %v6156_v16 = vld [vmem:[#allocation13 + $0x104] ss:$16 sps:$4 sm:$0xff]  }
 0x820   : > { %4556 = vpow2.f32 %v4019_v26  ;;  %v6158_v3 = vld [vmem:[#allocation13 + $0x10c] ss:$16 sps:$4 sm:$0xff]   ;;  %v6160_v50 = vld [vmem:[#allocation13 + $0x100] ss:$16 sps:$4 sm:$0xff]   ;;  %v6162_v63 = vld [vmem:[#allocation13 + $0x108] ss:$16 sps:$4 sm:$0xff]  }
 0x821   : > { %4558 = vtanh.f32 %v1868_v5  ;;  %v6168_v35 = vld [vmem:[#allocation13 + $0x124] ss:$16 sps:$4 sm:$0xff]   ;;  %v6170_v46 = vld [vmem:[#allocation13 + $0x12c] ss:$16 sps:$4 sm:$0xff]   ;;  %v6172_v5 = vld [vmem:[#allocation13 + $0x120] ss:$16 sps:$4 sm:$0xff]  }
 0x822   : > { %4560 = vpow2.f32 %v4020_v27  ;;  %v6174_v28 = vld [vmem:[#allocation13 + $0x128] ss:$16 sps:$4 sm:$0xff]   ;;  %v6180_v56 = vld [vmem:[#allocation13 + $0x144] ss:$16 sps:$4 sm:$0xff]   ;;  %v6182_v8 = vld [vmem:[#allocation13 + $0x14c] ss:$16 sps:$4 sm:$0xff]  }
 0x823   : > { %v6184_v24 = vld [vmem:[#allocation13 + $0x140] ss:$16 sps:$4 sm:$0xff]   ;;  %v6186_v25 = vld [vmem:[#allocation13 + $0x148] ss:$16 sps:$4 sm:$0xff]   ;;  %v6192_v26 = vld [vmem:[#allocation13 + $0x164] ss:$16 sps:$4 sm:$0xff]  }
 0x824   : > { %v6194_v27 = vld [vmem:[#allocation13 + $0x16c] ss:$16 sps:$4 sm:$0xff]  }
 0x829   : > { %v4555_v30 = vpop.eup %4554 }
 0x82a   : > { %v1878_v31 = vadd.f32 1.0, %v4555_v30  ;;  %v4557_v33 = vpop.eup %4556  ;;  %v6196_v30 = vld [vmem:[#allocation13 + $0x160] ss:$16 sps:$4 sm:$0xff]  }
 0x82b   : > { %v1879_v14 = vadd.f32 1.0, %v4557_v33  ;;  %v4559_v4 = vpop.eup %4558  ;;  %v6204_v33 = vld [vmem:[#allocation13 + $0x184] ss:$16 sps:$4 sm:$0xff]  }
 0x82c   : > { %4562 = vrcp.f32 %v1878_v31  ;;  %v4561_v37 = vpop.eup %4560  ;;  %v6198_v31 = vld [vmem:[#allocation13 + $0x168] ss:$16 sps:$4 sm:$0xff]  }
 0x82d   : > { %4564 = vrcp.f32 %v1879_v14  ;;  %v1880_v55 = vadd.f32 1.0, %v4561_v37  ;;  %v6206_v14 = vld [vmem:[#allocation13 + $0x18c] ss:$16 sps:$4 sm:$0xff]   ;;  %v6210_v37 = vld [vmem:[#allocation13 + $0x188] ss:$16 sps:$4 sm:$0xff]  }
 0x82f   : > { %4566 = vrcp.f32 %v1880_v55  ;;  %v6222_v55 = vld [vmem:[#allocation13 + $0x1a8] ss:$16 sps:$4 sm:$0xff]  }
 0x836   : > { %v4563_v38 = vpop.eup %4562 }
 0x837   : > { %v1889_v54 = vmul.f32 %v4563_v38, %v4559_v4  ;;  %v4565_v41 = vpop.eup %4564  ;;  %v6208_v4 = vld [vmem:[#allocation13 + $0x180] ss:$16 sps:$4 sm:$0xff]   ;;  %v6216_v38 = vld [vmem:[#allocation13 + $0x1a4] ss:$16 sps:$4 sm:$0xff]  }
 0x838   : > { %v1888_v47 = vmul.f32 %v4565_v41, %v6091_v58  ;;  %v4378_v58 = vld [vmem:[#allocation12 + $0x80] ss:$16 sps:$4 sm:$0xff]  }
 0x839   : > { %v4567_v49 = vpop.eup %4566  ;;  %v6220_v41 = vld [vmem:[#allocation13 + $0x1a0] ss:$16 sps:$4 sm:$0xff]  }
 0x83a   : > { %v6135_v48 = vadd.f32 %v1889_v54, %v1888_v47  ;;  %v6218_v54 = vld [vmem:[#allocation13 + $0x1ac] ss:$16 sps:$4 sm:$0xff]   ;;  %v6228_v47 = vld [vmem:[#allocation13 + $0x1c4] ss:$16 sps:$4 sm:$0xff]  }
 0x83c   : > { %4568 = vtanh.f32 %v6135_v48 }
 0x846   : > { %v4569_v52 = vpop.eup %4568 }
 0x847   : > { %v6138_v53 = vmul.f32 %v4569_v52, %v4567_v49  ;;  %v6230_v49 = vld [vmem:[#allocation13 + $0x1cc] ss:$16 sps:$4 sm:$0xff]   ;;  %v6232_v52 = vld [vmem:[#allocation13 + $0x1c0] ss:$16 sps:$4 sm:$0xff]  }
 0x849   : > { %v1900_v9 = vpack.c.bf16 %v6138_v53, %v6138_v53 }
 0x84b   : > { %1934 = vmatmul.mubr.bf16.vlgmr.msra.gmra.mrb[44].mxu0 %v1900_v9  ;;  %1975 = vmatmul.mubr.bf16.vlgmr.msra.gmra.mrb[44].mxu1 %v1900_v9  ;;  %v6242_v9 = vld [vmem:[#allocation13 + $0x1ec] ss:$16 sps:$4 sm:$0xff]  }
 0x84c   : > { %2243 = vmatpush1.bf16.msra.mxu0 %v4354_v0  ;;  %2316 = vmatpush1.bf16.msra.mxu1 %v4357_v7  ;;  %v6234_v0 = vld [vmem:[#allocation13 + $0x1c8] ss:$16 sps:$4 sm:$0xff]   ;;  %v6240_v7 = vld [vmem:[#allocation13 + $0x1e4] ss:$16 sps:$4 sm:$0xff]  }
 0x84d   : > { %2244 = vmatprep.subr.bf16.mxu0 %v4362_v10  ;;  %2317 = vmatprep.subr.bf16.mxu1 %v4365_v22  ;;  %v6244_v10 = vld [vmem:[#allocation13 + $0x1e0] ss:$16 sps:$4 sm:$0xff]   ;;  %v6246_v22 = vld [vmem:[#allocation13 + $0x1e8] ss:$16 sps:$4 sm:$0xff]  }
 0x84e   : > { %2274 = vmatprep.mubr.bf16.mxu0 %v6993_v39  ;;  %2347 = vmatprep.mubr.bf16.mxu1 %v6993_v39 }
 0x850   : > { %2245 = vmatpush1.bf16.msra.mxu0 %v4360_v23  ;;  %2318 = vmatpush1.bf16.msra.mxu1 %v4363_v11 }
 0x851   : > { %2246 = vmatprep.subr.bf16.mxu0 %v4368_v1  ;;  %2319 = vmatprep.subr.bf16.mxu1 %v4371_v6  ;;  %v7011_v1 = vld [vmem:[#allocation52_spill] sm:$0xff] }
 0x854   : > { %2247 = vmatpush1.bf16.msra.mxu0 %v4366_v12  ;;  %2320 = vmatpush1.bf16.msra.mxu1 %v4369_v13  ;;  %v7012_v12 = vld [vmem:[#allocation53_spill] sm:$0xff] }
 0x855   : > { %2248 = vmatprep.subr.bf16.mxu0 %v4374_v17  ;;  %2321 = vmatprep.subr.bf16.mxu1 %v4377_v34 }
 0x858   : > { %2249 = vmatpush1.bf16.msra.mxu0 %v4372_v36  ;;  %2322 = vmatpush1.bf16.msra.mxu1 %v4375_v42  ;;  %v7013_v36 = vld [vmem:[#allocation54_spill] sm:$0xff] }
 0x859   : > { %2250 = vmatprep.subr.bf16.mxu0 %v4380_v57  ;;  %2323 = vmatprep.subr.bf16.mxu1 %v4383_v44  ;;  %v7014_v57 = vld [vmem:[#allocation55_spill] sm:$0xff] }
 0x85c   : > { %2251 = vmatpush1.bf16.msra.mxu0 %v4378_v58  ;;  %2324 = vmatpush1.bf16.msra.mxu1 %v4381_v45 }
 0x85d   : > { %2252 = vmatprep.subr.bf16.mxu0 %v4386_v59  ;;  %2325 = vmatprep.subr.bf16.mxu1 %v4389_v60 }
 0x860   : > { %2253 = vmatpush1.bf16.msra.mxu0 %v4384_v19  ;;  %2326 = vmatpush1.bf16.msra.mxu1 %v4387_v20 }
 0x861   : > { %2254 = vmatprep.subr.bf16.mxu0 %v4392_v21  ;;  %2327 = vmatprep.subr.bf16.mxu1 %v4395_v29 }
 0x864   : > { %2255 = vmatpush1.bf16.msra.mxu0 %v4390_v43  ;;  %2328 = vmatpush1.bf16.msra.mxu1 %v4393_v51 }
 0x865   : > { %2256 = vmatprep.subr.bf16.mxu0 %v4398_v61  ;;  %2329 = vmatprep.subr.bf16.mxu1 %v4401_v15 }
 0x868   : > { %2257 = vmatpush1.bf16.msra.mxu0 %v4396_v32  ;;  %2330 = vmatpush1.bf16.msra.mxu1 %v4399_v18 }
 0x869   : > { %2622 = vmatprep.subr.bf16.mxu0 %v6156_v16  ;;  %2663 = vmatprep.subr.bf16.mxu1 %v6158_v3 }
 0x86b   : > { %2275 = vmatmul.mubr.bf16.vlgmr.msra.gmra.mrb[48].mxu0 %v2023_v40  ;;  %2348 = vmatmul.mubr.bf16.vlgmr.msra.gmra.mrb[48].mxu1 %v2023_v40 }
 0x86c   : > { %2284 = vmatprep.mubr.bf16.mxu0 %v6993_v39  ;;  %2357 = vmatprep.mubr.bf16.mxu1 %v6993_v39 }
 0x86d   : > { %2623 = vmatpush1.bf16.msra.mxu0 %v6160_v50  ;;  %2664 = vmatpush1.bf16.msra.mxu1 %v6162_v63 }
 0x86e   : > { %2624 = vmatprep.subr.bf16.mxu0 %v6168_v35  ;;  %2665 = vmatprep.subr.bf16.mxu1 %v6170_v46 }
 0x871   : > { %2625 = vmatpush1.bf16.msra.mxu0 %v6172_v5  ;;  %2666 = vmatpush1.bf16.msra.mxu1 %v6174_v28 }
 0x872   : > { %2626 = vmatprep.subr.bf16.mxu0 %v6180_v56  ;;  %2667 = vmatprep.subr.bf16.mxu1 %v6182_v8 }
 0x873   : > { %2285 = vmatmul.mubr.bf16.gmra.mrb[52].mxu0 %v2024_v62  ;;  %2358 = vmatmul.mubr.bf16.gmra.mrb[52].mxu1 %v2024_v62 }
 0x874   : > { %2294 = vmatprep.mubr.bf16.mxu0 %v6993_v39  ;;  %2367 = vmatprep.mubr.bf16.mxu1 %v6993_v39 }
 0x875   : > { %2627 = vmatpush1.bf16.msra.mxu0 %v6184_v24  ;;  %2668 = vmatpush1.bf16.msra.mxu1 %v6186_v25 }
 0x876   : > { %2628 = vmatprep.subr.bf16.mxu0 %v6192_v26  ;;  %2669 = vmatprep.subr.bf16.mxu1 %v6194_v27 }
 0x879   : > { %2629 = vmatpush1.bf16.msra.mxu0 %v6196_v30  ;;  %2670 = vmatpush1.bf16.msra.mxu1 %v6198_v31 }
 0x87a   : > { %2630 = vmatprep.subr.bf16.mxu0 %v6204_v33  ;;  %2671 = vmatprep.subr.bf16.mxu1 %v6206_v14 }
 0x87b   : > { %2295 = vmatmul.mubr.bf16.gmra.mrb[56].mxu0 %v2025_v2  ;;  %2368 = vmatmul.mubr.bf16.gmra.mrb[56].mxu1 %v2025_v2 }
 0x87c   : > { %2304 = vmatprep.mubr.bf16.mxu0 %v6993_v39  ;;  %2377 = vmatprep.mubr.bf16.mxu1 %v6993_v39 }
 0x87d   : > { %2631 = vmatpush1.bf16.msra.mxu0 %v6208_v4  ;;  %2672 = vmatpush1.bf16.msra.mxu1 %v6210_v37 }
 0x87e   : > { %2632 = vmatprep.subr.bf16.mxu0 %v6216_v38  ;;  %2673 = vmatprep.subr.bf16.mxu1 %v6218_v54 }
 0x881   : > { %2633 = vmatpush1.bf16.msra.mxu0 %v6220_v41  ;;  %2674 = vmatpush1.bf16.msra.mxu1 %v6222_v55 }
 0x882   : > { %2634 = vmatprep.subr.bf16.mxu0 %v6228_v47  ;;  %2675 = vmatprep.subr.bf16.mxu1 %v6230_v49 }
 0x885   : > { %2635 = vmatpush1.bf16.msra.mxu0 %v6232_v52  ;;  %2676 = vmatpush1.bf16.msra.mxu1 %v6234_v0 }
 0x886   : > { %2636 = vmatprep.subr.bf16.mxu0 %v6240_v7  ;;  %2677 = vmatprep.subr.bf16.mxu1 %v6242_v9 }
 0x889   : > { %2637 = vmatpush1.bf16.msra.mxu0 %v6244_v10  ;;  %2678 = vmatpush1.bf16.msra.mxu1 %v6246_v22 }
 0x88a   : > { %2737 = vmatprep.subr.bf16.mxu0 %v6156_v16  ;;  %2778 = vmatprep.subr.bf16.mxu1 %v6158_v3 }
 0x91e   : > { %v1935_v23 = vpop.f32.mrb[44].mxu0  ;;  %v1976_v11 = vpop.f32.mrb[44].mxu1 }
 0x91f   : > { %v1983_v6 = vadd.f32 %v1935_v23, %v7011_v1  ;;  %v1985_v13 = vadd.f32 %v1976_v11, %v7012_v12  ;;  %v1937_v17 = vpop.f32.mrb[45].mxu0  ;;  %v1978_v34 = vpop.f32.mrb[45].mxu1 }
 0x920   : > { %v1984_v42 = vadd.f32 %v1937_v17, %v7013_v36  ;;  %v1986_v44 = vadd.f32 %v1978_v34, %v7014_v57  ;;  %v1939_v58 = vpop.f32.mrb[46].mxu0  ;;  %v1980_v45 = vpop.f32.mrb[46].mxu1 }
 0x921   : > { %v4021_v59 = vmul.f32 -1.442695, %v1983_v6  ;;  %v1940_v60 = vpop.f32.mrb[47].mxu0  ;;  %v1981_v19 = vpop.f32.mrb[47].mxu1  ;;  %v4023_v21 = vmul.f32 -1.442695, %v1985_v13 }
 0x922   : > { %v4022_v20 = vmul.f32 -1.442695, %v1984_v42 }
 0x923   : > { %4570 = vpow2.f32 %v4021_v59 }
 0x924   : > { %4572 = vpow2.f32 %v4022_v20 }
 0x925   : > { %4574 = vtanh.f32 %v1986_v44 }
 0x926   : > { %4576 = vpow2.f32 %v4023_v21 }
 0x92d   : > { %v4571_v29 = vpop.eup %4570 }
 0x92e   : > { %v1996_v43 = vadd.f32 1.0, %v4571_v29  ;;  %v4573_v51 = vpop.eup %4572 }
 0x92f   : > { %v1997_v61 = vadd.f32 1.0, %v4573_v51  ;;  %v4575_v15 = vpop.eup %4574 }
 0x930   : > { %4578 = vrcp.f32 %v1996_v43  ;;  %v4577_v32 = vpop.eup %4576 }
 0x931   : > { %4580 = vrcp.f32 %v1997_v61  ;;  %v1998_v2 = vadd.f32 1.0, %v4577_v32 }
 0x933   : > { %4582 = vrcp.f32 %v1998_v2 }
 0x93a   : > { %v4579_v18 = vpop.eup %4578 }
 0x93b   : > { %v2007_v40 = vmul.f32 %v4579_v18, %v4575_v15  ;;  %v4581_v62 = vpop.eup %4580 }
 0x93c   : > { %v2006_v23 = vmul.f32 %v4581_v62, %v6135_v48 }
 0x93d   : > { %v4583_v20 = vpop.eup %4582 }
 0x93e   : > { %v6259_v11 = vpop.f32.mrb[48].mxu0  ;;  %v6261_v1 = vpop.f32.mrb[48].mxu1  ;;  %v2008_v6 = vadd.f32 %v2007_v40, %v2006_v23 }
 0x93f   : > { %v6263_v12 = vpop.f32.mrb[49].mxu0  ;;  %v6265_v13 = vpop.f32.mrb[49].mxu1 }
 0x940   : > { %v6267_v17 = vpop.f32.mrb[50].mxu0  ;;  %v6269_v34 = vpop.f32.mrb[50].mxu1  ;;  %4584 = vtanh.f32 %v2008_v6  ;;  %2014 = vst [vmem:[%s6272_s21] sm:$0xff] %v2008_v6  ;;  %v4024_v6 = vld [vmem:[%s6971_s28 + $0x4] sm:$0xf] }
 0x941   : > { %v6275_v48 = vpop.f32.mrb[51].mxu0  ;;  %v6277_v36 = vpop.f32.mrb[51].mxu1 }
 0x946   : > { %v6279_v42 = vpop.f32.mrb[52].mxu0  ;;  %v6281_v57 = vpop.f32.mrb[52].mxu1 }
 0x947   : > { %7015 = vst [vmem:[#allocation35_spill] sm:$0xff] %v6281_v57  ;;  %v6283_v44 = vpop.f32.mrb[53].mxu0  ;;  %v6285_v58 = vpop.f32.mrb[53].mxu1 }
 0x948   : > { %7016 = vst [vmem:[#allocation36_spill] sm:$0xff] %v6283_v44  ;;  %7017 = vst [vmem:[#allocation37_spill] sm:$0xff] %v6285_v58  ;;  %v6287_v45 = vpop.f32.mrb[54].mxu0  ;;  %v6289_v59 = vpop.f32.mrb[54].mxu1 }
 0x949   : > { %7018 = vst [vmem:[#allocation38_spill] sm:$0xff] %v6287_v45  ;;  %7019 = vst [vmem:[#allocation39_spill] sm:$0xff] %v6289_v59  ;;  %v6291_v60 = vpop.f32.mrb[55].mxu0  ;;  %v6293_v19 = vpop.f32.mrb[55].mxu1 }
 0x94a   : > { %7020 = vst [vmem:[#allocation40_spill] sm:$0xff] %v6291_v60  ;;  %7021 = vst [vmem:[#allocation41_spill] sm:$0xff] %v6293_v19  ;;  %v4585_v21 = vpop.eup %4584 }
 0x94b   : > { %v2010_v29 = vmul.f32 %v4585_v21, %v4583_v20 }
 0x94d   : > { %2013 = vst [vmem:[%s6300_s17] sm:$0xff] %v2010_v29  ;;  %v2026_v61 = vpack.c.bf16 %v2010_v29, %v6138_v53  ;;  %v4057_v53 = vld [vmem:[%s471_s8 + $0x8] sm:$0xff] }
 0x94e   : > { %v6295_v43 = vpop.f32.mrb[56].mxu0  ;;  %v6297_v51 = vpop.f32.mrb[56].mxu1  ;;  %v2461_v23 = vpack.c.bf16 %v4057_v53, %v4057_v53 }
 0x94f   : > { %7022 = vst [vmem:[#allocation42_spill] sm:$0xff] %v6295_v43  ;;  %7023 = vst [vmem:[#allocation43_spill] sm:$0xff] %v6297_v51  ;;  %v6304_v15 = vpop.f32.mrb[57].mxu0  ;;  %v6306_v32 = vpop.f32.mrb[57].mxu1  ;;  %2305 = vmatmul.mubr.bf16.gmra.mrb[60].mxu0 %v2026_v61  ;;  %2378 = vmatmul.mubr.bf16.gmra.mrb[60].mxu1 %v2026_v61 }
 0x950   : > { %7024 = vst [vmem:[#allocation44_spill] sm:$0xff] %v6304_v15  ;;  %7025 = vst [vmem:[#allocation45_spill] sm:$0xff] %v6306_v32  ;;  %v6308_v18 = vpop.f32.mrb[58].mxu0  ;;  %v6310_v40 = vpop.f32.mrb[58].mxu1  ;;  %2654 = vmatprep.mubr.bf16.mxu0 %v6993_v39  ;;  %2695 = vmatprep.mubr.bf16.mxu1 %v6993_v39 }
 0x951   : > { %7026 = vst [vmem:[#allocation46_spill] sm:$0xff] %v6308_v18  ;;  %7027 = vst [vmem:[#allocation47_spill] sm:$0xff] %v6310_v40  ;;  %v6312_v62 = vpop.f32.mrb[59].mxu0  ;;  %v6314_v2 = vpop.f32.mrb[59].mxu1 }
 0x952   : > { %7028 = vst [vmem:[#allocation48_spill] sm:$0xff] %v6312_v62  ;;  %7029 = vst [vmem:[#allocation49_spill] sm:$0xff] %v6314_v2  ;;  %v7036_v2 = vld [vmem:[#allocation34_spill] sm:$0xff] }
 0x953   : > { %v7037_v62 = vsub.s32 0, %v7036_v2  ;;  %v7038_v18 = vsub.s32 2, %v7036_v2 }
 0x955   : > { %v6371_v40 = vrot.slane %v4024_v6, %v7037_v62  ;;  %v6375_v32 = vrot.slane %v4024_v6, %v7038_v18 }
 0x957   : > { %2655 = vmatmul.mubr.bf16.vlgmr.msra.gmra.mrb[64].mxu0 %v2461_v23  ;;  %2696 = vmatmul.mubr.bf16.vlgmr.msra.gmra.mrb[64].mxu1 %v2461_v23  ;;  %v2277_v62 = vadd.f32 %v6259_v11, %v6371_v40 }
 0x958   : > { %2738 = vmatpush1.bf16.msra.mxu0 %v6160_v50  ;;  %2779 = vmatpush1.bf16.msra.mxu1 %v6162_v63 }
 0x959   : > { %2739 = vmatprep.subr.bf16.mxu0 %v6168_v35  ;;  %2780 = vmatprep.subr.bf16.mxu1 %v6170_v46 }
 0x95a   : > { %2769 = vmatprep.mubr.bf16.mxu0 %v6993_v39  ;;  %2810 = vmatprep.mubr.bf16.mxu1 %v6993_v39 }
 0x95c   : > { %2740 = vmatpush1.bf16.msra.mxu0 %v6172_v5  ;;  %2781 = vmatpush1.bf16.msra.mxu1 %v6174_v28 }
 0x95d   : > { %2741 = vmatprep.subr.bf16.mxu0 %v6180_v56  ;;  %2782 = vmatprep.subr.bf16.mxu1 %v6182_v8 }
 0x960   : > { %2742 = vmatpush1.bf16.msra.mxu0 %v6184_v24  ;;  %2783 = vmatpush1.bf16.msra.mxu1 %v6186_v25 }
 0x961   : > { %2743 = vmatprep.subr.bf16.mxu0 %v6192_v26  ;;  %2784 = vmatprep.subr.bf16.mxu1 %v6194_v27 }
 0x964   : > { %2744 = vmatpush1.bf16.msra.mxu0 %v6196_v30  ;;  %2785 = vmatpush1.bf16.msra.mxu1 %v6198_v31 }
 0x965   : > { %2745 = vmatprep.subr.bf16.mxu0 %v6204_v33  ;;  %2786 = vmatprep.subr.bf16.mxu1 %v6206_v14 }
 0x968   : > { %2746 = vmatpush1.bf16.msra.mxu0 %v6208_v4  ;;  %2787 = vmatpush1.bf16.msra.mxu1 %v6210_v37 }
 0x969   : > { %2747 = vmatprep.subr.bf16.mxu0 %v6216_v38  ;;  %2788 = vmatprep.subr.bf16.mxu1 %v6218_v54 }
 0x96c   : > { %2748 = vmatpush1.bf16.msra.mxu0 %v6220_v41  ;;  %2789 = vmatpush1.bf16.msra.mxu1 %v6222_v55 }
 0x96d   : > { %2749 = vmatprep.subr.bf16.mxu0 %v6228_v47  ;;  %2790 = vmatprep.subr.bf16.mxu1 %v6230_v49 }
 0x970   : > { %2750 = vmatpush1.bf16.msra.mxu0 %v6232_v52  ;;  %2791 = vmatpush1.bf16.msra.mxu1 %v6234_v0 }
 0x971   : > { %2751 = vmatprep.subr.bf16.mxu0 %v6240_v7  ;;  %2792 = vmatprep.subr.bf16.mxu1 %v6242_v9 }
 0x974   : > { %2752 = vmatpush1.bf16.msra.mxu0 %v6244_v10  ;;  %2793 = vmatpush1.bf16.msra.mxu1 %v6246_v22 }
 0x975   : > { %2852 = vmatprep.subr.bf16.mxu0 %v6156_v16  ;;  %2893 = vmatprep.subr.bf16.mxu1 %v6158_v3 }
 0xa22   : > { %v6357_v20 = vpop.f32.mrb[60].mxu0  ;;  %v6359_v21 = vpop.f32.mrb[60].mxu1 }
 0xa23   : > { %7030 = vst [vmem:[#allocation50_spill] sm:$0xff] %v6357_v20  ;;  %7031 = vst [vmem:[#allocation51_spill] sm:$0xff] %v6359_v21  ;;  %v6361_v29 = vpop.f32.mrb[61].mxu0  ;;  %v6363_v61 = vpop.f32.mrb[61].mxu1 }
 0xa24   : > { %7032 = vst [vmem:[#allocation52_spill] sm:$0xff] %v6361_v29  ;;  %7033 = vst [vmem:[#allocation53_spill] sm:$0xff] %v6363_v61  ;;  %v6365_v53 = vpop.f32.mrb[62].mxu0  ;;  %v6367_v23 = vpop.f32.mrb[62].mxu1  ;;  %v7041_v29 = vsub.s32 1, %v7036_v2 }
 0xa25   : > { %7034 = vst [vmem:[#allocation54_spill] sm:$0xff] %v6365_v53  ;;  %7035 = vst [vmem:[#allocation55_spill] sm:$0xff] %v6367_v23  ;;  %v6377_v15 = vpop.f32.mrb[63].mxu0  ;;  %v6379_v20 = vpop.f32.mrb[63].mxu1  ;;  %v7042_v53 = vsub.s32 3, %v7036_v2  ;;  %v2350_v23 = vadd.f32 %v6261_v1, %v6375_v32 }
 0xa26   : > { %7039 = vst [vmem:[#allocation34_spill] sm:$0xff] %v6377_v15  ;;  %7040 = vst [vmem:[#allocation56_spill] sm:$0xff] %v6379_v20  ;;  %v6383_v21 = vrot.slane %v4024_v6, %v7041_v29 }
 0xa27   : > { %v6387_v61 = vrot.slane %v4024_v6, %v7042_v53 }
 0xa28   : > { %v2279_v18 = vadd.f32 %v6263_v12, %v6383_v21 }
 0xa29   : > { %v2352_v20 = vadd.f32 %v6265_v13, %v6387_v61 }
 0xa2a   : > { %v2656_v15 = vpop.f32.mrb[64].mxu0  ;;  %v2697_v51 = vpop.f32.mrb[64].mxu1 }
 0xa2b   : > { %v2704_v29 = vadd.f32 %v2656_v15, %v2277_v62  ;;  %v2706_v43 = vadd.f32 %v2697_v51, %v2350_v23  ;;  %v2658_v19 = vpop.f32.mrb[65].mxu0  ;;  %v2699_v2 = vpop.f32.mrb[65].mxu1 }
 0xa2c   : > { %v2705_v6 = vadd.f32 %v2658_v19, %v2279_v18  ;;  %v2707_v53 = vadd.f32 %v2699_v2, %v2352_v20  ;;  %v2660_v60 = vpop.f32.mrb[66].mxu0  ;;  %v2701_v59 = vpop.f32.mrb[66].mxu1  ;;  %v2354_v2 = vadd.f32 %v6269_v34, %v6375_v32 }
 0xa2d   : > { %v4091_v11 = vmul.f32 -1.442695, %v2704_v29  ;;  %v2661_v45 = vpop.f32.mrb[67].mxu0  ;;  %v2702_v58 = vpop.f32.mrb[67].mxu1  ;;  %v4093_v12 = vmul.f32 -1.442695, %v2706_v43 }
 0xa2e   : > { %v4092_v1 = vmul.f32 -1.442695, %v2705_v6  ;;  %v4058_v59 = vld [vmem:[%s480_s22 + $0x8] sm:$0xff]  ;;  %v2283_v6 = vadd.f32 %v6275_v48, %v6383_v21 }
 0xa2f   : > { %4586 = vpow2.f32 %v4091_v11 }
 0xa30   : > { %4588 = vpow2.f32 %v4092_v1 }
 0xa31   : > { %4590 = vtanh.f32 %v2707_v53  ;;  %v2356_v53 = vadd.f32 %v6277_v36, %v6387_v61 }
 0xa32   : > { %4592 = vpow2.f32 %v4093_v12 }
 0xa39   : > { %v4587_v44 = vpop.eup %4586 }
 0xa3a   : > { %v2717_v13 = vadd.f32 1.0, %v4587_v44  ;;  %v4589_v57 = vpop.eup %4588 }
 0xa3b   : > { %v2718_v51 = vadd.f32 1.0, %v4589_v57  ;;  %v4591_v19 = vpop.eup %4590  ;;  %v2281_v57 = vadd.f32 %v6267_v17, %v6371_v40 }
 0xa3c   : > { %4594 = vrcp.f32 %v2717_v13  ;;  %v4593_v15 = vpop.eup %4592 }
 0xa3d   : > { %4596 = vrcp.f32 %v2718_v51  ;;  %v2719_v20 = vadd.f32 1.0, %v4593_v15 }
 0xa3f   : > { %4598 = vrcp.f32 %v2719_v20 }
 0xa46   : > { %v4595_v60 = vpop.eup %4594 }
 0xa47   : > { %v2728_v45 = vmul.f32 %v4595_v60, %v4591_v19  ;;  %v4597_v58 = vpop.eup %4596 }
 0xa48   : > { %v2727_v23 = vmul.f32 %v4597_v58, %v4058_v59 }
 0xa49   : > { %v4599_v44 = vpop.eup %4598 }
 0xa4a   : > { %v6399_v62 = vadd.f32 %v2728_v45, %v2727_v23 }
 0xa4c   : > { %4600 = vtanh.f32 %v6399_v62 }
 0xa56   : > { %v4601_v43 = vpop.eup %4600 }
 0xa57   : > { %v2731_v18 = vmul.f32 %v4601_v43, %v4599_v44 }
 0xa59   : > { %v2736_v29 = vpack.c.bf16 %v2731_v18, %v2731_v18 }
 0xa5b   : > { %2770 = vmatmul.mubr.bf16.vlgmr.msra.gmra.mrb[68].mxu0 %v2736_v29  ;;  %2811 = vmatmul.mubr.bf16.vlgmr.msra.gmra.mrb[68].mxu1 %v2736_v29 }
 0xa5c   : > { %2853 = vmatpush1.bf16.msra.mxu0 %v6160_v50  ;;  %2894 = vmatpush1.bf16.msra.mxu1 %v6162_v63 }
 0xa5d   : > { %2854 = vmatprep.subr.bf16.mxu0 %v6168_v35  ;;  %2895 = vmatprep.subr.bf16.mxu1 %v6170_v46 }
 0xa5e   : > { %2884 = vmatprep.mubr.bf16.mxu0 %v6993_v39  ;;  %2925 = vmatprep.mubr.bf16.mxu1 %v6993_v39 }
 0xa60   : > { %2855 = vmatpush1.bf16.msra.mxu0 %v6172_v5  ;;  %2896 = vmatpush1.bf16.msra.mxu1 %v6174_v28 }
 0xa61   : > { %2856 = vmatprep.subr.bf16.mxu0 %v6180_v56  ;;  %2897 = vmatprep.subr.bf16.mxu1 %v6182_v8 }
 0xa64   : > { %2857 = vmatpush1.bf16.msra.mxu0 %v6184_v24  ;;  %2898 = vmatpush1.bf16.msra.mxu1 %v6186_v25 }
 0xa65   : > { %2858 = vmatprep.subr.bf16.mxu0 %v6192_v26  ;;  %2899 = vmatprep.subr.bf16.mxu1 %v6194_v27 }
 0xa68   : > { %2859 = vmatpush1.bf16.msra.mxu0 %v6196_v30  ;;  %2900 = vmatpush1.bf16.msra.mxu1 %v6198_v31 }
 0xa69   : > { %2860 = vmatprep.subr.bf16.mxu0 %v6204_v33  ;;  %2901 = vmatprep.subr.bf16.mxu1 %v6206_v14 }
 0xa6c   : > { %2861 = vmatpush1.bf16.msra.mxu0 %v6208_v4  ;;  %2902 = vmatpush1.bf16.msra.mxu1 %v6210_v37 }
 0xa6d   : > { %2862 = vmatprep.subr.bf16.mxu0 %v6216_v38  ;;  %2903 = vmatprep.subr.bf16.mxu1 %v6218_v54 }
 0xa70   : > { %2863 = vmatpush1.bf16.msra.mxu0 %v6220_v41  ;;  %2904 = vmatpush1.bf16.msra.mxu1 %v6222_v55 }
 0xa71   : > { %2864 = vmatprep.subr.bf16.mxu0 %v6228_v47  ;;  %2905 = vmatprep.subr.bf16.mxu1 %v6230_v49 }
 0xa74   : > { %2865 = vmatpush1.bf16.msra.mxu0 %v6232_v52  ;;  %2906 = vmatpush1.bf16.msra.mxu1 %v6234_v0 }
 0xa75   : > { %2866 = vmatprep.subr.bf16.mxu0 %v6240_v7  ;;  %2907 = vmatprep.subr.bf16.mxu1 %v6242_v9 }
 0xa78   : > { %2867 = vmatpush1.bf16.msra.mxu0 %v6244_v10  ;;  %2908 = vmatpush1.bf16.msra.mxu1 %v6246_v22 }
 0xa79   : > { %2967 = vmatprep.subr.bf16.mxu0 %v6156_v16  ;;  %3008 = vmatprep.subr.bf16.mxu1 %v6158_v3 }
 0xb2e   : > { %v2771_v11 = vpop.f32.mrb[68].mxu0  ;;  %v2812_v1 = vpop.f32.mrb[68].mxu1 }
 0xb2f   : > { %v2819_v12 = vadd.f32 %v2771_v11, %v2281_v57  ;;  %v2821_v13 = vadd.f32 %v2812_v1, %v2354_v2  ;;  %v2773_v51 = vpop.f32.mrb[69].mxu0  ;;  %v2814_v19 = vpop.f32.mrb[69].mxu1 }
 0xb30   : > { %v2820_v15 = vadd.f32 %v2773_v51, %v2283_v6  ;;  %v2822_v60 = vadd.f32 %v2814_v19, %v2356_v53  ;;  %v2775_v59 = vpop.f32.mrb[70].mxu0  ;;  %v2816_v45 = vpop.f32.mrb[70].mxu1 }
 0xb31   : > { %v4094_v17 = vmul.f32 -1.442695, %v2819_v12  ;;  %v2776_v58 = vpop.f32.mrb[71].mxu0  ;;  %v2817_v20 = vpop.f32.mrb[71].mxu1  ;;  %v4096_v48 = vmul.f32 -1.442695, %v2821_v13 }
 0xb32   : > { %v4095_v34 = vmul.f32 -1.442695, %v2820_v15  ;;  %v7043_v15 = vld [vmem:[#allocation35_spill] sm:$0xff]  ;;  %v7044_v59 = vld [vmem:[#allocation36_spill] sm:$0xff] }
 0xb33   : > { %4602 = vpow2.f32 %v4094_v17  ;;  %v2289_v45 = vadd.f32 %v7044_v59, %v6383_v21  ;;  %v7045_v17 = vld [vmem:[#allocation37_spill] sm:$0xff] }
 0xb34   : > { %4604 = vpow2.f32 %v4095_v34  ;;  %v2362_v58 = vadd.f32 %v7045_v17, %v6387_v61 }
 0xb35   : > { %4606 = vtanh.f32 %v2822_v60  ;;  %v2360_v60 = vadd.f32 %v7043_v15, %v6375_v32 }
 0xb36   : > { %4608 = vpow2.f32 %v4096_v48 }
 0xb3d   : > { %v4603_v23 = vpop.eup %4602 }
 0xb3e   : > { %v2832_v44 = vadd.f32 1.0, %v4603_v23  ;;  %v4605_v36 = vpop.eup %4604 }
 0xb3f   : > { %v2833_v43 = vadd.f32 1.0, %v4605_v36  ;;  %v4607_v18 = vpop.eup %4606 }
 0xb40   : > { %4610 = vrcp.f32 %v2832_v44  ;;  %v4609_v29 = vpop.eup %4608 }
 0xb41   : > { %4612 = vrcp.f32 %v2833_v43  ;;  %v2834_v53 = vadd.f32 1.0, %v4609_v29 }
 0xb43   : > { %4614 = vrcp.f32 %v2834_v53 }
 0xb4a   : > { %v4611_v57 = vpop.eup %4610 }
 0xb4b   : > { %v2843_v2 = vmul.f32 %v4611_v57, %v4607_v18  ;;  %v4613_v6 = vpop.eup %4612 }
 0xb4c   : > { %v2842_v11 = vmul.f32 %v4613_v6, %v6399_v62  ;;  %v2287_v62 = vadd.f32 %v6279_v42, %v6371_v40 }
 0xb4d   : > { %v4615_v12 = vpop.eup %4614 }
 0xb4e   : > { %v6445_v1 = vadd.f32 %v2843_v2, %v2842_v11 }
 0xb50   : > { %4616 = vtanh.f32 %v6445_v1 }
 0xb5a   : > { %v4617_v13 = vpop.eup %4616 }
 0xb5b   : > { %v2846_v51 = vmul.f32 %v4617_v13, %v4615_v12 }
 0xb5d   : > { %v2851_v19 = vpack.c.bf16 %v2846_v51, %v2846_v51 }
 0xb5f   : > { %2885 = vmatmul.mubr.bf16.vlgmr.msra.gmra.mrb[72].mxu0 %v2851_v19  ;;  %2926 = vmatmul.mubr.bf16.vlgmr.msra.gmra.mrb[72].mxu1 %v2851_v19 }
 0xb60   : > { %2968 = vmatpush1.bf16.msra.mxu0 %v6160_v50  ;;  %3009 = vmatpush1.bf16.msra.mxu1 %v6162_v63 }
 0xb61   : > { %2969 = vmatprep.subr.bf16.mxu0 %v6168_v35  ;;  %3010 = vmatprep.subr.bf16.mxu1 %v6170_v46 }
 0xb62   : > { %2999 = vmatprep.mubr.bf16.mxu0 %v6993_v39  ;;  %3040 = vmatprep.mubr.bf16.mxu1 %v6993_v39 }
 0xb64   : > { %2970 = vmatpush1.bf16.msra.mxu0 %v6172_v5  ;;  %3011 = vmatpush1.bf16.msra.mxu1 %v6174_v28 }
 0xb65   : > { %2971 = vmatprep.subr.bf16.mxu0 %v6180_v56  ;;  %3012 = vmatprep.subr.bf16.mxu1 %v6182_v8 }
 0xb68   : > { %2972 = vmatpush1.bf16.msra.mxu0 %v6184_v24  ;;  %3013 = vmatpush1.bf16.msra.mxu1 %v6186_v25 }
 0xb69   : > { %2973 = vmatprep.subr.bf16.mxu0 %v6192_v26  ;;  %3014 = vmatprep.subr.bf16.mxu1 %v6194_v27 }
 0xb6c   : > { %2974 = vmatpush1.bf16.msra.mxu0 %v6196_v30  ;;  %3015 = vmatpush1.bf16.msra.mxu1 %v6198_v31 }
 0xb6d   : > { %2975 = vmatprep.subr.bf16.mxu0 %v6204_v33  ;;  %3016 = vmatprep.subr.bf16.mxu1 %v6206_v14 }
 0xb70   : > { %2976 = vmatpush1.bf16.msra.mxu0 %v6208_v4  ;;  %3017 = vmatpush1.bf16.msra.mxu1 %v6210_v37 }
 0xb71   : > { %2977 = vmatprep.subr.bf16.mxu0 %v6216_v38  ;;  %3018 = vmatprep.subr.bf16.mxu1 %v6218_v54 }
 0xb74   : > { %2978 = vmatpush1.bf16.msra.mxu0 %v6220_v41  ;;  %3019 = vmatpush1.bf16.msra.mxu1 %v6222_v55 }
 0xb75   : > { %2979 = vmatprep.subr.bf16.mxu0 %v6228_v47  ;;  %3020 = vmatprep.subr.bf16.mxu1 %v6230_v49 }
 0xb78   : > { %2980 = vmatpush1.bf16.msra.mxu0 %v6232_v52  ;;  %3021 = vmatpush1.bf16.msra.mxu1 %v6234_v0 }
 0xb79   : > { %2981 = vmatprep.subr.bf16.mxu0 %v6240_v7  ;;  %3022 = vmatprep.subr.bf16.mxu1 %v6242_v9 }
 0xb7c   : > { %2982 = vmatpush1.bf16.msra.mxu0 %v6244_v10  ;;  %3023 = vmatpush1.bf16.msra.mxu1 %v6246_v22 }
 0xb7d   : > { %3082 = vmatprep.subr.bf16.mxu0 %v6156_v16  ;;  %3123 = vmatprep.subr.bf16.mxu1 %v6158_v3 }
 0xc32   : > { %v2886_v20 = vpop.f32.mrb[72].mxu0  ;;  %v2927_v34 = vpop.f32.mrb[72].mxu1 }
 0xc33   : > { %v2934_v48 = vadd.f32 %v2886_v20, %v2287_v62  ;;  %v2936_v23 = vadd.f32 %v2927_v34, %v2360_v60  ;;  %v2888_v44 = vpop.f32.mrb[73].mxu0  ;;  %v2929_v36 = vpop.f32.mrb[73].mxu1 }
 0xc34   : > { %v2935_v43 = vadd.f32 %v2888_v44, %v2289_v45  ;;  %v2937_v18 = vadd.f32 %v2929_v36, %v2362_v58  ;;  %v2890_v29 = vpop.f32.mrb[74].mxu0  ;;  %v2931_v57 = vpop.f32.mrb[74].mxu1 }
 0xc35   : > { %v4097_v42 = vmul.f32 -1.442695, %v2934_v48  ;;  %v2891_v2 = vpop.f32.mrb[75].mxu0  ;;  %v2932_v6 = vpop.f32.mrb[75].mxu1  ;;  %v4099_v11 = vmul.f32 -1.442695, %v2936_v23 }
 0xc36   : > { %v4098_v53 = vmul.f32 -1.442695, %v2935_v43  ;;  %v7047_v43 = vld [vmem:[#allocation39_spill] sm:$0xff]  ;;  %v7048_v29 = vld [vmem:[#allocation40_spill] sm:$0xff] }
 0xc37   : > { %4618 = vpow2.f32 %v4097_v42  ;;  %v2293_v57 = vadd.f32 %v7048_v29, %v6383_v21  ;;  %v7049_v42 = vld [vmem:[#allocation41_spill] sm:$0xff] }
 0xc38   : > { %4620 = vpow2.f32 %v4098_v53  ;;  %v2366_v2 = vadd.f32 %v7049_v42, %v6387_v61 }
 0xc39   : > { %4622 = vtanh.f32 %v2937_v18  ;;  %v2364_v18 = vadd.f32 %v7047_v43, %v6375_v32 }
 0xc3a   : > { %4624 = vpow2.f32 %v4099_v11 }
 0xc41   : > { %v4619_v12 = vpop.eup %4618 }
 0xc42   : > { %v2947_v13 = vadd.f32 1.0, %v4619_v12  ;;  %v4621_v51 = vpop.eup %4620 }
 0xc43   : > { %v2948_v19 = vadd.f32 1.0, %v4621_v51  ;;  %v4623_v62 = vpop.eup %4622 }
 0xc44   : > { %4626 = vrcp.f32 %v2947_v13  ;;  %v4625_v15 = vpop.eup %4624 }
 0xc45   : > { %4628 = vrcp.f32 %v2948_v19  ;;  %v2949_v17 = vadd.f32 1.0, %v4625_v15 }
 0xc47   : > { %4630 = vrcp.f32 %v2949_v17 }
 0xc4e   : > { %v4627_v60 = vpop.eup %4626 }
 0xc4f   : > { %v2958_v59 = vmul.f32 %v4627_v60, %v4623_v62  ;;  %v4629_v45 = vpop.eup %4628 }
 0xc50   : > { %v2957_v58 = vmul.f32 %v4629_v45, %v6445_v1  ;;  %v7046_v1 = vld [vmem:[#allocation38_spill] sm:$0xff] }
 0xc51   : > { %v4631_v34 = vpop.eup %4630  ;;  %v2291_v36 = vadd.f32 %v7046_v1, %v6371_v40 }
 0xc52   : > { %v6491_v20 = vadd.f32 %v2958_v59, %v2957_v58 }
 0xc54   : > { %4632 = vtanh.f32 %v6491_v20 }
 0xc5e   : > { %v4633_v48 = vpop.eup %4632 }
 0xc5f   : > { %v2961_v23 = vmul.f32 %v4633_v48, %v4631_v34 }
 0xc61   : > { %v2966_v44 = vpack.c.bf16 %v2961_v23, %v2961_v23 }
 0xc63   : > { %3000 = vmatmul.mubr.bf16.vlgmr.msra.gmra.mrb[76].mxu0 %v2966_v44  ;;  %3041 = vmatmul.mubr.bf16.vlgmr.msra.gmra.mrb[76].mxu1 %v2966_v44 }
 0xc64   : > { %3083 = vmatpush1.bf16.msra.mxu0 %v6160_v50  ;;  %3124 = vmatpush1.bf16.msra.mxu1 %v6162_v63 }
 0xc65   : > { %3084 = vmatprep.subr.bf16.mxu0 %v6168_v35  ;;  %3125 = vmatprep.subr.bf16.mxu1 %v6170_v46 }
 0xc66   : > { %3114 = vmatprep.mubr.bf16.mxu0 %v6993_v39  ;;  %3155 = vmatprep.mubr.bf16.mxu1 %v6993_v39 }
 0xc68   : > { %3085 = vmatpush1.bf16.msra.mxu0 %v6172_v5  ;;  %3126 = vmatpush1.bf16.msra.mxu1 %v6174_v28 }
 0xc69   : > { %3086 = vmatprep.subr.bf16.mxu0 %v6180_v56  ;;  %3127 = vmatprep.subr.bf16.mxu1 %v6182_v8 }
 0xc6c   : > { %3087 = vmatpush1.bf16.msra.mxu0 %v6184_v24  ;;  %3128 = vmatpush1.bf16.msra.mxu1 %v6186_v25 }
 0xc6d   : > { %3088 = vmatprep.subr.bf16.mxu0 %v6192_v26  ;;  %3129 = vmatprep.subr.bf16.mxu1 %v6194_v27 }
 0xc70   : > { %3089 = vmatpush1.bf16.msra.mxu0 %v6196_v30  ;;  %3130 = vmatpush1.bf16.msra.mxu1 %v6198_v31 }
 0xc71   : > { %3090 = vmatprep.subr.bf16.mxu0 %v6204_v33  ;;  %3131 = vmatprep.subr.bf16.mxu1 %v6206_v14 }
 0xc74   : > { %3091 = vmatpush1.bf16.msra.mxu0 %v6208_v4  ;;  %3132 = vmatpush1.bf16.msra.mxu1 %v6210_v37 }
 0xc75   : > { %3092 = vmatprep.subr.bf16.mxu0 %v6216_v38  ;;  %3133 = vmatprep.subr.bf16.mxu1 %v6218_v54 }
 0xc78   : > { %3093 = vmatpush1.bf16.msra.mxu0 %v6220_v41  ;;  %3134 = vmatpush1.bf16.msra.mxu1 %v6222_v55 }
 0xc79   : > { %3094 = vmatprep.subr.bf16.mxu0 %v6228_v47  ;;  %3135 = vmatprep.subr.bf16.mxu1 %v6230_v49 }
 0xc7c   : > { %3095 = vmatpush1.bf16.msra.mxu0 %v6232_v52  ;;  %3136 = vmatpush1.bf16.msra.mxu1 %v6234_v0 }
 0xc7d   : > { %3096 = vmatprep.subr.bf16.mxu0 %v6240_v7  ;;  %3137 = vmatprep.subr.bf16.mxu1 %v6242_v9 }
 0xc80   : > { %3097 = vmatpush1.bf16.msra.mxu0 %v6244_v10  ;;  %3138 = vmatpush1.bf16.msra.mxu1 %v6246_v22 }
 0xc81   : > { %3197 = vmatprep.subr.bf16.mxu0 %v6156_v16  ;;  %3238 = vmatprep.subr.bf16.mxu1 %v6158_v3 }
 0xd36   : > { %v3001_v6 = vpop.f32.mrb[76].mxu0  ;;  %v3042_v53 = vpop.f32.mrb[76].mxu1 }
 0xd37   : > { %v3049_v11 = vadd.f32 %v3001_v6, %v2291_v36  ;;  %v3051_v12 = vadd.f32 %v3042_v53, %v2364_v18  ;;  %v3003_v13 = vpop.f32.mrb[77].mxu0  ;;  %v3044_v51 = vpop.f32.mrb[77].mxu1 }
 0xd38   : > { %v3050_v19 = vadd.f32 %v3003_v13, %v2293_v57  ;;  %v3052_v62 = vadd.f32 %v3044_v51, %v2366_v2  ;;  %v3005_v15 = vpop.f32.mrb[78].mxu0  ;;  %v3046_v60 = vpop.f32.mrb[78].mxu1 }
 0xd39   : > { %v4100_v59 = vmul.f32 -1.442695, %v3049_v11  ;;  %v3006_v45 = vpop.f32.mrb[79].mxu0  ;;  %v3047_v17 = vpop.f32.mrb[79].mxu1  ;;  %v4102_v34 = vmul.f32 -1.442695, %v3051_v12 }
 0xd3a   : > { %v4101_v58 = vmul.f32 -1.442695, %v3050_v19  ;;  %v6586_v45 = vld [vmem:[#allocation13 + $0x100] ss:$16 sps:$4 sm:$0xff]   ;;  %v6589_v17 = vld [vmem:[#allocation13 + $0x108] ss:$16 sps:$4 sm:$0xff]  }
 0xd3b   : > { %4634 = vpow2.f32 %v4100_v59 }
 0xd3c   : > { %4636 = vpow2.f32 %v4101_v58  ;;  %v6592_v58 = vld [vmem:[#allocation13 + $0x124] ss:$16 sps:$4 sm:$0xff]  }
 0xd3d   : > { %4638 = vtanh.f32 %v3052_v62 }
 0xd3e   : > { %4640 = vpow2.f32 %v4102_v34  ;;  %v6595_v34 = vld [vmem:[#allocation13 + $0x12c] ss:$16 sps:$4 sm:$0xff]  }
 0xd45   : > { %v4635_v48 = vpop.eup %4634 }
 0xd46   : > { %v3062_v23 = vadd.f32 1.0, %v4635_v48  ;;  %v4637_v44 = vpop.eup %4636  ;;  %v6600_v48 = vld [vmem:[#allocation13 + $0x120] ss:$16 sps:$4 sm:$0xff]  }
 0xd47   : > { %v3063_v1 = vadd.f32 1.0, %v4637_v44  ;;  %v4639_v36 = vpop.eup %4638  ;;  %v6606_v44 = vld [vmem:[#allocation13 + $0x144] ss:$16 sps:$4 sm:$0xff]  }
 0xd48   : > { %4642 = vrcp.f32 %v3062_v23  ;;  %v4641_v43 = vpop.eup %4640  ;;  %v6603_v23 = vld [vmem:[#allocation13 + $0x128] ss:$16 sps:$4 sm:$0xff]  }
 0xd49   : > { %4644 = vrcp.f32 %v3063_v1  ;;  %v3064_v42 = vadd.f32 1.0, %v4641_v43  ;;  %v6609_v1 = vld [vmem:[#allocation13 + $0x14c] ss:$16 sps:$4 sm:$0xff]   ;;  %v6615_v43 = vld [vmem:[#allocation13 + $0x148] ss:$16 sps:$4 sm:$0xff]  }
 0xd4b   : > { %4646 = vrcp.f32 %v3064_v42  ;;  %v6627_v42 = vld [vmem:[#allocation13 + $0x168] ss:$16 sps:$4 sm:$0xff]  }
 0xd52   : > { %v4643_v18 = vpop.eup %4642 }
 0xd53   : > { %v3073_v29 = vmul.f32 %v4643_v18, %v4639_v36  ;;  %v4645_v57 = vpop.eup %4644  ;;  %v6612_v36 = vld [vmem:[#allocation13 + $0x140] ss:$16 sps:$4 sm:$0xff]   ;;  %v6618_v18 = vld [vmem:[#allocation13 + $0x164] ss:$16 sps:$4 sm:$0xff]  }
 0xd54   : > { %v3072_v2 = vmul.f32 %v4645_v57, %v6491_v20  ;;  %v6624_v57 = vld [vmem:[#allocation13 + $0x160] ss:$16 sps:$4 sm:$0xff]  }
 0xd55   : > { %v4647_v53 = vpop.eup %4646 }
 0xd56   : > { %v6537_v6 = vadd.f32 %v3073_v29, %v3072_v2  ;;  %v6621_v29 = vld [vmem:[#allocation13 + $0x16c] ss:$16 sps:$4 sm:$0xff]   ;;  %v6630_v2 = vld [vmem:[#allocation13 + $0x184] ss:$16 sps:$4 sm:$0xff]  }
 0xd58   : > { %4648 = vtanh.f32 %v6537_v6 }
 0xd62   : > { %v4649_v11 = vpop.eup %4648 }
 0xd63   : > { %v3076_v12 = vmul.f32 %v4649_v11, %v4647_v53  ;;  %v6636_v53 = vld [vmem:[#allocation13 + $0x180] ss:$16 sps:$4 sm:$0xff]   ;;  %v6639_v11 = vld [vmem:[#allocation13 + $0x188] ss:$16 sps:$4 sm:$0xff]  }
 0xd65   : > { %v3081_v13 = vpack.c.bf16 %v3076_v12, %v3076_v12  ;;  %v6642_v12 = vld [vmem:[#allocation13 + $0x1a4] ss:$16 sps:$4 sm:$0xff]  }
 0xd67   : > { %3115 = vmatmul.mubr.bf16.vlgmr.msra.gmra.mrb[80].mxu0 %v3081_v13  ;;  %3156 = vmatmul.mubr.bf16.vlgmr.msra.gmra.mrb[80].mxu1 %v3081_v13  ;;  %v6645_v13 = vld [vmem:[#allocation13 + $0x1ac] ss:$16 sps:$4 sm:$0xff]  }
 0xd68   : > { %3198 = vmatpush1.bf16.msra.mxu0 %v6160_v50  ;;  %3239 = vmatpush1.bf16.msra.mxu1 %v6162_v63  ;;  %v7050_v50 = vld [vmem:[#allocation42_spill] sm:$0xff] }
 0xd69   : > { %3199 = vmatprep.subr.bf16.mxu0 %v6168_v35  ;;  %3240 = vmatprep.subr.bf16.mxu1 %v6170_v46  ;;  %v2297_v63 = vadd.f32 %v7050_v50, %v6371_v40  ;;  %v7051_v35 = vld [vmem:[#allocation43_spill] sm:$0xff]  ;;  %v6648_v50 = vld [vmem:[#allocation13 + $0x1a0] ss:$16 sps:$4 sm:$0xff]  }
 0xd6a   : > { %3229 = vmatprep.mubr.bf16.mxu0 %v6993_v39  ;;  %3270 = vmatprep.mubr.bf16.mxu1 %v6993_v39  ;;  %v2370_v46 = vadd.f32 %v7051_v35, %v6375_v32  ;;  %v6654_v35 = vld [vmem:[#allocation13 + $0x1c4] ss:$16 sps:$4 sm:$0xff]  }
 0xd6c   : > { %3200 = vmatpush1.bf16.msra.mxu0 %v6172_v5  ;;  %3241 = vmatpush1.bf16.msra.mxu1 %v6174_v28  ;;  %v7052_v5 = vld [vmem:[#allocation44_spill] sm:$0xff] }
 0xd6d   : > { %3201 = vmatprep.subr.bf16.mxu0 %v6180_v56  ;;  %3242 = vmatprep.subr.bf16.mxu1 %v6182_v8  ;;  %v2299_v28 = vadd.f32 %v7052_v5, %v6383_v21  ;;  %v7053_v56 = vld [vmem:[#allocation45_spill] sm:$0xff]  ;;  %v6660_v5 = vld [vmem:[#allocation13 + $0x1c0] ss:$16 sps:$4 sm:$0xff]  }
 0xd6e   : > { %v2372_v8 = vadd.f32 %v7053_v56, %v6387_v61  ;;  %v6666_v56 = vld [vmem:[#allocation13 + $0x1e4] ss:$16 sps:$4 sm:$0xff]  }
 0xd70   : > { %3202 = vmatpush1.bf16.msra.mxu0 %v6184_v24  ;;  %3243 = vmatpush1.bf16.msra.mxu1 %v6186_v25 }
 0xd71   : > { %3203 = vmatprep.subr.bf16.mxu0 %v6192_v26  ;;  %3244 = vmatprep.subr.bf16.mxu1 %v6194_v27 }
 0xd74   : > { %3204 = vmatpush1.bf16.msra.mxu0 %v6196_v30  ;;  %3245 = vmatpush1.bf16.msra.mxu1 %v6198_v31 }
 0xd75   : > { %3205 = vmatprep.subr.bf16.mxu0 %v6204_v33  ;;  %3246 = vmatprep.subr.bf16.mxu1 %v6206_v14 }
 0xd78   : > { %3206 = vmatpush1.bf16.msra.mxu0 %v6208_v4  ;;  %3247 = vmatpush1.bf16.msra.mxu1 %v6210_v37 }
 0xd79   : > { %3207 = vmatprep.subr.bf16.mxu0 %v6216_v38  ;;  %3248 = vmatprep.subr.bf16.mxu1 %v6218_v54 }
 0xd7c   : > { %3208 = vmatpush1.bf16.msra.mxu0 %v6220_v41  ;;  %3249 = vmatpush1.bf16.msra.mxu1 %v6222_v55 }
 0xd7d   : > { %3209 = vmatprep.subr.bf16.mxu0 %v6228_v47  ;;  %3250 = vmatprep.subr.bf16.mxu1 %v6230_v49 }
 0xd80   : > { %3210 = vmatpush1.bf16.msra.mxu0 %v6232_v52  ;;  %3251 = vmatpush1.bf16.msra.mxu1 %v6234_v0 }
 0xd81   : > { %3211 = vmatprep.subr.bf16.mxu0 %v6240_v7  ;;  %3252 = vmatprep.subr.bf16.mxu1 %v6242_v9 }
 0xd84   : > { %3212 = vmatpush1.bf16.msra.mxu0 %v6244_v10  ;;  %3253 = vmatpush1.bf16.msra.mxu1 %v6246_v22 }
 0xd85   : > { %3312 = vmatprep.subr.bf16.mxu0 %v6156_v16  ;;  %3353 = vmatprep.subr.bf16.mxu1 %v6158_v3 }
 0xe3a   : > { %v3116_v24 = vpop.f32.mrb[80].mxu0  ;;  %v3157_v25 = vpop.f32.mrb[80].mxu1 }
 0xe3b   : > { %v3164_v26 = vadd.f32 %v3116_v24, %v2297_v63  ;;  %v3166_v27 = vadd.f32 %v3157_v25, %v2370_v46  ;;  %v3118_v30 = vpop.f32.mrb[81].mxu0  ;;  %v3159_v16 = vpop.f32.mrb[81].mxu1  ;;  %v6651_v63 = vld [vmem:[#allocation13 + $0x1a8] ss:$16 sps:$4 sm:$0xff]   ;;  %v6657_v46 = vld [vmem:[#allocation13 + $0x1cc] ss:$16 sps:$4 sm:$0xff]  }
 0xe3c   : > { %v3165_v31 = vadd.f32 %v3118_v30, %v2299_v28  ;;  %v3167_v3 = vadd.f32 %v3159_v16, %v2372_v8  ;;  %v3120_v33 = vpop.f32.mrb[82].mxu0  ;;  %v3161_v14 = vpop.f32.mrb[82].mxu1  ;;  %v6663_v28 = vld [vmem:[#allocation13 + $0x1c8] ss:$16 sps:$4 sm:$0xff]   ;;  %v6669_v8 = vld [vmem:[#allocation13 + $0x1ec] ss:$16 sps:$4 sm:$0xff]  }
 0xe3d   : > { %v4103_v4 = vmul.f32 -1.442695, %v3164_v26  ;;  %v3121_v37 = vpop.f32.mrb[83].mxu0  ;;  %v3162_v38 = vpop.f32.mrb[83].mxu1  ;;  %v4105_v41 = vmul.f32 -1.442695, %v3166_v27 }
 0xe3e   : > { %v4104_v54 = vmul.f32 -1.442695, %v3165_v31  ;;  %v6672_v24 = vld [vmem:[#allocation13 + $0x1e0] ss:$16 sps:$4 sm:$0xff]   ;;  %v6675_v25 = vld [vmem:[#allocation13 + $0x1e8] ss:$16 sps:$4 sm:$0xff]  }
 0xe3f   : > { %4650 = vpow2.f32 %v4103_v4  ;;  %v4776_v26 = vld [vmem:[#allocation13 + $0x104] ss:$16 sps:$4 sm:$0xff]   ;;  %v4777_v27 = vld [vmem:[#allocation13 + $0x10c] ss:$16 sps:$4 sm:$0xff]  }
 0xe40   : > { %4652 = vpow2.f32 %v4104_v54  ;;  %v7054_v30 = vld [vmem:[#allocation46_spill] sm:$0xff]  ;;  %v7055_v31 = vld [vmem:[#allocation47_spill] sm:$0xff]  ;;  %v7056_v33 = vld [vmem:[#allocation48_spill] sm:$0xff] }
 0xe41   : > { %4654 = vtanh.f32 %v3167_v3  ;;  %v2301_v16 = vadd.f32 %v7054_v30, %v6371_v40  ;;  %v2374_v3 = vadd.f32 %v7055_v31, %v6375_v32  ;;  %v2303_v14 = vadd.f32 %v7056_v33, %v6383_v21  ;;  %v7057_v4 = vld [vmem:[#allocation49_spill] sm:$0xff] }
 0xe42   : > { %4656 = vpow2.f32 %v4105_v41  ;;  %v2376_v37 = vadd.f32 %v7057_v4, %v6387_v61 }
 0xe49   : > { %v4651_v55 = vpop.eup %4650 }
 0xe4a   : > { %v3177_v47 = vadd.f32 1.0, %v4651_v55  ;;  %v4653_v49 = vpop.eup %4652 }
 0xe4b   : > { %v3178_v52 = vadd.f32 1.0, %v4653_v49  ;;  %v4655_v0 = vpop.eup %4654 }
 0xe4c   : > { %4658 = vrcp.f32 %v3177_v47  ;;  %v4657_v7 = vpop.eup %4656 }
 0xe4d   : > { %4660 = vrcp.f32 %v3178_v52  ;;  %v3179_v20 = vadd.f32 1.0, %v4657_v7 }
 0xe4f   : > { %4662 = vrcp.f32 %v3179_v20 }
 0xe56   : > { %v4659_v9 = vpop.eup %4658 }
 0xe57   : > { %v3188_v10 = vmul.f32 %v4659_v9, %v4655_v0  ;;  %v4661_v22 = vpop.eup %4660 }
 0xe58   : > { %v3187_v51 = vmul.f32 %v4661_v22, %v6537_v6  ;;  %v6633_v6 = vld [vmem:[#allocation13 + $0x18c] ss:$16 sps:$4 sm:$0xff]  }
 0xe59   : > { %v4663_v62 = vpop.eup %4662 }
 0xe5a   : > { %v6583_v19 = vadd.f32 %v3188_v10, %v3187_v51 }
 0xe5c   : > { %4664 = vtanh.f32 %v6583_v19 }
 0xe66   : > { %v4665_v15 = vpop.eup %4664 }
 0xe67   : > { %v3191_v60 = vmul.f32 %v4665_v15, %v4663_v62 }
 0xe69   : > { %v3196_v59 = vpack.c.bf16 %v3191_v60, %v3191_v60 }
 0xe6b   : > { %3230 = vmatmul.mubr.bf16.vlgmr.msra.gmra.mrb[84].mxu0 %v3196_v59  ;;  %3271 = vmatmul.mubr.bf16.vlgmr.msra.gmra.mrb[84].mxu1 %v3196_v59 }
 0xe6c   : > { %3313 = vmatpush1.bf16.msra.mxu0 %v6586_v45  ;;  %3354 = vmatpush1.bf16.msra.mxu1 %v6589_v17 }
 0xe6d   : > { %3314 = vmatprep.subr.bf16.mxu0 %v6592_v58  ;;  %3355 = vmatprep.subr.bf16.mxu1 %v6595_v34 }
 0xe6e   : > { %3344 = vmatprep.mubr.bf16.mxu0 %v6993_v39  ;;  %3385 = vmatprep.mubr.bf16.mxu1 %v6993_v39 }
 0xe70   : > { %3315 = vmatpush1.bf16.msra.mxu0 %v6600_v48  ;;  %3356 = vmatpush1.bf16.msra.mxu1 %v6603_v23 }
 0xe71   : > { %3316 = vmatprep.subr.bf16.mxu0 %v6606_v44  ;;  %3357 = vmatprep.subr.bf16.mxu1 %v6609_v1 }
 0xe74   : > { %3317 = vmatpush1.bf16.msra.mxu0 %v6612_v36  ;;  %3358 = vmatpush1.bf16.msra.mxu1 %v6615_v43 }
 0xe75   : > { %3318 = vmatprep.subr.bf16.mxu0 %v6618_v18  ;;  %3359 = vmatprep.subr.bf16.mxu1 %v6621_v29 }
 0xe78   : > { %3319 = vmatpush1.bf16.msra.mxu0 %v6624_v57  ;;  %3360 = vmatpush1.bf16.msra.mxu1 %v6627_v42 }
 0xe79   : > { %3320 = vmatprep.subr.bf16.mxu0 %v6630_v2  ;;  %3361 = vmatprep.subr.bf16.mxu1 %v6633_v6 }
 0xe7c   : > { %3321 = vmatpush1.bf16.msra.mxu0 %v6636_v53  ;;  %3362 = vmatpush1.bf16.msra.mxu1 %v6639_v11 }
 0xe7d   : > { %3322 = vmatprep.subr.bf16.mxu0 %v6642_v12  ;;  %3363 = vmatprep.subr.bf16.mxu1 %v6645_v13 }
 0xe80   : > { %3323 = vmatpush1.bf16.msra.mxu0 %v6648_v50  ;;  %3364 = vmatpush1.bf16.msra.mxu1 %v6651_v63 }
 0xe81   : > { %3324 = vmatprep.subr.bf16.mxu0 %v6654_v35  ;;  %3365 = vmatprep.subr.bf16.mxu1 %v6657_v46 }
 0xe84   : > { %3325 = vmatpush1.bf16.msra.mxu0 %v6660_v5  ;;  %3366 = vmatpush1.bf16.msra.mxu1 %v6663_v28 }
 0xe85   : > { %3326 = vmatprep.subr.bf16.mxu0 %v6666_v56  ;;  %3367 = vmatprep.subr.bf16.mxu1 %v6669_v8 }
 0xe88   : > { %3327 = vmatpush1.bf16.msra.mxu0 %v6672_v24  ;;  %3368 = vmatpush1.bf16.msra.mxu1 %v6675_v25 }
 0xe89   : > { %3427 = vmatprep.subr.bf16.mxu0 %v4776_v26  ;;  %3468 = vmatprep.subr.bf16.mxu1 %v4777_v27 }
 0xf3e   : > { %v3231_v38 = vpop.f32.mrb[84].mxu0  ;;  %v3272_v54 = vpop.f32.mrb[84].mxu1 }
 0xf3f   : > { %v3279_v41 = vadd.f32 %v3231_v38, %v2301_v16  ;;  %v3281_v55 = vadd.f32 %v3272_v54, %v2374_v3  ;;  %v3233_v47 = vpop.f32.mrb[85].mxu0  ;;  %v3274_v49 = vpop.f32.mrb[85].mxu1 }
 0xf40   : > { %v3280_v52 = vadd.f32 %v3233_v47, %v2303_v14  ;;  %v3282_v0 = vadd.f32 %v3274_v49, %v2376_v37  ;;  %v3235_v7 = vpop.f32.mrb[86].mxu0  ;;  %v3276_v9 = vpop.f32.mrb[86].mxu1 }
 0xf41   : > { %v4106_v10 = vmul.f32 -1.442695, %v3279_v41  ;;  %v3236_v22 = vpop.f32.mrb[87].mxu0  ;;  %v3277_v20 = vpop.f32.mrb[87].mxu1  ;;  %v4108_v62 = vmul.f32 -1.442695, %v3281_v55 }
 0xf42   : > { %v4107_v51 = vmul.f32 -1.442695, %v3280_v52  ;;  %v5134_v22 = vmov 0.0   ;;  %v4451_v20 = vld [vmem:[#allocation15 + $0x8] sm:$0xff]  }
 0xf43   : > { %4666 = vpow2.f32 %v4106_v10  ;;  %v4450_v10 = vld [vmem:[#allocation15] sm:$0xff]  }
 0xf44   : > { %4668 = vpow2.f32 %v4107_v51  ;;  %v4452_v51 = vld [vmem:[#allocation15 + $0x10] sm:$0xff]  }
 0xf45   : > { %4670 = vtanh.f32 %v3282_v0 }
 0xf46   : > { %4672 = vpow2.f32 %v4108_v62  ;;  %v4453_v62 = vld [vmem:[#allocation15 + $0x18] sm:$0xff]  }
 0xf4d   : > { %v4667_v15 = vpop.eup %4666 }
 0xf4e   : > { %v3292_v60 = vadd.f32 1.0, %v4667_v15  ;;  %v4669_v59 = vpop.eup %4668  ;;  %v4454_v15 = vld [vmem:[#allocation15 + $0x20] sm:$0xff]  }
 0xf4f   : > { %v3293_v26 = vadd.f32 1.0, %v4669_v59  ;;  %v4671_v27 = vpop.eup %4670  ;;  %v4456_v59 = vld [vmem:[#allocation15 + $0x30] sm:$0xff]  }
 0xf50   : > { %4674 = vrcp.f32 %v3292_v60  ;;  %v4673_v30 = vpop.eup %4672  ;;  %v4455_v60 = vld [vmem:[#allocation15 + $0x28] sm:$0xff]  }
 0xf51   : > { %4676 = vrcp.f32 %v3293_v26  ;;  %v3294_v33 = vadd.f32 1.0, %v4673_v30  ;;  %v4457_v26 = vld [vmem:[#allocation15 + $0x38] sm:$0xff]  }
 0xf53   : > { %4678 = vrcp.f32 %v3294_v33 }
 0xf5a   : > { %v4675_v16 = vpop.eup %4674 }
 0xf5b   : > { %v3303_v31 = vmul.f32 %v4675_v16, %v4671_v27  ;;  %v4677_v3 = vpop.eup %4676  ;;  %v7062_v27 = vld [vmem:[#allocation54_spill] sm:$0xff]  ;;  %v7063_v16 = vld [vmem:[#allocation55_spill] sm:$0xff] }
 0xf5c   : > { %v3302_v14 = vmul.f32 %v4677_v3, %v6583_v19  ;;  %v2311_v30 = vadd.f32 %v7062_v27, %v6371_v40  ;;  %v7064_v3 = vld [vmem:[#allocation34_spill] sm:$0xff] }
 0xf5d   : > { %v4679_v37 = vpop.eup %4678  ;;  %v2313_v33 = vadd.f32 %v7064_v3, %v6383_v21 }
 0xf5e   : > { %v6687_v4 = vadd.f32 %v3303_v31, %v3302_v14  ;;  %v2384_v31 = vadd.f32 %v7063_v16, %v6375_v32  ;;  %v7065_v14 = vld [vmem:[#allocation56_spill] sm:$0xff] }
 0xf60   : > { %4680 = vtanh.f32 %v6687_v4 }
 0xf6a   : > { %v4681_v38 = vpop.eup %4680 }
 0xf6b   : > { %v3306_v54 = vmul.f32 %v4681_v38, %v4679_v37 }
 0xf6d   : > { %v3311_v41 = vpack.c.bf16 %v3306_v54, %v3306_v54 }
 0xf6f   : > { %3345 = vmatmul.mubr.bf16.vlgmr.msra.gmra.mrb[88].mxu0 %v3311_v41  ;;  %3386 = vmatmul.mubr.bf16.vlgmr.msra.gmra.mrb[88].mxu1 %v3311_v41 }
 0xf70   : > { %3428 = vmatpush1.bf16.msra.mxu0 %v6586_v45  ;;  %3469 = vmatpush1.bf16.msra.mxu1 %v6589_v17  ;;  %v7059_v45 = vld [vmem:[#allocation51_spill] sm:$0xff] }
 0xf71   : > { %3429 = vmatprep.subr.bf16.mxu0 %v6592_v58  ;;  %3470 = vmatprep.subr.bf16.mxu1 %v6595_v34  ;;  %v2380_v17 = vadd.f32 %v7059_v45, %v6375_v32  ;;  %v7060_v58 = vld [vmem:[#allocation52_spill] sm:$0xff] }
 0xf72   : > { %3459 = vmatprep.mubr.bf16.mxu0 %v6993_v39  ;;  %3500 = vmatprep.mubr.bf16.mxu1 %v6993_v39  ;;  %v7058_v39 = vld [vmem:[#allocation50_spill] sm:$0xff]  ;;  %v2309_v34 = vadd.f32 %v7060_v58, %v6383_v21 }
 0xf73   : > { %v2307_v19 = vadd.f32 %v7058_v39, %v6371_v40 }
 0xf74   : > { %3430 = vmatpush1.bf16.msra.mxu0 %v6600_v48  ;;  %3471 = vmatpush1.bf16.msra.mxu1 %v6603_v23  ;;  %v7061_v48 = vld [vmem:[#allocation53_spill] sm:$0xff] }
 0xf75   : > { %3431 = vmatprep.subr.bf16.mxu0 %v6606_v44  ;;  %3472 = vmatprep.subr.bf16.mxu1 %v6609_v1  ;;  %v2382_v23 = vadd.f32 %v7061_v48, %v6387_v61 }
 0xf78   : > { %3432 = vmatpush1.bf16.msra.mxu0 %v6612_v36  ;;  %3473 = vmatpush1.bf16.msra.mxu1 %v6615_v43 }
 0xf79   : > { %3433 = vmatprep.subr.bf16.mxu0 %v6618_v18  ;;  %3474 = vmatprep.subr.bf16.mxu1 %v6621_v29 }
 0xf7c   : > { %3434 = vmatpush1.bf16.msra.mxu0 %v6624_v57  ;;  %3475 = vmatpush1.bf16.msra.mxu1 %v6627_v42 }
 0xf7d   : > { %3435 = vmatprep.subr.bf16.mxu0 %v6630_v2  ;;  %3476 = vmatprep.subr.bf16.mxu1 %v6633_v6 }
 0xf80   : > { %3436 = vmatpush1.bf16.msra.mxu0 %v6636_v53  ;;  %3477 = vmatpush1.bf16.msra.mxu1 %v6639_v11 }
 0xf81   : > { %3437 = vmatprep.subr.bf16.mxu0 %v6642_v12  ;;  %3478 = vmatprep.subr.bf16.mxu1 %v6645_v13 }
 0xf84   : > { %3438 = vmatpush1.bf16.msra.mxu0 %v6648_v50  ;;  %3479 = vmatpush1.bf16.msra.mxu1 %v6651_v63 }
 0xf85   : > { %3439 = vmatprep.subr.bf16.mxu0 %v6654_v35  ;;  %3480 = vmatprep.subr.bf16.mxu1 %v6657_v46 }
 0xf88   : > { %3440 = vmatpush1.bf16.msra.mxu0 %v6660_v5  ;;  %3481 = vmatpush1.bf16.msra.mxu1 %v6663_v28 }
 0xf89   : > { %3441 = vmatprep.subr.bf16.mxu0 %v6666_v56  ;;  %3482 = vmatprep.subr.bf16.mxu1 %v6669_v8 }
 0xf8c   : > { %3442 = vmatpush1.bf16.msra.mxu0 %v6672_v24  ;;  %3483 = vmatpush1.bf16.msra.mxu1 %v6675_v25 }
 0xf8d   : > { %4143 = vmatprep.subr.bf16.mxu0 %v5134_v22 }
0x1042   : > { %v3346_v44 = vpop.f32.mrb[88].mxu0  ;;  %v3387_v1 = vpop.f32.mrb[88].mxu1 }
0x1043   : > { %v3394_v36 = vadd.f32 %v3346_v44, %v2307_v19  ;;  %v3396_v43 = vadd.f32 %v3387_v1, %v2380_v17  ;;  %v3348_v18 = vpop.f32.mrb[89].mxu0  ;;  %v3389_v29 = vpop.f32.mrb[89].mxu1 }
0x1044   : > { %v3395_v57 = vadd.f32 %v3348_v18, %v2309_v34  ;;  %v3397_v42 = vadd.f32 %v3389_v29, %v2382_v23  ;;  %v3350_v2 = vpop.f32.mrb[90].mxu0  ;;  %v3391_v6 = vpop.f32.mrb[90].mxu1 }
0x1045   : > { %v4109_v53 = vmul.f32 -1.442695, %v3394_v36  ;;  %v3351_v11 = vpop.f32.mrb[91].mxu0  ;;  %v3392_v12 = vpop.f32.mrb[91].mxu1  ;;  %v4111_v50 = vmul.f32 -1.442695, %v3396_v43 }
0x1046   : > { %v4110_v13 = vmul.f32 -1.442695, %v3395_v57 }
0x1047   : > { %4682 = vpow2.f32 %v4109_v53 }
0x1048   : > { %4684 = vpow2.f32 %v4110_v13 }
0x1049   : > { %4686 = vtanh.f32 %v3397_v42 }
0x104a   : > { %4688 = vpow2.f32 %v4111_v50 }
0x1051   : > { %v4683_v63 = vpop.eup %4682 }
0x1052   : > { %v3407_v35 = vadd.f32 1.0, %v4683_v63  ;;  %v4685_v46 = vpop.eup %4684 }
0x1053   : > { %v3408_v5 = vadd.f32 1.0, %v4685_v46  ;;  %v4687_v28 = vpop.eup %4686 }
0x1054   : > { %4690 = vrcp.f32 %v3407_v35  ;;  %v4689_v56 = vpop.eup %4688 }
0x1055   : > { %4692 = vrcp.f32 %v3408_v5  ;;  %v3409_v55 = vadd.f32 1.0, %v4689_v56 }
0x1057   : > { %4694 = vrcp.f32 %v3409_v55 }
0x105e   : > { %v4691_v8 = vpop.eup %4690 }
0x105f   : > { %v3418_v24 = vmul.f32 %v4691_v8, %v4687_v28  ;;  %v4693_v25 = vpop.eup %4692 }
0x1060   : > { %v3417_v47 = vmul.f32 %v4693_v25, %v6687_v4  ;;  %v2386_v4 = vadd.f32 %v7065_v14, %v6387_v61 }
0x1061   : > { %v4695_v52 = vpop.eup %4694 }
0x1062   : > { %v6731_v49 = vadd.f32 %v3418_v24, %v3417_v47 }
0x1064   : > { %4696 = vtanh.f32 %v6731_v49 }
0x106e   : > { %v4697_v0 = vpop.eup %4696 }
0x106f   : > { %v3421_v7 = vmul.f32 %v4697_v0, %v4695_v52 }
0x1071   : > { %v3426_v9 = vpack.c.bf16 %v3421_v7, %v3421_v7 }
0x1073   : > { %3460 = vmatmul.mubr.bf16.vlgmr.msra.gmra.mrb[92].mxu0 %v3426_v9  ;;  %3501 = vmatmul.mubr.bf16.vlgmr.msra.gmra.mrb[92].mxu1 %v3426_v9 }
0x1074   : > { %4144 = vmatpush3.bf16.msra.mxu0 %v4450_v10  ;;  %4159 = vmatprep.mubr.msk.bf16.mxu0 %vm5135_vm1, %v5134_v22 }
0x1075   : > { %4145 = vmatprep.subr.bf16.mxu0 %v5134_v22 }
0x1078   : > { %4146 = vmatpush3.bf16.msra.mxu0 %v4451_v20 }
0x1079   : > { %4147 = vmatprep.subr.bf16.mxu0 %v5134_v22 }
0x107c   : > { %4148 = vmatpush3.bf16.msra.mxu0 %v4452_v51 }
0x107d   : > { %4149 = vmatprep.subr.bf16.mxu0 %v5134_v22 }
0x1080   : > { %4150 = vmatpush3.bf16.msra.mxu0 %v4453_v62 }
0x1081   : > { %4151 = vmatprep.subr.bf16.mxu0 %v5134_v22 }
0x1084   : > { %4152 = vmatpush3.bf16.msra.mxu0 %v4454_v15 }
0x1085   : > { %4153 = vmatprep.subr.bf16.mxu0 %v5134_v22 }
0x1088   : > { %4154 = vmatpush3.bf16.msra.mxu0 %v4455_v60 }
0x1089   : > { %4155 = vmatprep.subr.bf16.mxu0 %v5134_v22 }
0x108c   : > { %4156 = vmatpush3.bf16.msra.mxu0 %v4456_v59 }
0x108d   : > { %4157 = vmatprep.subr.bf16.mxu0 %v5134_v22 }
0x1090   : > { %4158 = vmatpush3.bf16.msra.mxu0 %v4457_v26 }
0x1146   : > { %v3461_v37 = vpop.f32.mrb[92].mxu0  ;;  %v3502_v38 = vpop.f32.mrb[92].mxu1 }
0x1147   : > { %v3509_v54 = vadd.f32 %v3461_v37, %v2311_v30  ;;  %v3511_v41 = vadd.f32 %v3502_v38, %v2384_v31  ;;  %v3463_v39 = vpop.f32.mrb[93].mxu0  ;;  %v3504_v19 = vpop.f32.mrb[93].mxu1 }
0x1148   : > { %v3510_v45 = vadd.f32 %v3463_v39, %v2313_v33  ;;  %v3512_v17 = vadd.f32 %v3504_v19, %v2386_v4  ;;  %v3465_v58 = vpop.f32.mrb[94].mxu0  ;;  %v3506_v34 = vpop.f32.mrb[94].mxu1 }
0x1149   : > { %v4112_v40 = vmul.f32 -1.442695, %v3509_v54  ;;  %v3466_v48 = vpop.f32.mrb[95].mxu0  ;;  %v3507_v23 = vpop.f32.mrb[95].mxu1  ;;  %v4114_v21 = vmul.f32 -1.442695, %v3511_v41 }
0x114a   : > { %v4113_v32 = vmul.f32 -1.442695, %v3510_v45 }
0x114b   : > { %4698 = vpow2.f32 %v4112_v40 }
0x114c   : > { %4700 = vpow2.f32 %v4113_v32 }
0x114d   : > { %4702 = vtanh.f32 %v3512_v17 }
0x114e   : > { %4704 = vpow2.f32 %v4114_v21 }
0x1155   : > { %v4699_v44 = vpop.eup %4698 }
0x1156   : > { %v3522_v1 = vadd.f32 1.0, %v4699_v44  ;;  %v4701_v61 = vpop.eup %4700 }
0x1157   : > { %v3523_v36 = vadd.f32 1.0, %v4701_v61  ;;  %v4703_v43 = vpop.eup %4702 }
0x1158   : > { %4706 = vrcp.f32 %v3522_v1  ;;  %v4705_v18 = vpop.eup %4704 }
0x1159   : > { %4708 = vrcp.f32 %v3523_v36  ;;  %v3524_v2 = vadd.f32 1.0, %v4705_v18 }
0x115b   : > { %4710 = vrcp.f32 %v3524_v2 }
0x1162   : > { %v4707_v29 = vpop.eup %4706 }
0x1163   : > { %v3533_v57 = vmul.f32 %v4707_v29, %v4703_v43  ;;  %v4709_v42 = vpop.eup %4708 }
0x1164   : > { %v3532_v6 = vmul.f32 %v4709_v42, %v6731_v49 }
0x1165   : > { %v4711_v11 = vpop.eup %4710 }
0x1166   : > { %v3534_v53 = vadd.f32 %v3533_v57, %v3532_v6 }
0x1168   : > { %4712 = vtanh.f32 %v3534_v53  ;;  %4116 = vst [vmem:[%s6272_s21 + $0x8] sm:$0xff] %v3534_v53 }
0x1172   : > { %v4713_v12 = vpop.eup %4712 }
0x1173   : > { %v3536_v13 = vmul.f32 %v4713_v12, %v4711_v11 }
0x1175   : > { %4115 = vst [vmem:[%s6300_s17 + $0x8] sm:$0xff] %v3536_v13  ;;  %v3541_v50 = vpack.c.bf16 %v3536_v13, %v3536_v13 }
0x1177   : > { %4160 = vmatmul.mubr.bf16.vlgmr.msra.gmra.mrb[96].mxu0 %v3541_v50 }
0x1178   : > { %4993 = shalt.err (!%p4990_p12)
}
0x1179   : > { %s4994_s12 = scalar_lea.hbm %s6756_s27, 256  ;;  %s4998_s8 = scalar_lea.hbm %s7067_s15, 512 }
0x117a   : > { %p4995_p8 = scmp.ne.s32.totalorder %s6756_s27, %s4994_s12  ;;  %p4999_p1 = scmp.lt.u32.totalorder %s6756_s27, %s7067_s15 }
0x117b   : > { %p5000_p6 = scmp.lt.u32.totalorder %s4998_s8, %s4994_s12  ;;  %p5002_p5 = scmp.lt.u32.totalorder %s4994_s12, %s6756_s27 }
0x117c   : > { %p4996_p10 = pnand %p4995_p8, %p7068_p2 }
0x117d   : > { %p5001_p3 = por %p5000_p6, %p4999_p1 }
0x117e   : > { %p4997_p0 = pneg %p4996_p10 }
0x117f   : > { %p5003_p4 = por %p5002_p5, %p5001_p3 }
0x1181   : > { %p5004_p11 = pnand %p5003_p4, %p4997_p0 }
0x1183   : > { %5007 = shalt.err (!%p5004_p11)
}
0x1184   : > { %s5137_s14 = smov 128   ;;  %s5138_s17 = smov 256  }
0x1185   : > { %s5139_s9 = smov 8   ;;  %s7069_s29 = sld [smem:[#allocation64_spill]] }
0x1186   : > { %4186 = dma.vmem_to_hbm [thread:$0]  (%p7068_p2), %s6747_s19, 256, %s6756_s27, %s6760_s20, %s5137_s14, %s5138_s17, %s5139_s9  }
0x1187   : > { %s5008_s26 = scalar_lea.vmem %s6789_s1, 256  ;;  %s5140_s30 = smov [#allocation19]  }
0x1188   : > { %p5009_p13 = scmp.ne.s32.totalorder %s6789_s1, %s5008_s26  ;;  %s5012_s25 = sshll.u32 %s5140_s30, 4  ;;  %s5013_s25 = int_to_ptr.vmem [resolvable:$false] %s5012_s25 }
0x1189   : > { %s5014_s19 = scalar_lea.vmem %s5013_s25, 512  ;;  %p5015_p12 = scmp.lt.s32.totalorder %s6789_s1, %s5013_s25 }
0x118a   : > { %p5010_p7 = pnand %p5009_p13, %p7068_p2  ;;  %p5016_p8 = scmp.lt.s32.totalorder %s5014_s19, %s5008_s26 }
0x118b   : > { %s6795_s11 = scalar_lea.hbm %s7069_s29, %s6750_s6 }
0x118c   : > { %p5011_p9 = pneg %p5010_p7  ;;  %p5017_p10 = por %p5016_p8, %p5015_p12 }
0x118e   : > { %p5018_p0 = pnand %p5017_p10, %p5011_p9 }
0x1190   : > { %5021 = shalt.err (!%p5018_p0)
}
0x1191   : > { %s5022_s21 = scalar_lea.hbm %s6795_s11, 256  ;;  %s5026_s3 = scalar_lea.hbm %s7069_s29, 512 }
0x1192   : > { %p5023_p1 = scmp.ne.s32.totalorder %s6795_s11, %s5022_s21  ;;  %p5027_p5 = scmp.lt.u32.totalorder %s6795_s11, %s7069_s29 }
0x1193   : > { %p5028_p4 = scmp.lt.u32.totalorder %s5026_s3, %s5022_s21  ;;  %p5030_p13 = scmp.lt.u32.totalorder %s5022_s21, %s6795_s11 }
0x1194   : > { %p5024_p6 = pnand %p5023_p1, %p7068_p2 }
0x1195   : > { %p5029_p11 = por %p5028_p4, %p5027_p5 }
0x1196   : > { %p5025_p3 = pneg %p5024_p6 }
0x1197   : > { %p5031_p7 = por %p5030_p13, %p5029_p11 }
0x1199   : > { %p5032_p9 = pnand %p5031_p7, %p5025_p3 }
0x119b   : > { %5035 = shalt.err (!%p5032_p9)
}
0x119c   : > { %4187 = dma.vmem_to_hbm [thread:$0]  (%p7068_p2), %s6789_s1, 256, %s6795_s11, %s6760_s20, %s5137_s14, %s5138_s17, %s5139_s9  }
0x119d   : > { %s3941_s22 = sshll.u32 %s5506_s16, 3  ;;  %s7070_s10 = sld [smem:[#allocation61_spill]] }
0x119e   : > { %s540_s26 = scalar_lea.vmem [#allocation16], %s3941_s22  ;;  %s7071_s21 = sld [smem:[#allocation62_spill]] }
0x119f   : > { %s3678_s30 = sshll.u32 %s540_s26, 4  ;;  %s3655_s1 = scalar_lea.sflag [#allocation6], %s5506_s16  ;;  %s6832_s30 = int_to_ptr.vmem [resolvable:$true] %s3678_s30 }
0x11a0   : > { %s5036_s20 = scalar_lea.vmem %s6832_s30, 128  ;;  %s5141_s14 = smov [#allocation16]  }
0x11a1   : > { %p5037_p12 = scmp.ne.s32.totalorder %s6832_s30, %s5036_s20  ;;  %s5040_s17 = sshll.u32 %s5141_s14, 4  ;;  %s5041_s17 = int_to_ptr.vmem [resolvable:$false] %s5040_s17 }
0x11a2   : > { %s5042_s9 = scalar_lea.vmem %s5041_s17, 256  ;;  %p5043_p0 = scmp.lt.s32.totalorder %s6832_s30, %s5041_s17 }
0x11a3   : > { %v4117_v63 = vld [vmem:[%s7070_s10] ss:$0 sm:$0xff]  ;;  %p5038_p8 = pnand %p5037_p12, %p7068_p2  ;;  %p5044_p1 = scmp.lt.s32.totalorder %s5042_s9, %s5036_s20 }
0x11a4   : > { %s6830_s27 = scalar_lea.hbm %s7071_s21, %s6750_s6 }
0x11a5   : > { %p5039_p10 = pneg %p5038_p8  ;;  %p5045_p6 = por %p5044_p1, %p5043_p0 }
0x11a7   : > { %p5046_p3 = pnand %p5045_p6, %p5039_p10 }
0x124a   : > { %v3647_v35 = vpop.f32.mrb[96].mxu0 }
0x124b   : > { %v3648_v46 = vadd.f32 %v4117_v63, %v3647_v35  ;;  %v4161_v5 = vpop.f32.mrb[97].mxu0 }
0x124c   : > { %v3650_v28 = vpop.f32.mrb[98].mxu0 }
0x124d   : > { %3653 = vst [vmem:[%s540_s26] sm:$0xff] %v3648_v46  ;;  %v4162_v56 = vpop.f32.mrb[99].mxu0 }
0x124e   : > { %5049 = shalt.err (!%p5046_p3)
}
0x124f   : > { %s5050_s16 = scalar_lea.hbm %s6830_s27, 128  ;;  %s5054_s12 = scalar_lea.hbm %s7071_s21, 256 }
0x1250   : > { %p5051_p5 = scmp.ne.s32.totalorder %s6830_s27, %s5050_s16  ;;  %p5055_p13 = scmp.lt.u32.totalorder %s6830_s27, %s7071_s21 }
0x1251   : > { %p5056_p7 = scmp.lt.u32.totalorder %s5054_s12, %s5050_s16  ;;  %p5058_p12 = scmp.lt.u32.totalorder %s5050_s16, %s6830_s27 }
0x1252   : > { %p5052_p4 = pnand %p5051_p5, %p7068_p2 }
0x1253   : > { %p5057_p9 = por %p5056_p7, %p5055_p13 }
0x1254   : > { %p5053_p11 = pneg %p5052_p4 }
0x1255   : > { %p5059_p8 = por %p5058_p12, %p5057_p9 }
0x1257   : > { %p5060_p10 = pnand %p5059_p8, %p5053_p11 }
0x1259   : > { %5063 = shalt.err (!%p5060_p10)
}
0x125a   : > { %4185 = dma.vmem_to_hbm [thread:$0]  (%p7068_p2), %s6832_s30, 128, %s6830_s27, %s3655_s1  }
0x125b PF: > { %s7072_s8 = sld [smem:[#allocation26_spill]]  ;;  %s7073_s22 = sld [smem:[#allocation30_spill]] }
0x125c   : > { %s7074_s23 = sld [smem:[#allocation28_spill]] }
0x1261   : > { %s3720_s13 = sand.u32 1, %s7072_s8   ;;  %p7075_p0 = scmp.ne.s32.totalorder %s7073_s22, 0 }
0x1262   : > { %p7076_p1 = scmp.ge.s32.totalorder %s7074_s23, 2  ;;  %s3721_s10 = scalar_lea.sflag [#allocation6], %s3720_s13 }
0x1264   : > { %p4215_p6 = pnand %p7076_p1, %p7075_p0 }
0x1266   : > { %5097 = dma.done.wait (!%p4215_p6), %s3721_s10, 128  }
0x1267   : > { %5099 = vsyncadd (!%p4215_p6), %s3721_s10, 4294967168  ;;  %s7077_s26 = sadd.s32 4294967294, %s7074_s23  }
0x1268   : > { %s3729_s25 = sand.u32 1, %s7077_s26  }
0x1269   : > { %s3730_s19 = scalar_lea.sflag [#allocation18], %s3729_s25 }
0x126a   : > { %5101 = dma.done.wait (!%p4215_p6), %s3730_s19, 512  }
0x126b   : > { %5103 = vsyncadd (!%p4215_p6), %s3730_s19, 4294966784  ;;  %s7078_s20 = sld [smem:[#allocation31_spill]]  ;;  %s7079_s24 = sld [smem:[#allocation27_spill]] }
0x126c   : > { %s7080_s19 = sld [smem:[#allocation33_spill]]  ;;  %s7081_s17 = smov %s5110_s18 }
0x1271   : > { %p33_p2 = scmp.ge.s32.totalorder %s7078_s20, 4   ;;  %s7082_s18 = smov %s7079_s24 }
0x1273   :  { %35 = sbr.rel (!%p33_p2) target bundleno = 20 (0x14), region = 193 }
0x127a   :  { %3744 = vsyncpa [#allocation5], 1 }
0x127b   :  { %3746 = vsyncpa [#allocation5 + $0x1], 1 }
0x127c   :  { %3747 = vsyncpa [#allocation8], 1 }
0x127d   :  { %3749 = vsyncpa [#allocation8 + $0x1], 1 }
0x127e   :  { %3750 = vsyncpa [#allocation11], 1 }
0x127f   :  { %3751 = vsyncpa [#allocation14], 1 }
0x1280   :  { %3752 = vsyncpa [#allocation6], 1 }
0x1281   :  { %3754 = vsyncpa [#allocation6 + $0x1], 1 }
0x1282   :  { %3755 = vsyncpa [#allocation18], 1 }
0x1283   :  { %3757 = vsyncpa [#allocation18 + $0x1], 1 }

</bundles_post_ra>
